<compile_context>
chip_gen: v7x
topology: tpu7x:2x2x1
jax: 0.10.0
libtpu: 0.0.40
codegen_flags: <defaults>
</compile_context>

<pallas_src>
import jax
import jax.numpy as jnp
from jax.experimental import pallas as pl
from jax.experimental.pallas import tpu as pltpu

# ---- sizes (consistent with the module's forward) ---------------------------
B = 2            # batch
NAGENTS = 4      # n_agents
IN_DIM = 32      # input_shape (e)
HID = 32         # rnn_hidden_dim
EMB = 32         # hypernet_embed
NACT = 8         # n_actions
NQ = 4           # number of q heads (q1..q4)
G3 = 3 * HID     # fused GRU gate width
NQA = NQ * NACT  # fused head output width (32)
KBIG = NQA * HID # fused bilinear contraction width (1024)

# ---- compacted weight-slab layout: 128 rows x 128 lanes ----------------------
# band 0 (rows   0: 32): fc1.weight.T  [:,  0: 32] | gru w_ih.T  [:, 32:128]
# band 1 (rows  32: 64): gru w_hh.T    [:,  0: 96] | mb1.T       [:, 96:128]
# band 2 (rows  64: 96): mb2.T [:,0:32] | [mo_f tiled|mo_b].T [:,32:65] | bw_all [:,96:128]
# band 3 (rows  96:128): wb_all [:,0:32] | bias rows 0..6 at lanes 32:128
NROWS = 128
R_B0, R_B1, R_B2, R_B3 = 0, 32, 64, 96
C_FC1, C_WIH = 0, 32
C_WHH, C_MB1 = 0, 96
C_MB2, C_FB, C_BW = 0, 32, 96
C_WB, C_BIAS = 0, 32

# ---- output-slab column layout ----------------------------------------------
OUT_Q = 0
OUT_H = OUT_Q + NACT          # 8
OUT_QC = OUT_H + HID          # 40
OUT_MOF = OUT_QC + NQA        # 72
OUT_USED = OUT_MOF + NQ       # 76
OUT_W = 128


def _elu(v):
    return jnp.where(v > 0, v, jnp.exp(jnp.minimum(v, 0.0)) - 1.0)


def _sigmoid_kernel(v):
    # sigmoid(v) == 0.5*(tanh(v/2)+1): one EUP tanh, avoids a VPU divide.
    return 0.5 * (jnp.tanh(0.5 * v) + 1.0)


def _sigmoid_ref(v):
    return 1.0 / (1.0 + jnp.exp(-v))


# ---------------------------- Pallas kernel ----------------------------------
def gmof_kernel(x_ref, h0_ref, ws_ref, wt_ref, out_ref,
                h_scr, tile_scr, sred_scr, scomb_scr):
    f32 = jnp.float32
    t_step = pl.program_id(0)

    @pl.when(t_step == 0)
    def _init():
        # Hidden-state carry lives in VMEM for the whole rollout.
        h_scr[...] = h0_ref[...]
        # TILE[d, k] = 1 iff (k mod HID) == d  (HID is a power of two).
        d_i = jax.lax.broadcasted_iota(jnp.int32, (HID, KBIG), 0)
        k_i = jax.lax.broadcasted_iota(jnp.int32, (HID, KBIG), 1)
        tile_scr[...] = jnp.where(jnp.bitwise_and(k_i, HID - 1) == d_i,
                                  1.0, 0.0).astype(f32)
        # SRED[k, c] = 1 iff c*HID <= k < (c+1)*HID  (group sum over HID lanes).
        k_j = jax.lax.broadcasted_iota(jnp.int32, (KBIG, NQA), 0)
        c_j = jax.lax.broadcasted_iota(jnp.int32, (KBIG, NQA), 1)
        sred_scr[...] = jnp.where((k_j >= c_j * HID) & (k_j < (c_j + 1) * HID),
                                  1.0, 0.0).astype(f32)
        # SCOMB[m, i] = 1 iff i*NQ <= m < (i+1)*NQ  (torch cat+reshape interleave).
        m_i = jax.lax.broadcasted_iota(jnp.int32, (NQA, NACT), 0)
        i_i = jax.lax.broadcasted_iota(jnp.int32, (NQA, NACT), 1)
        scomb_scr[...] = jnp.where((m_i >= i_i * NQ) & (m_i < (i_i + 1) * NQ),
                                   1.0, 0.0).astype(f32)

    def dot(a, b):
        return jnp.dot(a, b, preferred_element_type=f32)

    # Load the four 32-row weight bands once per step; slice the loaded values
    # (plain lane selects, no per-block ref DMAs).
    b0 = ws_ref[R_B0:R_B0 + 32, :]
    b1 = ws_ref[R_B1:R_B1 + 32, :]
    b2 = ws_ref[R_B2:R_B2 + 32, :]
    b3 = ws_ref[R_B3:R_B3 + 32, :]

    def bias(i, w):
        return b3[i:i + 1, C_BIAS:C_BIAS + w]

    x = x_ref[...]                       # (N, IN_DIM) current timestep input
    h_in = h_scr[...]                    # (N, HID) carried hidden state

    # fc1 + ELU
    x1 = _elu(dot(x, b0[:, C_FC1:C_FC1 + HID]) + bias(0, HID))

    # GRUCell, PyTorch semantics (gate order r, z, n), fused gate matmuls
    gi = dot(x1, b0[:, C_WIH:C_WIH + G3]) + bias(1, G3)
    gh = dot(h_in, b1[:, C_WHH:C_WHH + G3]) + bias(2, G3)
    r = _sigmoid_kernel(gi[:, 0:HID] + gh[:, 0:HID])
    z = _sigmoid_kernel(gi[:, HID:2 * HID] + gh[:, HID:2 * HID])
    ng = jnp.tanh(gi[:, 2 * HID:G3] + r * gh[:, 2 * HID:G3])
    h = (1.0 - z) * ng + z * h_in        # (N, HID)
    h_scr[...] = h                       # on-chip recurrence carry

    # hyper_mo_balance: Linear -> ELU -> Linear -> Tanh
    mo = _elu(dot(h, b1[:, C_MB1:C_MB1 + EMB]) + bias(3, EMB))
    mo = jnp.tanh(dot(mo, b2[:, C_MB2:C_MB2 + EMB]) + bias(4, EMB))   # (N, EMB)

    # mo_f (lane-tiled x NACT in the packed weight) and mo_b in one dot
    fb = jnp.tanh(dot(mo, b2[:, C_FB:C_FB + NQA + 1]) + bias(5, NQA + 1))
    mo_f_tiled = fb[:, 0:NQA]            # col m == mo_f[:, m % NQ]
    mo_b = fb[:, NQA:NQA + 1]            # (N, 1)

    # fused hyper_w heads: one bilinear contraction over (EMB, HID)
    t = dot(mo, wt_ref[...])             # (N, KBIG), col c*HID + d
    h_tile = dot(h, tile_scr[...])       # (N, KBIG), col k -> h[:, k mod HID]
    qcore = dot(t * h_tile, sred_scr[...])                       # (N, NQA)
    # hyper_b heads + folded hyper_w biases + hyper_b biases (head-major cols)
    qcore = (qcore + dot(mo, b2[:, C_BW:C_BW + NQA])
             + dot(h, b3[:, C_WB:C_WB + NQA]) + bias(6, NQA))

    # final mix, preserving the torch cat+reshape interleave
    q = dot(qcore * mo_f_tiled, scomb_scr[...]) + mo_b           # (N, NACT)

    # packed lane-dense output slab for this timestep (direct slice stores)
    n_rows = q.shape[0]
    out_ref[:, OUT_Q:OUT_Q + NACT] = q
    out_ref[:, OUT_H:OUT_H + HID] = h
    out_ref[:, OUT_QC:OUT_QC + NQA] = qcore
    out_ref[:, OUT_MOF:OUT_MOF + NQ] = fb[:, 0:NQ]
    out_ref[:, OUT_USED:OUT_W] = jnp.zeros((n_rows, OUT_W - OUT_USED), f32)


# ------------------------------- wrappers -------------------------------------
def gmof_forward_sequence(inputs_seq, hidden0, packed):
    """Run T recurrent steps in ONE pallas_call.

    inputs_seq: (T, b, a, IN_DIM); hidden0: (b, a, HID).
    Weights are DMA'd once (constant index_maps) and stay VMEM-resident; the
    hidden state recurrence stays on-chip in a VMEM scratch.
    """
    wslab, wt = packed
    T, b, a, e = inputs_seq.shape
    n = b * a
    x_seq = inputs_seq.reshape(T, n, e).astype(jnp.float32)
    h0 = hidden0.reshape(n, HID).astype(jnp.float32)

    out = pl.pallas_call(
        gmof_kernel,
        out_shape=jax.ShapeDtypeStruct((T, n, OUT_W), jnp.float32),
        grid=(T,),
        in_specs=[
            pl.BlockSpec((None, n, IN_DIM), lambda t: (t, 0, 0)),  # x_t per step
            pl.BlockSpec((n, HID), lambda t: (0, 0)),              # h0 (resident)
            pl.BlockSpec((NROWS, 128), lambda t: (0, 0)),          # weight slab (resident)
            pl.BlockSpec((EMB, KBIG), lambda t: (0, 0)),           # fused head weights (resident)
        ],
        out_specs=pl.BlockSpec((None, n, OUT_W), lambda t: (t, 0, 0)),
        scratch_shapes=[
            pltpu.VMEM((n, HID), jnp.float32),      # carried hidden state
            pltpu.VMEM((HID, KBIG), jnp.float32),   # lane-tiling matrix (t==0)
            pltpu.VMEM((KBIG, NQA), jnp.float32),   # group-sum matrix (t==0)
            pltpu.VMEM((NQA, NACT), jnp.float32),   # combine selection matrix (t==0)
        ],
        compiler_params=pltpu.CompilerParams(
            dimension_semantics=("arbitrary",)),    # true recurrence over time
    )(x_seq, h0, wslab, wt)

    def part(lo, w):
        return out[:, :, lo:lo + w].reshape(T, b, a, w)

    q = part(OUT_Q, NACT)
    h = part(OUT_H, HID)
    qc = out[:, :, OUT_QC:OUT_QC + NQA]
    q1 = qc[:, :, 0:NACT].reshape(T, b, a, NACT)
    q2 = qc[:, :, NACT:2 * NACT].reshape(T, b, a, NACT)
    q3 = qc[:, :, 2 * NACT:3 * NACT].reshape(T, b, a, NACT)
    q4 = qc[:, :, 3 * NACT:4 * NACT].reshape(T, b, a, NACT)
    mo_f = part(OUT_MOF, NQ)
    return (q, h, q1, q2, q3, q4, mo_f)


def gmof_forward(inputs, hidden, packed):
    """Single-step forward (module-equivalent call) = T=1 rollout."""
    outs = gmof_forward_sequence(inputs[None], hidden, packed)
    return tuple(o[0] for o in outs)


# ----------------------- parameter construction / packing ---------------------
def _xavier(key, out_dim, in_dim):
    bound = (6.0 / (in_dim + out_dim)) ** 0.5
    return jax.random.uniform(key, (out_dim, in_dim), jnp.float32, -bound, bound)


def make_params(key):
    ks = iter(jax.random.split(key, 32))

    def bias(shape):
        # torch zero-inits biases; use small nonzero values so the test
        # exercises every bias path in the kernel (incl. hyper_w bias fold-in).
        return 0.05 * jax.random.normal(next(ks), shape, jnp.float32)

    raw = dict(
        fc1w=_xavier(next(ks), HID, IN_DIM), fc1b=bias((HID,)),
        wih=_xavier(next(ks), G3, HID), whh=_xavier(next(ks), G3, HID),
        bih=bias((G3,)), bhh=bias((G3,)),
        mb1w=_xavier(next(ks), EMB, HID), mb1b=bias((EMB,)),
        mb2w=_xavier(next(ks), EMB, EMB), mb2b=bias((EMB,)),
        mofw=_xavier(next(ks), NQ, EMB), mofb=bias((NQ,)),
        mobw=_xavier(next(ks), 1, EMB), mobb=bias((1,)),
        heads=[],
    )
    for _ in range(NQ):
        ww = _xavier(next(ks), HID * NACT, EMB)   # hyper_w_i weight
        wb = bias((HID * NACT,))                  # hyper_w_i bias
        bw = _xavier(next(ks), NACT, EMB)         # hyper_b_i weight
        bb = bias((NACT,))                        # hyper_b_i bias
        raw['heads'].append((ww, wb, bw, bb))
    return raw


def pack_params(raw):
    f32 = jnp.float32
    ws = jnp.zeros((NROWS, 128), f32)

    def put(slab, r, c, arr):
        nr, nc = arr.shape
        return slab.at[r:r + nr, c:c + nc].set(arr.astype(f32))

    ws = put(ws, R_B0, C_FC1, raw['fc1w'].T)          # (32, 32)
    ws = put(ws, R_B0, C_WIH, raw['wih'].T)           # (32, 96)
    ws = put(ws, R_B1, C_WHH, raw['whh'].T)           # (32, 96)
    ws = put(ws, R_B1, C_MB1, raw['mb1w'].T)          # (32, 32)
    ws = put(ws, R_B2, C_MB2, raw['mb2w'].T)          # (32, 32)

    # mo_f weight lane-tiled NACT times + mo_b weight (right-multiply layout)
    mofw_rep = jnp.tile(raw['mofw'], (NACT, 1))               # (NQA, EMB)
    fbw = jnp.concatenate([mofw_rep, raw['mobw']], axis=0)    # (NQA+1, EMB)
    ws = put(ws, R_B2, C_FB, fbw.T)                           # (32, 33)

    # hyper_b weights (mo operand) and hyper_w biases (h operand), head-major
    bw_all = jnp.concatenate([bw.T for (_, _, bw, _) in raw['heads']], axis=1)  # (EMB, NQA)
    ws = put(ws, R_B2, C_BW, bw_all)
    wb_all = jnp.concatenate([wb.reshape(HID, NACT) for (_, wb, _, _) in raw['heads']],
                             axis=1)                                            # (HID, NQA)
    ws = put(ws, R_B3, C_WB, wb_all)

    # bias rows (band 3, lanes 32:128)
    def putb(slab, i, vec):
        return slab.at[R_B3 + i, C_BIAS:C_BIAS + vec.shape[0]].set(vec.astype(f32))

    ws = putb(ws, 0, raw['fc1b'])
    ws = putb(ws, 1, raw['bih'])
    ws = putb(ws, 2, raw['bhh'])
    ws = putb(ws, 3, raw['mb1b'])
    ws = putb(ws, 4, raw['mb2b'])
    fbb = jnp.concatenate([jnp.tile(raw['mofb'], (NACT,)), raw['mobb']])
    ws = putb(ws, 5, fbb)
    bb_all = jnp.concatenate([bb for (_, _, _, bb) in raw['heads']])
    ws = putb(ws, 6, bb_all)

    # fused head weights: W_T[e, c*HID + d] = Ww_head[d*NACT + a, e], c = head*NACT + a
    wrs = [ww.reshape(HID, NACT, EMB).transpose(2, 1, 0) for (ww, _, _, _) in raw['heads']]
    wt = jnp.concatenate(wrs, axis=1).reshape(EMB, KBIG)      # (32, 1024)

    return [ws, wt]


# ------------------------ pure-JAX reference (torch-exact) --------------------
def reference_forward(inputs, hidden, raw):
    b, a, e = inputs.shape
    n = b * a
    x = inputs.reshape(n, e)
    h_in = hidden.reshape(n, HID)
    x1 = _elu(x @ raw['fc1w'].T + raw['fc1b'])
    gi = x1 @ raw['wih'].T + raw['bih']
    gh = h_in @ raw['whh'].T + raw['bhh']
    r = _sigmoid_ref(gi[:, :HID] + gh[:, :HID])
    z = _sigmoid_ref(gi[:, HID:2 * HID] + gh[:, HID:2 * HID])
    ng = jnp.tanh(gi[:, 2 * HID:] + r * gh[:, 2 * HID:])
    h = (1.0 - z) * ng + z * h_in
    mo = jnp.tanh(_elu(h @ raw['mb1w'].T + raw['mb1b']) @ raw['mb2w'].T + raw['mb2b'])
    mo_f = jnp.tanh(mo @ raw['mofw'].T + raw['mofb']).reshape(n, NQ, 1)
    mo_b = jnp.tanh(mo @ raw['mobw'].T + raw['mobb']).reshape(n, 1, 1)
    qs = []
    for (ww, wb, bw, bb) in raw['heads']:
        w = (mo @ ww.T + wb).reshape(n, HID, NACT)
        bq = (mo @ bw.T + bb).reshape(n, 1, NACT)
        qs.append(jnp.matmul(h.reshape(n, 1, HID), w) + bq)     # (n, 1, NACT)
    q_ = jnp.concatenate(qs, axis=1).reshape(n, NACT, NQ)       # torch reshape semantics
    q = jnp.matmul(q_, mo_f) + mo_b
    return (q.reshape(b, a, -1), h.reshape(b, a, -1),
            qs[0].reshape(b, a, -1), qs[1].reshape(b, a, -1),
            qs[2].reshape(b, a, -1), qs[3].reshape(b, a, -1),
            mo_f.reshape(b, a, -1))


def reference_rollout(inputs_seq, hidden0, raw):
    T = inputs_seq.shape[0]
    h = hidden0
    steps = []
    for t in range(T):
        res = reference_forward(inputs_seq[t], h, raw)
        steps.append(res)
        h = res[1]
    return tuple(jnp.stack([s[i] for s in steps], axis=0) for i in range(7))


# --------------------------------- main ----------------------------------------
if __name__ == "__main__":
    key = jax.random.PRNGKey(0)
    k_in, k_seq, k_h, k_p = jax.random.split(key, 4)

    raw = make_params(k_p)
    packed = pack_params(raw)

    names = ["q", "h", "q1", "q2", "q3", "q4", "mo_f"]

    # --- single-step forward (module-equivalent call, T=1) ---
    inputs = jax.random.normal(k_in, (B, NAGENTS, IN_DIM), jnp.float32)
    hidden = 0.1 * jax.random.normal(k_h, (B, NAGENTS, HID), jnp.float32)
    outs = jax.block_until_ready(gmof_forward(inputs, hidden, packed))
    refs = reference_forward(inputs, hidden, raw)
    for nm, o, rr in zip(names, outs, refs):
        assert o.shape == rr.shape, (nm, o.shape, rr.shape)
        err = float(jnp.max(jnp.abs(o - rr)))
        assert jnp.allclose(o, rr, atol=1e-3, rtol=1e-3), (nm, err)

    # --- T-step recurrent rollout fused into ONE kernel launch ---
    T = 8
    inputs_seq = jax.random.normal(k_seq, (T, B, NAGENTS, IN_DIM), jnp.float32)
    outs_seq = jax.block_until_ready(gmof_forward_sequence(inputs_seq, hidden, packed))
    refs_seq = reference_rollout(inputs_seq, hidden, raw)
    for nm, o, rr in zip(names, outs_seq, refs_seq):
        assert o.shape == rr.shape, (nm, o.shape, rr.shape)
        err = float(jnp.max(jnp.abs(o - rr)))
        assert jnp.allclose(o, rr, atol=1e-3, rtol=1e-3), (nm, err)

    print("KERNEL_OK")
</pallas_src>

<mosaic_0001>
module attributes {stable_mosaic.version = 11 : i64} {
  func.func @gmof_kernel(%arg0: i32, %arg1: memref<1x8x32xf32, #tpu.memory_space<vmem>>, %arg2: memref<8x32xf32, #tpu.memory_space<vmem>>, %arg3: memref<128x128xf32, #tpu.memory_space<vmem>>, %arg4: memref<32x1024xf32, #tpu.memory_space<vmem>>, %arg5: memref<1x8x128xf32, #tpu.memory_space<vmem>>, %arg6: memref<8x32xf32, #tpu.memory_space<vmem>>, %arg7: memref<32x1024xf32, #tpu.memory_space<vmem>>, %arg8: memref<1024x32xf32, #tpu.memory_space<vmem>>, %arg9: memref<32x8xf32, #tpu.memory_space<vmem>>) attributes {dimension_semantics = [#tpu.dimension_semantics<arbitrary>], iteration_bounds = array<i64: 1>, scalar_prefetch = 0 : i64, scratch_operands = 4 : i64, tpu.core_type = #tpu.core_type<tc>, window_params = [{transform_indices = @transform_0, window_bounds = array<i64: 1, 8, 32>}, {pipeline_mode = #tpu.pipeline_mode<synchronous>, transform_indices = @transform_1, window_bounds = array<i64: 8, 32>}, {pipeline_mode = #tpu.pipeline_mode<synchronous>, transform_indices = @transform_2, window_bounds = array<i64: 128, 128>}, {pipeline_mode = #tpu.pipeline_mode<synchronous>, transform_indices = @transform_3, window_bounds = array<i64: 32, 1024>}, {transform_indices = @transform_4, window_bounds = array<i64: 1, 8, 128>}]} {
    %c0_i32 = arith.constant 0 : i32
    %0 = arith.cmpi eq, %arg0, %c0_i32 : i32
    %1 = arith.extui %0 : i1 to i32
    %c0_i32_0 = arith.constant 0 : i32
    %2 = arith.cmpi ne, %1, %c0_i32_0 : i32
    scf.if %2 {
      %c0_56 = arith.constant 0 : index
      %c0_57 = arith.constant 0 : index
      %129 = vector.load %arg2[%c0_56, %c0_57] : memref<8x32xf32, #tpu.memory_space<vmem>>, vector<8x32xf32>
      %c0_58 = arith.constant 0 : index
      %c0_59 = arith.constant 0 : index
      %130 = vector.load %arg6[%c0_58, %c0_59] : memref<8x32xf32, #tpu.memory_space<vmem>>, vector<8x32xf32>
      tpu.vector_store %arg6[%c0_58, %c0_59], %129 {strides = array<i32>} : memref<8x32xf32, #tpu.memory_space<vmem>>, vector<8x32xf32>,
      %131 = tpu.iota {dimensions = array<i32: 0>} : vector<32x1024xi32>
      %132 = tpu.iota {dimensions = array<i32: 1>} : vector<32x1024xi32>
      %c31_i32 = arith.constant 31 : i32
      %133 = vector.broadcast %c31_i32 : i32 to vector<32x1024xi32>
      %134 = arith.andi %132, %133 : vector<32x1024xi32>
      %135 = arith.cmpi eq, %134, %131 : vector<32x1024xi32>
      %cst_60 = arith.constant 1.000000e+00 : f32
      %cst_61 = arith.constant 0.000000e+00 : f32
      %136 = vector.broadcast %cst_60 : f32 to vector<32x1024xf32>
      %137 = vector.broadcast %cst_61 : f32 to vector<32x1024xf32>
      %138 = arith.select %135, %136, %137 : vector<32x1024xi1>, vector<32x1024xf32>
      %c0_62 = arith.constant 0 : index
      %c0_63 = arith.constant 0 : index
      %139 = vector.load %arg7[%c0_62, %c0_63] : memref<32x1024xf32, #tpu.memory_space<vmem>>, vector<32x1024xf32>
      tpu.vector_store %arg7[%c0_62, %c0_63], %138 {strides = array<i32>} : memref<32x1024xf32, #tpu.memory_space<vmem>>, vector<32x1024xf32>,
      %140 = tpu.iota {dimensions = array<i32: 0>} : vector<1024x32xi32>
      %141 = tpu.iota {dimensions = array<i32: 1>} : vector<1024x32xi32>
      %c32_i32 = arith.constant 32 : i32
      %142 = vector.broadcast %c32_i32 : i32 to vector<1024x32xi32>
      %143 = arith.muli %141, %142 : vector<1024x32xi32>
      %144 = arith.cmpi sge, %140, %143 : vector<1024x32xi32>
      %c1_i32 = arith.constant 1 : i32
      %145 = vector.broadcast %c1_i32 : i32 to vector<1024x32xi32>
      %146 = arith.addi %141, %145 : vector<1024x32xi32>
      %c32_i32_64 = arith.constant 32 : i32
      %147 = vector.broadcast %c32_i32_64 : i32 to vector<1024x32xi32>
      %148 = arith.muli %146, %147 : vector<1024x32xi32>
      %149 = arith.cmpi slt, %140, %148 : vector<1024x32xi32>
      %150 = arith.andi %144, %149 : vector<1024x32xi1>
      %cst_65 = arith.constant 1.000000e+00 : f32
      %cst_66 = arith.constant 0.000000e+00 : f32
      %151 = vector.broadcast %cst_65 : f32 to vector<1024x32xf32>
      %152 = vector.broadcast %cst_66 : f32 to vector<1024x32xf32>
      %153 = arith.select %150, %151, %152 : vector<1024x32xi1>, vector<1024x32xf32>
      %c0_67 = arith.constant 0 : index
      %c0_68 = arith.constant 0 : index
      %154 = vector.load %arg8[%c0_67, %c0_68] : memref<1024x32xf32, #tpu.memory_space<vmem>>, vector<1024x32xf32>
      tpu.vector_store %arg8[%c0_67, %c0_68], %153 {strides = array<i32>} : memref<1024x32xf32, #tpu.memory_space<vmem>>, vector<1024x32xf32>,
      %155 = tpu.iota {dimensions = array<i32: 0>} : vector<32x8xi32>
      %156 = tpu.iota {dimensions = array<i32: 1>} : vector<32x8xi32>
      %c4_i32 = arith.constant 4 : i32
      %157 = vector.broadcast %c4_i32 : i32 to vector<32x8xi32>
      %158 = arith.muli %156, %157 : vector<32x8xi32>
      %159 = arith.cmpi sge, %155, %158 : vector<32x8xi32>
      %c1_i32_69 = arith.constant 1 : i32
      %160 = vector.broadcast %c1_i32_69 : i32 to vector<32x8xi32>
      %161 = arith.addi %156, %160 : vector<32x8xi32>
      %c4_i32_70 = arith.constant 4 : i32
      %162 = vector.broadcast %c4_i32_70 : i32 to vector<32x8xi32>
      %163 = arith.muli %161, %162 : vector<32x8xi32>
      %164 = arith.cmpi slt, %155, %163 : vector<32x8xi32>
      %165 = arith.andi %159, %164 : vector<32x8xi1>
      %cst_71 = arith.constant 1.000000e+00 : f32
      %cst_72 = arith.constant 0.000000e+00 : f32
      %166 = vector.broadcast %cst_71 : f32 to vector<32x8xf32>
      %167 = vector.broadcast %cst_72 : f32 to vector<32x8xf32>
      %168 = arith.select %165, %166, %167 : vector<32x8xi1>, vector<32x8xf32>
      %c0_73 = arith.constant 0 : index
      %c0_74 = arith.constant 0 : index
      %169 = vector.load %arg9[%c0_73, %c0_74] : memref<32x8xf32, #tpu.memory_space<vmem>>, vector<32x8xf32>
      tpu.vector_store %arg9[%c0_73, %c0_74], %168 {strides = array<i32>} : memref<32x8xf32, #tpu.memory_space<vmem>>, vector<32x8xf32>,
    } else {
    }
    %c0 = arith.constant 0 : index
    %c0_1 = arith.constant 0 : index
    %3 = vector.load %arg3[%c0, %c0_1] : memref<128x128xf32, #tpu.memory_space<vmem>>, vector<32x128xf32>
    %c32 = arith.constant 32 : index
    %c0_2 = arith.constant 0 : index
    %4 = vector.load %arg3[%c32, %c0_2] : memref<128x128xf32, #tpu.memory_space<vmem>>, vector<32x128xf32>
    %c64 = arith.constant 64 : index
    %c0_3 = arith.constant 0 : index
    %5 = vector.load %arg3[%c64, %c0_3] : memref<128x128xf32, #tpu.memory_space<vmem>>, vector<32x128xf32>
    %c96 = arith.constant 96 : index
    %c0_4 = arith.constant 0 : index
    %6 = vector.load %arg3[%c96, %c0_4] : memref<128x128xf32, #tpu.memory_space<vmem>>, vector<32x128xf32>
    %c0_5 = arith.constant 0 : index
    %c0_6 = arith.constant 0 : index
    %c0_7 = arith.constant 0 : index
    %7 = vector.load %arg1[%c0_5, %c0_6, %c0_7] : memref<1x8x32xf32, #tpu.memory_space<vmem>>, vector<1x8x32xf32>
    %8 = vector.shape_cast %7 : vector<1x8x32xf32> to vector<8x32xf32>
    %c0_8 = arith.constant 0 : index
    %c0_9 = arith.constant 0 : index
    %9 = vector.load %arg6[%c0_8, %c0_9] : memref<8x32xf32, #tpu.memory_space<vmem>>, vector<8x32xf32>
    %10 = vector.extract_strided_slice %3 {offsets = [0, 0], sizes = [32, 32], strides = [1, 1]} : vector<32x128xf32> to vector<32x32xf32>
    %cst = arith.constant dense<0.000000e+00> : vector<8x32xf32>
    %11 = tpu.matmul %8, %10, %cst {dimension_numbers = #tpu.dot_dimension_numbers<[1], [0], [0], [1], [0, 0, 1, 1], [], []>} : vector<8x32xf32>, vector<32x32xf32>, vector<8x32xf32> -> vector<8x32xf32>
    %12 = vector.extract_strided_slice %6 {offsets = [0, 32], sizes = [1, 32], strides = [1, 1]} : vector<32x128xf32> to vector<1x32xf32>
    %13 = vector.broadcast %12 : vector<1x32xf32> to vector<8x32xf32>
    %14 = arith.addf %11, %13 : vector<8x32xf32>
    %cst_10 = arith.constant 0.000000e+00 : f32
    %15 = vector.broadcast %cst_10 : f32 to vector<8x32xf32>
    %16 = arith.cmpf ogt, %14, %15 : vector<8x32xf32>
    %cst_11 = arith.constant 0.000000e+00 : f32
    %17 = vector.broadcast %cst_11 : f32 to vector<8x32xf32>
    %18 = arith.minimumf %14, %17 : vector<8x32xf32>
    %19 = math.exp %18 : vector<8x32xf32>
    %cst_12 = arith.constant 1.000000e+00 : f32
    %20 = vector.broadcast %cst_12 : f32 to vector<8x32xf32>
    %21 = arith.subf %19, %20 : vector<8x32xf32>
    %22 = arith.select %16, %14, %21 : vector<8x32xi1>, vector<8x32xf32>
    %23 = vector.extract_strided_slice %3 {offsets = [0, 32], sizes = [32, 96], strides = [1, 1]} : vector<32x128xf32> to vector<32x96xf32>
    %cst_13 = arith.constant dense<0.000000e+00> : vector<8x96xf32>
    %24 = tpu.matmul %22, %23, %cst_13 {dimension_numbers = #tpu.dot_dimension_numbers<[1], [0], [0], [1], [0, 0, 1, 1], [], []>} : vector<8x32xf32>, vector<32x96xf32>, vector<8x96xf32> -> vector<8x96xf32>
    %25 = vector.extract_strided_slice %6 {offsets = [1, 32], sizes = [1, 96], strides = [1, 1]} : vector<32x128xf32> to vector<1x96xf32>
    %26 = vector.broadcast %25 : vector<1x96xf32> to vector<8x96xf32>
    %27 = arith.addf %24, %26 : vector<8x96xf32>
    %28 = vector.extract_strided_slice %4 {offsets = [0, 0], sizes = [32, 96], strides = [1, 1]} : vector<32x128xf32> to vector<32x96xf32>
    %cst_14 = arith.constant dense<0.000000e+00> : vector<8x96xf32>
    %29 = tpu.matmul %9, %28, %cst_14 {dimension_numbers = #tpu.dot_dimension_numbers<[1], [0], [0], [1], [0, 0, 1, 1], [], []>} : vector<8x32xf32>, vector<32x96xf32>, vector<8x96xf32> -> vector<8x96xf32>
    %30 = vector.extract_strided_slice %6 {offsets = [2, 32], sizes = [1, 96], strides = [1, 1]} : vector<32x128xf32> to vector<1x96xf32>
    %31 = vector.broadcast %30 : vector<1x96xf32> to vector<8x96xf32>
    %32 = arith.addf %29, %31 : vector<8x96xf32>
    %33 = vector.extract_strided_slice %27 {offsets = [0, 0], sizes = [8, 32], strides = [1, 1]} : vector<8x96xf32> to vector<8x32xf32>
    %34 = vector.extract_strided_slice %32 {offsets = [0, 0], sizes = [8, 32], strides = [1, 1]} : vector<8x96xf32> to vector<8x32xf32>
    %35 = arith.addf %33, %34 : vector<8x32xf32>
    %cst_15 = arith.constant 5.000000e-01 : f32
    %36 = vector.broadcast %cst_15 : f32 to vector<8x32xf32>
    %37 = arith.mulf %36, %35 : vector<8x32xf32>
    %38 = math.tanh %37 : vector<8x32xf32>
    %cst_16 = arith.constant 1.000000e+00 : f32
    %39 = vector.broadcast %cst_16 : f32 to vector<8x32xf32>
    %40 = arith.addf %38, %39 : vector<8x32xf32>
    %cst_17 = arith.constant 5.000000e-01 : f32
    %41 = vector.broadcast %cst_17 : f32 to vector<8x32xf32>
    %42 = arith.mulf %41, %40 : vector<8x32xf32>
    %43 = vector.extract_strided_slice %27 {offsets = [0, 32], sizes = [8, 32], strides = [1, 1]} : vector<8x96xf32> to vector<8x32xf32>
    %44 = vector.extract_strided_slice %32 {offsets = [0, 32], sizes = [8, 32], strides = [1, 1]} : vector<8x96xf32> to vector<8x32xf32>
    %45 = arith.addf %43, %44 : vector<8x32xf32>
    %cst_18 = arith.constant 5.000000e-01 : f32
    %46 = vector.broadcast %cst_18 : f32 to vector<8x32xf32>
    %47 = arith.mulf %46, %45 : vector<8x32xf32>
    %48 = math.tanh %47 : vector<8x32xf32>
    %cst_19 = arith.constant 1.000000e+00 : f32
    %49 = vector.broadcast %cst_19 : f32 to vector<8x32xf32>
    %50 = arith.addf %48, %49 : vector<8x32xf32>
    %cst_20 = arith.constant 5.000000e-01 : f32
    %51 = vector.broadcast %cst_20 : f32 to vector<8x32xf32>
    %52 = arith.mulf %51, %50 : vector<8x32xf32>
    %53 = vector.extract_strided_slice %27 {offsets = [0, 64], sizes = [8, 32], strides = [1, 1]} : vector<8x96xf32> to vector<8x32xf32>
    %54 = vector.extract_strided_slice %32 {offsets = [0, 64], sizes = [8, 32], strides = [1, 1]} : vector<8x96xf32> to vector<8x32xf32>
    %55 = arith.mulf %42, %54 : vector<8x32xf32>
    %56 = arith.addf %53, %55 : vector<8x32xf32>
    %57 = math.tanh %56 : vector<8x32xf32>
    %cst_21 = arith.constant 1.000000e+00 : f32
    %58 = vector.broadcast %cst_21 : f32 to vector<8x32xf32>
    %59 = arith.subf %58, %52 : vector<8x32xf32>
    %60 = arith.mulf %59, %57 : vector<8x32xf32>
    %61 = arith.mulf %52, %9 : vector<8x32xf32>
    %62 = arith.addf %60, %61 : vector<8x32xf32>
    %c0_22 = arith.constant 0 : index
    %c0_23 = arith.constant 0 : index
    %63 = vector.load %arg6[%c0_22, %c0_23] : memref<8x32xf32, #tpu.memory_space<vmem>>, vector<8x32xf32>
    tpu.vector_store %arg6[%c0_22, %c0_23], %62 {strides = array<i32>} : memref<8x32xf32, #tpu.memory_space<vmem>>, vector<8x32xf32>,
    %64 = vector.extract_strided_slice %4 {offsets = [0, 96], sizes = [32, 32], strides = [1, 1]} : vector<32x128xf32> to vector<32x32xf32>
    %cst_24 = arith.constant dense<0.000000e+00> : vector<8x32xf32>
    %65 = tpu.matmul %62, %64, %cst_24 {dimension_numbers = #tpu.dot_dimension_numbers<[1], [0], [0], [1], [0, 0, 1, 1], [], []>} : vector<8x32xf32>, vector<32x32xf32>, vector<8x32xf32> -> vector<8x32xf32>
    %66 = vector.extract_strided_slice %6 {offsets = [3, 32], sizes = [1, 32], strides = [1, 1]} : vector<32x128xf32> to vector<1x32xf32>
    %67 = vector.broadcast %66 : vector<1x32xf32> to vector<8x32xf32>
    %68 = arith.addf %65, %67 : vector<8x32xf32>
    %cst_25 = arith.constant 0.000000e+00 : f32
    %69 = vector.broadcast %cst_25 : f32 to vector<8x32xf32>
    %70 = arith.cmpf ogt, %68, %69 : vector<8x32xf32>
    %cst_26 = arith.constant 0.000000e+00 : f32
    %71 = vector.broadcast %cst_26 : f32 to vector<8x32xf32>
    %72 = arith.minimumf %68, %71 : vector<8x32xf32>
    %73 = math.exp %72 : vector<8x32xf32>
    %cst_27 = arith.constant 1.000000e+00 : f32
    %74 = vector.broadcast %cst_27 : f32 to vector<8x32xf32>
    %75 = arith.subf %73, %74 : vector<8x32xf32>
    %76 = arith.select %70, %68, %75 : vector<8x32xi1>, vector<8x32xf32>
    %77 = vector.extract_strided_slice %5 {offsets = [0, 0], sizes = [32, 32], strides = [1, 1]} : vector<32x128xf32> to vector<32x32xf32>
    %cst_28 = arith.constant dense<0.000000e+00> : vector<8x32xf32>
    %78 = tpu.matmul %76, %77, %cst_28 {dimension_numbers = #tpu.dot_dimension_numbers<[1], [0], [0], [1], [0, 0, 1, 1], [], []>} : vector<8x32xf32>, vector<32x32xf32>, vector<8x32xf32> -> vector<8x32xf32>
    %79 = vector.extract_strided_slice %6 {offsets = [4, 32], sizes = [1, 32], strides = [1, 1]} : vector<32x128xf32> to vector<1x32xf32>
    %80 = vector.broadcast %79 : vector<1x32xf32> to vector<8x32xf32>
    %81 = arith.addf %78, %80 : vector<8x32xf32>
    %82 = math.tanh %81 : vector<8x32xf32>
    %83 = vector.extract_strided_slice %5 {offsets = [0, 32], sizes = [32, 33], strides = [1, 1]} : vector<32x128xf32> to vector<32x33xf32>
    %cst_29 = arith.constant dense<0.000000e+00> : vector<8x33xf32>
    %84 = tpu.matmul %82, %83, %cst_29 {dimension_numbers = #tpu.dot_dimension_numbers<[1], [0], [0], [1], [0, 0, 1, 1], [], []>} : vector<8x32xf32>, vector<32x33xf32>, vector<8x33xf32> -> vector<8x33xf32>
    %85 = vector.extract_strided_slice %6 {offsets = [5, 32], sizes = [1, 33], strides = [1, 1]} : vector<32x128xf32> to vector<1x33xf32>
    %86 = vector.broadcast %85 : vector<1x33xf32> to vector<8x33xf32>
    %87 = arith.addf %84, %86 : vector<8x33xf32>
    %88 = math.tanh %87 : vector<8x33xf32>
    %89 = vector.extract_strided_slice %88 {offsets = [0, 0], sizes = [8, 32], strides = [1, 1]} : vector<8x33xf32> to vector<8x32xf32>
    %90 = vector.extract_strided_slice %88 {offsets = [0, 32], sizes = [8, 1], strides = [1, 1]} : vector<8x33xf32> to vector<8x1xf32>
    %c0_30 = arith.constant 0 : index
    %c0_31 = arith.constant 0 : index
    %91 = vector.load %arg4[%c0_30, %c0_31] : memref<32x1024xf32, #tpu.memory_space<vmem>>, vector<32x1024xf32>
    %cst_32 = arith.constant dense<0.000000e+00> : vector<8x1024xf32>
    %92 = tpu.matmul %82, %91, %cst_32 {dimension_numbers = #tpu.dot_dimension_numbers<[1], [0], [0], [1], [0, 0, 1, 1], [], []>} : vector<8x32xf32>, vector<32x1024xf32>, vector<8x1024xf32> -> vector<8x1024xf32>
    %c0_33 = arith.constant 0 : index
    %c0_34 = arith.constant 0 : index
    %93 = vector.load %arg7[%c0_33, %c0_34] : memref<32x1024xf32, #tpu.memory_space<vmem>>, vector<32x1024xf32>
    %cst_35 = arith.constant dense<0.000000e+00> : vector<8x1024xf32>
    %94 = tpu.matmul %62, %93, %cst_35 {dimension_numbers = #tpu.dot_dimension_numbers<[1], [0], [0], [1], [0, 0, 1, 1], [], []>} : vector<8x32xf32>, vector<32x1024xf32>, vector<8x1024xf32> -> vector<8x1024xf32>
    %95 = arith.mulf %92, %94 : vector<8x1024xf32>
    %c0_36 = arith.constant 0 : index
    %c0_37 = arith.constant 0 : index
    %96 = vector.load %arg8[%c0_36, %c0_37] : memref<1024x32xf32, #tpu.memory_space<vmem>>, vector<1024x32xf32>
    %cst_38 = arith.constant dense<0.000000e+00> : vector<8x32xf32>
    %97 = tpu.matmul %95, %96, %cst_38 {dimension_numbers = #tpu.dot_dimension_numbers<[1], [0], [0], [1], [0, 0, 1, 1], [], []>} : vector<8x1024xf32>, vector<1024x32xf32>, vector<8x32xf32> -> vector<8x32xf32>
    %98 = vector.extract_strided_slice %5 {offsets = [0, 96], sizes = [32, 32], strides = [1, 1]} : vector<32x128xf32> to vector<32x32xf32>
    %cst_39 = arith.constant dense<0.000000e+00> : vector<8x32xf32>
    %99 = tpu.matmul %82, %98, %cst_39 {dimension_numbers = #tpu.dot_dimension_numbers<[1], [0], [0], [1], [0, 0, 1, 1], [], []>} : vector<8x32xf32>, vector<32x32xf32>, vector<8x32xf32> -> vector<8x32xf32>
    %100 = arith.addf %97, %99 : vector<8x32xf32>
    %101 = vector.extract_strided_slice %6 {offsets = [0, 0], sizes = [32, 32], strides = [1, 1]} : vector<32x128xf32> to vector<32x32xf32>
    %cst_40 = arith.constant dense<0.000000e+00> : vector<8x32xf32>
    %102 = tpu.matmul %62, %101, %cst_40 {dimension_numbers = #tpu.dot_dimension_numbers<[1], [0], [0], [1], [0, 0, 1, 1], [], []>} : vector<8x32xf32>, vector<32x32xf32>, vector<8x32xf32> -> vector<8x32xf32>
    %103 = arith.addf %100, %102 : vector<8x32xf32>
    %104 = vector.extract_strided_slice %6 {offsets = [6, 32], sizes = [1, 32], strides = [1, 1]} : vector<32x128xf32> to vector<1x32xf32>
    %105 = vector.broadcast %104 : vector<1x32xf32> to vector<8x32xf32>
    %106 = arith.addf %103, %105 : vector<8x32xf32>
    %107 = arith.mulf %106, %89 : vector<8x32xf32>
    %c0_41 = arith.constant 0 : index
    %c0_42 = arith.constant 0 : index
    %108 = vector.load %arg9[%c0_41, %c0_42] : memref<32x8xf32, #tpu.memory_space<vmem>>, vector<32x8xf32>
    %cst_43 = arith.constant dense<0.000000e+00> : vector<8x8xf32>
    %109 = tpu.matmul %107, %108, %cst_43 {dimension_numbers = #tpu.dot_dimension_numbers<[1], [0], [0], [1], [0, 0, 1, 1], [], []>} : vector<8x32xf32>, vector<32x8xf32>, vector<8x8xf32> -> vector<8x8xf32>
    %110 = vector.broadcast %90 : vector<8x1xf32> to vector<8x8xf32>
    %111 = arith.addf %109, %110 : vector<8x8xf32>
    %c0_44 = arith.constant 0 : index
    %c0_45 = arith.constant 0 : index
    %c0_46 = arith.constant 0 : index
    %112 = vector.load %arg5[%c0_44, %c0_45, %c0_46] : memref<1x8x128xf32, #tpu.memory_space<vmem>>, vector<1x8x8xf32>
    %113 = vector.shape_cast %112 : vector<1x8x8xf32> to vector<8x8xf32>
    %114 = vector.shape_cast %111 : vector<8x8xf32> to vector<1x8x8xf32>
    tpu.vector_store %arg5[%c0_44, %c0_45, %c0_46], %114 {strides = array<i32>} : memref<1x8x128xf32, #tpu.memory_space<vmem>>, vector<1x8x8xf32>,
    %c0_47 = arith.constant 0 : index
    %c0_48 = arith.constant 0 : index
    %c8 = arith.constant 8 : index
    %115 = vector.load %arg5[%c0_47, %c0_48, %c8] : memref<1x8x128xf32, #tpu.memory_space<vmem>>, vector<1x8x32xf32>
    %116 = vector.shape_cast %115 : vector<1x8x32xf32> to vector<8x32xf32>
    %117 = vector.shape_cast %62 : vector<8x32xf32> to vector<1x8x32xf32>
    tpu.vector_store %arg5[%c0_47, %c0_48, %c8], %117 {strides = array<i32>} : memref<1x8x128xf32, #tpu.memory_space<vmem>>, vector<1x8x32xf32>,
    %c0_49 = arith.constant 0 : index
    %c0_50 = arith.constant 0 : index
    %c40 = arith.constant 40 : index
    %118 = vector.load %arg5[%c0_49, %c0_50, %c40] : memref<1x8x128xf32, #tpu.memory_space<vmem>>, vector<1x8x32xf32>
    %119 = vector.shape_cast %118 : vector<1x8x32xf32> to vector<8x32xf32>
    %120 = vector.shape_cast %106 : vector<8x32xf32> to vector<1x8x32xf32>
    tpu.vector_store %arg5[%c0_49, %c0_50, %c40], %120 {strides = array<i32>} : memref<1x8x128xf32, #tpu.memory_space<vmem>>, vector<1x8x32xf32>,
    %121 = vector.extract_strided_slice %88 {offsets = [0, 0], sizes = [8, 4], strides = [1, 1]} : vector<8x33xf32> to vector<8x4xf32>
    %c0_51 = arith.constant 0 : index
    %c0_52 = arith.constant 0 : index
    %c72 = arith.constant 72 : index
    %122 = vector.load %arg5[%c0_51, %c0_52, %c72] : memref<1x8x128xf32, #tpu.memory_space<vmem>>, vector<1x8x4xf32>
    %123 = vector.shape_cast %122 : vector<1x8x4xf32> to vector<8x4xf32>
    %124 = vector.shape_cast %121 : vector<8x4xf32> to vector<1x8x4xf32>
    tpu.vector_store %arg5[%c0_51, %c0_52, %c72], %124 {strides = array<i32>} : memref<1x8x128xf32, #tpu.memory_space<vmem>>, vector<1x8x4xf32>,
    %cst_53 = arith.constant 0.000000e+00 : f32
    %125 = vector.broadcast %cst_53 : f32 to vector<8x52xf32>
    %c0_54 = arith.constant 0 : index
    %c0_55 = arith.constant 0 : index
    %c76 = arith.constant 76 : index
    %126 = vector.load %arg5[%c0_54, %c0_55, %c76] : memref<1x8x128xf32, #tpu.memory_space<vmem>>, vector<1x8x52xf32>
    %127 = vector.shape_cast %126 : vector<1x8x52xf32> to vector<8x52xf32>
    %128 = vector.shape_cast %125 : vector<8x52xf32> to vector<1x8x52xf32>
    tpu.vector_store %arg5[%c0_54, %c0_55, %c76], %128 {strides = array<i32>} : memref<1x8x128xf32, #tpu.memory_space<vmem>>, vector<1x8x52xf32>,
    return
  }
  func.func @transform_0(%arg0: i32) -> (i32, i32, i32) {
    %c0_i32 = arith.constant 0 : i32
    %c0_i32_0 = arith.constant 0 : i32
    %c0_i32_1 = arith.constant 0 : i32
    return %arg0, %c0_i32, %c0_i32_0 : i32, i32, i32
  }
  func.func @transform_1(%arg0: i32) -> (i32, i32) {
    %c0_i32 = arith.constant 0 : i32
    %c0_i32_0 = arith.constant 0 : i32
    %c0_i32_1 = arith.constant 0 : i32
    return %c0_i32, %c0_i32_0 : i32, i32
  }
  func.func @transform_2(%arg0: i32) -> (i32, i32) {
    %c0_i32 = arith.constant 0 : i32
    %c0_i32_0 = arith.constant 0 : i32
    %c0_i32_1 = arith.constant 0 : i32
    return %c0_i32, %c0_i32_0 : i32, i32
  }
  func.func @transform_3(%arg0: i32) -> (i32, i32) {
    %c0_i32 = arith.constant 0 : i32
    %c0_i32_0 = arith.constant 0 : i32
    %c0_i32_1 = arith.constant 0 : i32
    return %c0_i32, %c0_i32_0 : i32, i32
  }
  func.func @transform_4(%arg0: i32) -> (i32, i32, i32) {
    %c0_i32 = arith.constant 0 : i32
    %c0_i32_0 = arith.constant 0 : i32
    %c0_i32_1 = arith.constant 0 : i32
    return %arg0, %c0_i32, %c0_i32_0 : i32, i32, i32
  }
}

</mosaic_0001>

<bundles_post_ra>
// kernel: tpu_custom_call.1
= control target key start
LH: loop header
LB: loop body
LE: loop exit
PB: predicated region body
PF: predicated region fallthrough
CT: control target
= control target key end

     0   :  { %9 = vsyncpa [#allocation7], 0  ;;  %s4800_s0 = inlined_call_operand.hbm [shape: f32[1,8,32], index: 0, kind: input, shape index: {}]   ;;  %s4801_s1 = inlined_call_operand.hbm [shape: f32[8,32], index: 1, kind: input, shape index: {}]   ;;  %s4802_s2 = inlined_call_operand.hbm [shape: f32[128,128], index: 2, kind: input, shape index: {}]   ;;  %s4803_s3 = inlined_call_operand.hbm [shape: f32[32,1024], index: 3, kind: input, shape index: {}]   ;;  %s4804_s4 = inlined_call_operand.hbm [shape: f32[1,8,128], index: 4, kind: output, shape index: {}]  }
   0x1   :  { %10 = vsyncpa [#allocation10], 0 }
   0x2   :  { %11 = vsyncpa [#allocation13], 0 }
   0x3   :  { %12 = vsyncpa [#allocation8], 0  ;;  %s3684_s15 = smov [#allocation9]   ;;  %s3685_s17 = smov [#allocation6]  }
   0x4   :  { %s29_s16 = sshll.u32 %s3684_s15, 4  ;;  %s19_s18 = sshll.u32 %s3685_s17, 4  ;;  %s30_s16 = int_to_ptr.vmem [resolvable:$true] %s29_s16  ;;  %s20_s18 = int_to_ptr.vmem [resolvable:$true] %s19_s18 }
   0x5   :  { %s3566_s21 = scalar_lea.hbm %s4801_s1, 128 }
   0x6   :  { %p3567_p0 = scmp.ne.s32.totalorder %s4801_s1, %s3566_s21  ;;  %p3570_p1 = scmp.lt.u32.totalorder %s3566_s21, %s4801_s1 }
   0x8   :  { %p3572_p2 = pnand %p3570_p1, %p3567_p0 }
   0xa   :  { %3575 = shalt.err (!%p3572_p2)
}
   0xb   :  { %s3576_s26 = scalar_lea.vmem %s30_s16, 128  ;;  %p3581_p4 = scmp.lt.s32.totalorder %s30_s16, %s30_s16 }
   0xc   :  { %p3577_p3 = scmp.ne.s32.totalorder %s30_s16, %s3576_s26  ;;  %p3582_p5 = scmp.lt.s32.totalorder %s3576_s26, %s3576_s26 }
   0xe   :  { %p3583_p6 = por %p3582_p5, %p3581_p4 }
  0x10   :  { %p3584_p7 = pnand %p3583_p6, %p3577_p3 }
  0x12   :  { %3587 = shalt.err (!%p3584_p7)
}
  0x13   :  { %32 = dma.hbm_to_vmem [thread:$0]  %s4801_s1, 128, %s30_s16, [#allocation10]  }
  0x14   :  { %s3588_s5 = scalar_lea.hbm %s4800_s0, 128 }
  0x15   :  { %p3589_p8 = scmp.ne.s32.totalorder %s4800_s0, %s3588_s5  ;;  %p3592_p9 = scmp.lt.u32.totalorder %s3588_s5, %s4800_s0 }
  0x17   :  { %p3594_p10 = pnand %p3592_p9, %p3589_p8 }
  0x19   :  { %3597 = shalt.err (!%p3594_p10)
}
  0x1a   :  { %s3598_s10 = scalar_lea.vmem %s20_s18, 128  ;;  %p3603_p12 = scmp.lt.s32.totalorder %s20_s18, %s20_s18 }
  0x1b   :  { %p3599_p11 = scmp.ne.s32.totalorder %s20_s18, %s3598_s10  ;;  %p3604_p13 = scmp.lt.s32.totalorder %s3598_s10, %s3598_s10 }
  0x1d   :  { %p3605_p0 = por %p3604_p13, %p3603_p12 }
  0x1f   :  { %p3606_p1 = pnand %p3605_p0, %p3599_p11 }
  0x21   :  { %3609 = shalt.err (!%p3606_p1)
}
  0x22   :  { %22 = dma.hbm_to_vmem [thread:$0]  %s4800_s0, 128, %s20_s18, [#allocation7]  }
  0x23   :  { %s3686_s12 = smov [#allocation11]   ;;  %s3610_s16 = scalar_lea.hbm %s4802_s2, 2048 }
  0x24   :  { %s38_s13 = sshll.u32 %s3686_s12, 4  ;;  %p3611_p2 = scmp.ne.s32.totalorder %s4802_s2, %s3610_s16  ;;  %s39_s13 = int_to_ptr.vmem [resolvable:$true] %s38_s13 }
  0x25   :  { %p3614_p3 = scmp.lt.u32.totalorder %s3610_s16, %s4802_s2 }
  0x27   :  { %p3616_p4 = pnand %p3614_p3, %p3611_p2 }
  0x29   :  { %3619 = shalt.err (!%p3616_p4)
}
  0x2a   :  { %s3620_s22 = scalar_lea.vmem %s39_s13, 2048  ;;  %p3625_p6 = scmp.lt.s32.totalorder %s39_s13, %s39_s13 }
  0x2b   :  { %p3621_p5 = scmp.ne.s32.totalorder %s39_s13, %s3620_s22  ;;  %p3626_p7 = scmp.lt.s32.totalorder %s3620_s22, %s3620_s22 }
  0x2d   :  { %p3627_p8 = por %p3626_p7, %p3625_p6 }
  0x2f   :  { %p3628_p9 = pnand %p3627_p8, %p3621_p5 }
  0x31   :  { %3631 = shalt.err (!%p3628_p9)
}
  0x32   :  { %s3687_s0 = smov 128   ;;  %s3688_s18 = smov 8  }
  0x33   :  { %44 = dma.hbm_to_vmem [thread:$0]  %s4802_s2, 2048, %s39_s13, [#allocation10], %s3687_s0, %s3687_s0, %s3688_s18  }
  0x34   :  { %s3689_s25 = smov [#allocation12]   ;;  %s3632_s29 = scalar_lea.hbm %s4803_s3, 4096 }
  0x35   :  { %s50_s26 = sshll.u32 %s3689_s25, 4  ;;  %p3633_p10 = scmp.ne.s32.totalorder %s4803_s3, %s3632_s29  ;;  %s51_s26 = int_to_ptr.vmem [resolvable:$true] %s50_s26 }
  0x36   :  { %p3636_p11 = scmp.lt.u32.totalorder %s3632_s29, %s4803_s3 }
  0x38   :  { %p3638_p12 = pnand %p3636_p11, %p3633_p10 }
  0x3a   :  { %3641 = shalt.err (!%p3638_p12)
}
  0x3b   :  { %s3642_s8 = scalar_lea.vmem %s51_s26, 4096  ;;  %p3647_p0 = scmp.lt.s32.totalorder %s51_s26, %s51_s26 }
  0x3c   :  { %p3643_p13 = scmp.ne.s32.totalorder %s51_s26, %s3642_s8  ;;  %p3648_p1 = scmp.lt.s32.totalorder %s3642_s8, %s3642_s8 }
  0x3e   :  { %p3649_p2 = por %p3648_p1, %p3647_p0 }
  0x40   :  { %p3650_p3 = pnand %p3649_p2, %p3643_p13 }
  0x42   :  { %3653 = shalt.err (!%p3650_p3)
}
  0x43   :  { %s3690_s2 = smov 1024   ;;  %s3691_s9 = smov 64  }
  0x44   :  { %56 = dma.hbm_to_vmem [thread:$0]  %s4803_s3, 4096, %s51_s26, [#allocation13], %s3690_s2, %s3690_s2, %s3691_s9  }
  0x45   :  { %3676 = dma.done.wait [#allocation7], 128  }
  0x46   :  { %3677 = vsyncadd [#allocation7], 4294967168 }
  0x47   :  { %3678 = dma.done.wait [#allocation10], 2176  }
  0x48   :  { %3679 = vsyncadd [#allocation10], 4294965120 }
  0x49   :  { %3680 = dma.done.wait [#allocation13], 4096  }
  0x4a   :  { %3681 = vsyncadd [#allocation13], 4294963200  ;;  %v3692_v0 = vmov 0.0|0.0   ;;  %vm4805_vm0 = vmmov 0   ;;  %v3694_v1 = vmov 0.0   ;;  %v76_v2 = vlaneseq  ;;  %v984_v5 = vld [vmem:[#allocation11] sm:$0xff] }
  0x4b   :  { %3247 = vmatprep.subr.bf16.mxu0 %v3692_v0  ;;  %3156 = vmatprep.mubr.msk.f32.mxu0 %vm4805_vm0, %v3694_v1  ;;  %v985_v6 = vld [vmem:[#allocation11 + $0x8] sm:$0xff]  ;;  %v986_v7 = vld [vmem:[#allocation11 + $0x10] sm:$0xff]  ;;  %v987_v9 = vld [vmem:[#allocation11 + $0x18] sm:$0xff]  ;;  %vm74_vm1 = vcmask 261120   ;;  %s3695_s3 = smov 96   ;;  %s3696_s11 = smov 32  }
  0x4c   :  { %3253 = vmatprep.subr.bf16.mxu1 %v3692_v0  ;;  %3167 = vmatprep.mubr.msk.f32.mxu1 %vm4805_vm0, %v3694_v1  ;;  %v3784_v3 = vshrl.u32 %v76_v2, 7  ;;  %v3248_v8 = vpack.c.bf16 %v985_v6, %v984_v5  ;;  %v3787_v10 = vld [vmem:[#allocation11 + $0x60] sm:$0xff]  ;;  %v3517_v12 = vpack.i.bf16 %v987_v9, %v986_v7  ;;  %v3251_v13 = vpack.c.bf16 %v987_v9, %v986_v7  ;;  %v73_v14 = vld [vmem:[#allocation9] sm:$0xff]  ;;  %v3794_v17 = vld [vmem:[#allocation11 + $0x28] sm:$0xff]  ;;  %s3697_s12 = smov 104   ;;  %s3700_s13 = smov 72  }
  0x4d   :  { %v3512_v15 = vpack.i.bf16 %v985_v6, %v984_v5  ;;  %v3792_v16 = vld [vmem:[#allocation11 + $0x20] sm:$0xff]  ;;  %75 = vst.msk [vmem:[#allocation2] sm:$0xff] %vm74_vm1, %v73_v14  ;;  %v1000_v18 = vld [vmem:[#allocation6] sm:$0xff]  ;;  %v3804_v21 = vld [vmem:[#allocation11 + $0x38] sm:$0xff]  ;;  %s3701_s14 = smov 40   ;;  %s3702_s15 = smov [#allocation14]  }
  0x4e   :  { %v1004_v4 = vsub.s32 0, %v3784_v3  ;;  %3249 = vmatpush3.bf16.msra.mxu0 %v3248_v8  ;;  %3518 = vrot.lane.b32.xlu1 %v3517_v12, %s3695_s3  ;;  %v3260_v19 = vpack.c.bf16 %v3794_v17, %v3792_v16  ;;  %v3802_v20 = vld [vmem:[#allocation11 + $0x30] sm:$0xff]  ;;  %v1189_v24 = vsub.s32 2, %v3784_v3  ;;  %v1092_v26 = vsub.s32 1, %v3784_v3  ;;  %s2901_s16 = sshll.u32 %s3702_s15, 4  ;;  %s2902_s16 = int_to_ptr.vmem [resolvable:$true] %s2901_s16 }
  0x4f   :  { %3250 = vmatprep.subr.bf16.mxu0 %v3692_v0  ;;  %v3263_v22 = vpack.c.bf16 %v3804_v21, %v3802_v20  ;;  %v3527_v60 = vpack.i.bf16 %v3804_v21, %v3802_v20  ;;  %v1404_v8 = vsub.s32 4, %v3784_v3  ;;  %v995_v21 = vld [vmem:[#allocation11 + $0x58] sm:$0xff]  ;;  %s3654_s17 = scalar_lea.vmem %s2902_s16, 128  ;;  %p3659_p5 = scmp.lt.s32.totalorder %s2902_s16, %s2902_s16 }
  0x50   :  { %v1005_v11 = vrot.slane %v3787_v10, %v1004_v4  ;;  %v1190_v25 = vrot.slane %v3787_v10, %v1189_v24  ;;  %v1093_v27 = vrot.slane %v3787_v10, %v1092_v26  ;;  %v3522_v4 = vpack.i.bf16 %v3794_v17, %v3792_v16  ;;  %v994_v17 = vld [vmem:[#allocation11 + $0x50] sm:$0xff]  ;;  %p3655_p4 = scmp.ne.s32.totalorder %s2902_s16, %s3654_s17  ;;  %p3660_p6 = scmp.lt.s32.totalorder %s3654_s17, %s3654_s17 }
  0x51   :  { %v1405_v14 = vrot.slane %v3787_v10, %v1404_v8  ;;  %v2785_v26 = vsub.s32 6, %v3784_v3  ;;  %v1595_v8 = vld [vmem:[#allocation12 + $0x68] sm:$0xff] }
  0x52   :  { %1007 = vrot.lane.b32.xlu0 %v1005_v11, %s3695_s3  ;;  %3252 = vmatpush3.bf16.msra.mxu0 %v3251_v13  ;;  %p3661_p7 = por %p3660_p6, %p3659_p5 }
  0x53   :  { %3259 = vmatprep.subr.bf16.mxu0 %v3692_v0  ;;  %1192 = vrot.lane.b32.xlu1 %v1190_v25, %s3695_s3  ;;  %v1302_v25 = vsub.s32 3, %v3784_v3 }
  0x54   :  { %v1001_v23 = vld [vmem:[#allocation2] sm:$0xff]  ;;  %p3662_p8 = pnand %p3661_p7, %p3655_p4 }
  0x55   :  { %3157 = vmatmul.mubr.msk.f32.vlgmr.msra.gmra.mrb[0].mxu0 %vm74_vm1, %v1000_v18 }
  0x56   :  { %3513 = vrot.lane.b32.xlu0 %v3512_v15, %s3695_s3  ;;  %3261 = vmatpush3.bf16.msra.mxu0 %v3260_v19 }
  0x57   :  { %3178 = vmatprep.mubr.msk.f32.mxu0 %vm4805_vm0, %v3694_v1  ;;  %3262 = vmatprep.subr.bf16.mxu0 %v3692_v0 }
  0x5a   :  { %3264 = vmatpush3.bf16.msra.mxu0 %v3263_v22  ;;  %1111 = vrot.lane.b32.xlu0 %v1093_v27, %s3695_s3  ;;  %v1303_v27 = vrot.slane %v3787_v10, %v1302_v25 }
  0x5b   :  { %3271 = vmatprep.subr.bf16.mxu0 %v3692_v0 }
  0x5d   :  { %3179 = vmatmul.mubr.msk.f32.vlgmr.msra.gmra.mrb[2].mxu0 %vm74_vm1, %v1001_v23 }
  0x5e   :  { %3200 = vmatprep.mubr.msk.f32.mxu0 %vm4805_vm0, %v3694_v1 }
  0xc0   :  { %v3519_v29 = vpop.permute.xlu1 %3518 }
  0xc1   :  { %v3521_v33 = vunpack.i.h.bf16 %v3519_v29  ;;  %v3520_v34 = vunpack.i.l.bf16 %v3519_v29 }
  0xc3   :  { %v3257_v36 = vpack.c.bf16 %v3521_v33, %v3520_v34  ;;  %v3275_v33 = vpack.c.bf16 %v995_v21, %v994_v17 }
  0xc4   :  { %v1008_v28 = vpop.permute.xlu0 %1007 }
  0xc5   :  { %v1193_v43 = vpop.permute.xlu1 %1192 }
  0xc8   :  { %v3514_v30 = vpop.permute.xlu0 %3513 }
  0xc9   :  { %v3516_v31 = vunpack.i.h.bf16 %v3514_v30  ;;  %v3515_v32 = vunpack.i.l.bf16 %v3514_v30  ;;  %v992_v30 = vld [vmem:[#allocation11 + $0x40] sm:$0xff] }
  0xcb   :  { %v3254_v35 = vpack.c.bf16 %v3516_v31, %v3515_v32  ;;  %v993_v31 = vld [vmem:[#allocation11 + $0x48] sm:$0xff] }
  0xcc   :  { %v1112_v49 = vpop.permute.xlu0 %1111  ;;  %v3272_v32 = vpack.c.bf16 %v993_v31, %v992_v30  ;;  %v3532_v34 = vpack.i.bf16 %v993_v31, %v992_v30  ;;  %v238_v31 = vadd.s32 384, %v3784_v3 }
  0xcd   :  { %3255 = vmatpush3.bf16.msra.mxu1 %v3254_v35 }
  0xce   :  { %3256 = vmatprep.subr.bf16.mxu1 %v3692_v0  ;;  %3273 = vmatpush3.bf16.msra.mxu0 %v3272_v32  ;;  %v239_v32 = vadd.s32 392, %v3784_v3 }
  0xcf   :  { %3274 = vmatprep.subr.bf16.mxu0 %v3692_v0 }
  0xd1   :  { %3258 = vmatpush3.bf16.msra.mxu1 %v3257_v36 }
  0xd2   :  { %3265 = vmatprep.subr.bf16.mxu1 %v3692_v0  ;;  %3276 = vmatpush3.bf16.msra.mxu0 %v3275_v33  ;;  %v194_v33 = vadd.s32 32, %v3784_v3 }
 0x128   :  { %v1080_v37 = vpop.f32.mrb[0].mxu0 }
 0x129   :  { %v1081_v38 = vadd.f32 %v1080_v37, %v1008_v28  ;;  %v3158_v39 = vpop.f32.mrb[1].mxu0  ;;  %v2786_v28 = vrot.slane %v3787_v10, %v2785_v26 }
 0x12b   :  { %v1085_v40 = vmin.f32 %v1081_v38, 0.0  ;;  %vm1084_vm2 = vcmp.gt.f32.partialorder %v1081_v38, 0.0 }
 0x12d   :  { %v1086_v41 = vmul.f32 1.442695, %v1085_v40 }
 0x12f   :  { %3553 = vpow2.f32 %v1086_v41 }
 0x130   :  { %v1264_v42 = vpop.f32.mrb[2].mxu0 }
 0x131   :  { %v1265_v44 = vadd.f32 %v1264_v42, %v1193_v43  ;;  %v3180_v45 = vpop.f32.mrb[3].mxu0 }
 0x133   :  { %1274 = vrot.lane.b32.xlu1 %v1265_v44, %s3691_s9 }
 0x139   :  { %v3554_v46 = vpop.eup %3553 }
 0x13a   :  { %v2913_v47 = vadd.f32 -1.0, %v3554_v46 }
 0x13c   :  { %v1089_v48 = vsel %vm1084_vm2, %v1081_v38, %v2913_v47 }
 0x13d   :  { %3168 = vmatmul.mubr.msk.f32.vlgmr.msra.gmra.mrb[0].mxu1 %vm74_vm1, %v1089_v48 }
 0x13e   :  { %3189 = vmatprep.mubr.msk.f32.mxu1 %vm4805_vm0, %v3694_v1 }
 0x1a5   :  { %v1275_v57 = vpop.permute.xlu1 %1274 }
 0x210   :  { %v1183_v50 = vpop.f32.mrb[0].mxu1 }
 0x211   :  { %v1184_v51 = vadd.f32 %v1183_v50, %v1112_v49  ;;  %v3169_v52 = vpop.f32.mrb[1].mxu1 }
 0x212   :  { %v1591_v52 = vld [vmem:[#allocation12 + $0x48] sm:$0xff] }
 0x213   :  { %v1268_v53 = vadd.f32 %v1265_v44, %v1184_v51 }
 0x215   :  { %v1269_v54 = vmul.f32 0.5, %v1268_v53 }
 0x217   :  { %3555 = vtanh.f32 %v1269_v54  ;;  %v1582_v54 = vld [vmem:[#allocation12] sm:$0xff] }
 0x221   :  { %v3556_v55 = vpop.eup %3555 }
 0x222   :  { %v1271_v56 = vadd.f32 1.0, %v3556_v55  ;;  %v1590_v55 = vld [vmem:[#allocation12 + $0x40] sm:$0xff] }
 0x224   :  { %v1272_v58 = vmul.f32 0.5, %v1271_v56  ;;  %v1599_v56 = vld [vmem:[#allocation12 + $0x88] sm:$0xff] }
 0x226   :  { %v1277_v59 = vmul.f32 %v1275_v57, %v1272_v58  ;;  %v1284_v6 = vsub.f32 1.0, %v1272_v58 }
 0x228   :  { %1279 = vrot.lane.b32.xlu0 %v1277_v59, %s3691_s9  ;;  %v1607_v59 = vld [vmem:[#allocation12 + $0xc8] sm:$0xff] }
 0x22c   :  { %1290 = vrot.lane.b32.xlu0 %v1001_v23, %s3696_s11  ;;  %v3537_v23 = vpack.i.bf16 %v995_v21, %v994_v17  ;;  %v207_v17 = vadd.s32 136, %v3784_v3  ;;  %v208_v21 = vadd.s32 144, %v3784_v3 }
 0x230   :  { %3528 = vrot.lane.b32.xlu0 %v3527_v60, %s3696_s11  ;;  %v1598_v60 = vld [vmem:[#allocation12 + $0x80] sm:$0xff] }
 0x234   :  { %1321 = vrot.lane.b32.xlu0 %v1303_v27, %s3695_s3  ;;  %v210_v27 = vadd.s32 160, %v3784_v3 }
 0x238   :  { %3533 = vrot.lane.b32.xlu0 %v3532_v34, %s3695_s3 }
 0x23c   :  { %3543 = vrot.lane.b32.xlu0 %v3532_v34, %s3696_s11 }
 0x29a   :  { %v1280_v61 = vpop.permute.xlu0 %1279 }
 0x29b   :  { %v1282_v62 = vadd.f32 %v1280_v61, %v1184_v51  ;;  %v1583_v51 = vld [vmem:[#allocation12 + $0x8] sm:$0xff]  ;;  %v1606_v61 = vld [vmem:[#allocation12 + $0xc0] sm:$0xff] }
 0x29c   :  { %v3283_v53 = vpack.c.bf16 %v1591_v52, %v1583_v51 }
 0x29d   :  { %3557 = vtanh.f32 %v1282_v62  ;;  %v3287_v62 = vpack.c.bf16 %v1607_v59, %v1599_v56 }
 0x29e   :  { %v1291_v5 = vpop.permute.xlu0 %1290  ;;  %3284 = vmatprep.subr.bf16.mxu0 %v3283_v53 }
 0x29f   :  { %v1293_v9 = vmul.f32 %v1291_v5, %v1272_v58  ;;  %v3285_v58 = vpack.c.bf16 %v1590_v55, %v1582_v54  ;;  %v1587_v5 = vld [vmem:[#allocation12 + $0x28] sm:$0xff] }
 0x2a2   :  { %v3529_v12 = vpop.permute.xlu0 %3528 }
 0x2a3   :  { %v3531_v20 = vunpack.i.h.bf16 %v3529_v12  ;;  %v3530_v16 = vunpack.i.l.bf16 %v3529_v12  ;;  %v3868_v12 = vand.u32 127, %v76_v2  ;;  %v1486_v2 = vsub.s32 5, %v3784_v3 }
 0x2a5   :  { %v3269_v24 = vpack.c.bf16 %v3531_v20, %v3530_v16  ;;  %v3886_v20 = vadd.s32 24, %v3784_v3  ;;  %v206_v16 = vadd.s32 128, %v3784_v3 }
 0x2a6   :  { %v1322_v35 = vpop.permute.xlu0 %1321 }
 0x2a7   :  { %v3558_v63 = vpop.eup %3557 }
 0x2a8   :  { %1286 = vrot.lane.b32.xlu1 %v3558_v63, %s3695_s3  ;;  %v1585_v63 = vld [vmem:[#allocation12 + $0x18] sm:$0xff] }
 0x2aa   :  { %v3534_v46 = vpop.permute.xlu0 %3533 }
 0x2ab   :  { %v3536_v49 = vunpack.i.h.bf16 %v3534_v46  ;;  %v3535_v50 = vunpack.i.l.bf16 %v3534_v46 }
 0x2ac   :  { %3523 = vrot.lane.b32.xlu1 %v3522_v4, %s3696_s11  ;;  %v1593_v4 = vld [vmem:[#allocation12 + $0x58] sm:$0xff] }
 0x2ad   :  { %v3278_v57 = vpack.c.bf16 %v3536_v49, %v3535_v50  ;;  %v240_v49 = vadd.s32 400, %v3784_v3  ;;  %v241_v50 = vadd.s32 408, %v3784_v3 }
 0x31a   :  { %v1287_v7 = vpop.permute.xlu1 %1286 }
 0x31b   :  { %v1289_v11 = vmul.f32 %v1287_v7, %v1284_v6  ;;  %v3289_v7 = vpack.c.bf16 %v1606_v61, %v1598_v60  ;;  %v83_v60 = vadd.s32 128, %v3868_v12  ;;  %v1584_v61 = vld [vmem:[#allocation12 + $0x10] sm:$0xff] }
 0x31d   :  { %v1294_v13 = vadd.f32 %v1293_v9, %v1289_v11  ;;  %v3291_v9 = vpack.c.bf16 %v1593_v4, %v1585_v63  ;;  %v3299_v11 = vpack.c.bf16 %v1595_v8, %v1587_v5  ;;  %v1586_v63 = vld [vmem:[#allocation12 + $0x20] sm:$0xff]  ;;  %v1601_v5 = vld [vmem:[#allocation12 + $0x98] sm:$0xff]  ;;  %v1611_v8 = vld [vmem:[#allocation12 + $0xe8] sm:$0xff] }
 0x31e   :  { %v3524_v15 = vpop.permute.xlu1 %3523  ;;  %v1594_v4 = vld [vmem:[#allocation12 + $0x60] sm:$0xff] }
 0x31f   :  { %1296 = vrot.lane.b32.xlu1 %v1294_v13, %s3695_s3  ;;  %v3526_v18 = vunpack.i.h.bf16 %v3524_v15  ;;  %v3525_v19 = vunpack.i.l.bf16 %v3524_v15 }
 0x321   :  { %v3266_v22 = vpack.c.bf16 %v3526_v18, %v3525_v19  ;;  %v3880_v18 = vadd.s32 8, %v3784_v3  ;;  %v3883_v19 = vadd.s32 16, %v3784_v3 }
 0x323   :  { %1407 = vrot.lane.b32.xlu1 %v1405_v14, %s3695_s3  ;;  %3267 = vmatpush3.bf16.msra.mxu1 %v3266_v22  ;;  %v3874_v14 = vmul.u32 32, %v3868_v12  ;;  %v1487_v22 = vrot.slane %v3787_v10, %v1486_v2  ;;  %v3301_v2 = vpack.c.bf16 %v1594_v4, %v1586_v63 }
 0x324   :  { %3268 = vmatprep.subr.bf16.mxu1 %v3692_v0 }
 0x325   :  { %vm319_vm4 = vcmp.ge.s32.totalorder %v3784_v3, %v3874_v14  ;;  %vm320_vm5 = vcmp.ge.s32.totalorder %v3880_v18, %v3874_v14  ;;  %vm335_vm8 = vcmp.ge.s32.totalorder %v206_v16, %v3874_v14  ;;  %vm336_vm9 = vcmp.ge.s32.totalorder %v207_v17, %v3874_v14  ;;  %1505 = vrot.lane.b32.xlu0 %v1487_v22, %s3695_s3  ;;  %v1608_v22 = vld [vmem:[#allocation12 + $0xd0] sm:$0xff] }
 0x326   :  { %vm337_vm14 = vcmp.ge.s32.totalorder %v208_v21, %v3874_v14 }
 0x327   :  { %3538 = vrot.lane.b32.xlu1 %v3537_v23, %s3695_s3  ;;  %3270 = vmatpush3.bf16.msra.mxu1 %v3269_v24  ;;  %v209_v24 = vadd.s32 152, %v3784_v3 }
 0x328   :  { %3277 = vmatprep.subr.bf16.mxu1 %v3692_v0 }
 0x32b   :  { %3548 = vrot.lane.b32.xlu1 %v3537_v23, %s3696_s11 }
 0x32f   :  { %2788 = vrot.lane.b32.xlu1 %v2786_v28, %s3695_s3  ;;  %v211_v28 = vadd.s32 168, %v3784_v3 }
 0x333   :  { %2877 = vrot.lane.b32.xlu1 %v1294_v13, %s3697_s12  ;;  %v3871_v13 = vadd.s32 1, %v3868_v12 }
 0x335   :  { %v3877_v15 = vmul.u32 32, %v3871_v13 }
 0x337   :  { %vm449_vm6 = vcmp.lt.s32.totalorder %v3784_v3, %v3877_v15  ;;  %vm450_vm7 = vcmp.lt.s32.totalorder %v3880_v18, %v3877_v15  ;;  %vm465_vm10 = vcmp.lt.s32.totalorder %v206_v16, %v3877_v15  ;;  %vm466_vm12 = vcmp.lt.s32.totalorder %v207_v17, %v3877_v15  ;;  %v1600_v16 = vld [vmem:[#allocation12 + $0x90] sm:$0xff] }
 0x338   :  { %vm577_vm11 = vmand %vm319_vm4, %vm449_vm6  ;;  %vm467_vm2 = vcmp.lt.s32.totalorder %v208_v21, %v3877_v15  ;;  %vm322_vm4 = vcmp.ge.s32.totalorder %v3886_v20, %v3874_v14 }
 0x339   :  { %vm593_vm13 = vmand %vm335_vm8, %vm465_vm10  ;;  %v705_v23 = vsel %vm577_vm11, 1.0, %v3694_v1  ;;  %vm338_vm8 = vcmp.ge.s32.totalorder %v209_v24, %v3874_v14  ;;  %vm451_vm10 = vcmp.lt.s32.totalorder %v3883_v19, %v3877_v15 }
 0x33a   :  { %vm594_vm15 = vmand %vm336_vm9, %vm466_vm12  ;;  %v721_v10 = vsel %vm593_vm13, 1.0, %v3694_v1  ;;  %833 = vst.msk [vmem:[#allocation4] sm:$0xff] %vm74_vm1, %v705_v23  ;;  %vm468_vm9 = vcmp.lt.s32.totalorder %v209_v24, %v3877_v15  ;;  %vm452_vm12 = vcmp.lt.s32.totalorder %v3886_v20, %v3877_v15  ;;  %vm339_vm13 = vcmp.ge.s32.totalorder %v210_v27, %v3874_v14  ;;  %v1610_v23 = vld [vmem:[#allocation12 + $0xe0] sm:$0xff] }
 0x33b   :  { %v722_v25 = vsel %vm594_vm15, 1.0, %v3694_v1  ;;  %849 = vst.msk [vmem:[#allocation4 + $0x80] sm:$0xff] %vm74_vm1, %v721_v10  ;;  %vm578_vm6 = vmand %vm320_vm5, %vm450_vm7  ;;  %vm469_vm15 = vcmp.lt.s32.totalorder %v210_v27, %v3877_v15  ;;  %v1589_v10 = vld [vmem:[#allocation12 + $0x38] sm:$0xff]  ;;  %v85_v27 = vadd.s32 384, %v3868_v12 }
 0x33c   :  { %850 = vst.msk [vmem:[#allocation4 + $0x88] sm:$0xff] %vm74_vm1, %v722_v25  ;;  %v706_v26 = vsel %vm578_vm6, 1.0, %v3694_v1  ;;  %vm595_vm11 = vmand %vm337_vm14, %vm467_vm2  ;;  %vm340_vm14 = vcmp.ge.s32.totalorder %v211_v28, %v3874_v14  ;;  %vm470_vm6 = vcmp.lt.s32.totalorder %v211_v28, %v3877_v15  ;;  %v1597_v25 = vld [vmem:[#allocation12 + $0x78] sm:$0xff]  ;;  %v87_v28 = vadd.s32 640, %v3868_v12 }
 0x33d   :  { %834 = vst.msk [vmem:[#allocation4 + $0x8] sm:$0xff] %vm74_vm1, %v706_v26  ;;  %vm596_vm5 = vmand %vm338_vm8, %vm468_vm9  ;;  %v723_v30 = vsel %vm595_vm11, 1.0, %v3694_v1  ;;  %vm368_vm8 = vcmp.ge.s32.totalorder %v239_v32, %v3874_v14  ;;  %vm498_vm11 = vcmp.lt.s32.totalorder %v239_v32, %v3877_v15  ;;  %v90_v26 = vand.u32 31, %v3868_v12 }
 0x33e   :  { %v724_v34 = vsel %vm596_vm5, 1.0, %v3694_v1  ;;  %851 = vst.msk [vmem:[#allocation4 + $0x90] sm:$0xff] %vm74_vm1, %v723_v30  ;;  %vm580_vm2 = vmand %vm322_vm4, %vm452_vm12  ;;  %vm323_vm12 = vcmp.ge.s32.totalorder %v194_v33, %v3874_v14  ;;  %vm453_vm5 = vcmp.lt.s32.totalorder %v194_v33, %v3877_v15  ;;  %v3297_v30 = vpack.c.bf16 %v1608_v22, %v1600_v16 }
 0x33f   :  { %852 = vst.msk [vmem:[#allocation4 + $0x98] sm:$0xff] %vm74_vm1, %v724_v34  ;;  %vm597_vm9 = vmand %vm339_vm13, %vm469_vm15  ;;  %v84_v32 = vadd.s32 256, %v3868_v12  ;;  %v3307_v33 = vpack.c.bf16 %v1597_v25, %v1589_v10  ;;  %v1588_v34 = vld [vmem:[#allocation12 + $0x30] sm:$0xff] }
 0x340   :  { %vm598_vm4 = vmand %vm340_vm14, %vm470_vm6 }
 0x341   :  { %vm626_vm14 = vmand %vm368_vm8, %vm498_vm11  ;;  %v2222_v16 = vld [vmem:[#allocation4] sm:$0xff] }
 0x345   :  { %v2240_v22 = vld [vmem:[#allocation4 + $0x90] sm:$0xff] }
 0x346   :  { %v2241_v25 = vld [vmem:[#allocation4 + $0x98] sm:$0xff] }
 0x391   :  { %v3851_v29 = vpop.permute.xlu1 %1296 }
 0x392   :  { %1299 = vst.msk [vmem:[#allocation2] sm:$0xff] %vm74_vm1, %v3851_v29  ;;  %3190 = vmatmul.mubr.msk.f32.vlgmr.msra.gmra.mrb[2].mxu1 %vm74_vm1, %v3851_v29 }
 0x393   :  { %3211 = vmatprep.mubr.msk.f32.mxu1 %vm4805_vm0, %v3694_v1  ;;  %3279 = vmatpush3.bf16.msra.mxu1 %v3278_v57 }
 0x394   :  { %3280 = vmatprep.subr.bf16.mxu1 %v3692_v0 }
 0x395   :  { %v3864_v44 = vpop.permute.xlu1 %1407 }
 0x399   :  { %v3539_v45 = vpop.permute.xlu1 %3538 }
 0x39a   :  { %v3541_v47 = vunpack.i.h.bf16 %v3539_v45  ;;  %v3540_v48 = vunpack.i.l.bf16 %v3539_v45  ;;  %v754_v45 = vsel %vm626_vm14, 1.0, %v3694_v1  ;;  %vm369_vm14 = vcmp.ge.s32.totalorder %v240_v49, %v3874_v14 }
 0x39b   :  { %882 = vst.msk [vmem:[#allocation4 + $0x188] sm:$0xff] %vm74_vm1, %v754_v45 }
 0x39c   :  { %v3281_v6 = vpack.c.bf16 %v3541_v47, %v3540_v48  ;;  %v213_v47 = vadd.s32 184, %v3784_v3 }
 0x39d   :  { %v3549_v63 = vpop.permute.xlu1 %3548 }
 0x39e   :  { %3282 = vmatpush3.bf16.msra.mxu1 %v3281_v6  ;;  %v1609_v6 = vld [vmem:[#allocation12 + $0xd8] sm:$0xff]  ;;  %v3551_v4 = vunpack.i.h.bf16 %v3549_v63 }
 0x39f   :  { %3292 = vmatprep.subr.bf16.mxu1 %v3291_v9  ;;  %v91_v9 = vand.u32 31, %v83_v60  ;;  %v3295_v17 = vpack.c.bf16 %v1609_v6, %v1601_v5  ;;  %v3550_v5 = vunpack.i.l.bf16 %v3549_v63  ;;  %v227_v63 = vadd.s32 296, %v3784_v3 }
 0x465   :  { %v1392_v36 = vpop.f32.mrb[2].mxu1 }
 0x466   :  { %v1393_v37 = vadd.f32 %v1392_v36, %v1322_v35  ;;  %v3191_v38 = vpop.f32.mrb[3].mxu1  ;;  %v708_v36 = vsel %vm580_vm2, 1.0, %v3694_v1 }
 0x467   :  { %836 = vst.msk [vmem:[#allocation4 + $0x18] sm:$0xff] %vm74_vm1, %v708_v36  ;;  %v725_v38 = vsel %vm597_vm9, 1.0, %v3694_v1  ;;  %v86_v36 = vadd.s32 512, %v3868_v12 }
 0x468   :  { %v1397_v39 = vmin.f32 %v1393_v37, 0.0  ;;  %vm1396_vm3 = vcmp.gt.f32.partialorder %v1393_v37, 0.0  ;;  %853 = vst.msk [vmem:[#allocation4 + $0xa0] sm:$0xff] %vm74_vm1, %v725_v38  ;;  %v1613_v38 = vld [vmem:[#allocation12 + $0xf8] sm:$0xff] }
 0x46a   :  { %v1398_v40 = vmul.f32 1.442695, %v1397_v39  ;;  %v222_v39 = vadd.s32 256, %v3784_v3 }
 0x46c   :  { %3559 = vpow2.f32 %v1398_v40  ;;  %v726_v40 = vsel %vm598_vm4, 1.0, %v3694_v1  ;;  %vm351_vm2 = vcmp.ge.s32.totalorder %v222_v39, %v3874_v14  ;;  %vm481_vm6 = vcmp.lt.s32.totalorder %v222_v39, %v3877_v15 }
 0x46d   :  { %854 = vst.msk [vmem:[#allocation4 + $0xa8] sm:$0xff] %vm74_vm1, %v726_v40  ;;  %vm609_vm4 = vmand %vm351_vm2, %vm481_vm6  ;;  %vm370_vm2 = vcmp.ge.s32.totalorder %v241_v50, %v3874_v14  ;;  %vm499_vm6 = vcmp.lt.s32.totalorder %v240_v49, %v3877_v15  ;;  %v93_v39 = vand.u32 31, %v85_v27  ;;  %v95_v40 = vand.u32 31, %v87_v28 }
 0x46e   :  { %v737_v51 = vsel %vm609_vm4, 1.0, %v3694_v1  ;;  %vm107_vm4 = vcmp.eq.s32.totalorder %v91_v9, %v3880_v18  ;;  %v94_v49 = vand.u32 31, %v86_v36 }
 0x46f   :  { %865 = vst.msk [vmem:[#allocation4 + $0x100] sm:$0xff] %vm74_vm1, %v737_v51 }
 0x474   :  { %v2243_v36 = vld [vmem:[#allocation4 + $0xa8] sm:$0xff] }
 0x476   :  { %v3560_v41 = vpop.eup %3559 }
 0x477   :  { %v2917_v42 = vadd.f32 -1.0, %v3560_v41  ;;  %v223_v41 = vadd.s32 264, %v3784_v3 }
 0x479   :  { %v1401_v43 = vsel %vm1396_vm3, %v1393_v37, %v2917_v42  ;;  %vm321_vm3 = vcmp.ge.s32.totalorder %v3883_v19, %v3874_v14  ;;  %v195_v37 = vadd.s32 40, %v3784_v3  ;;  %vm352_vm9 = vcmp.ge.s32.totalorder %v223_v41, %v3874_v14 }
 0x47a   :  { %3201 = vmatmul.mubr.msk.f32.vlgmr.msra.gmra.mrb[4].mxu0 %vm74_vm1, %v1401_v43  ;;  %vm579_vm7 = vmand %vm321_vm3, %vm451_vm10  ;;  %vm367_vm3 = vcmp.ge.s32.totalorder %v238_v31, %v3874_v14  ;;  %vm497_vm10 = vcmp.lt.s32.totalorder %v238_v31, %v3877_v15  ;;  %v212_v43 = vadd.s32 176, %v3784_v3  ;;  %vm482_vm8 = vcmp.lt.s32.totalorder %v223_v41, %v3877_v15 }
 0x47b   :  { %1678 = vmatprep.mubr.f32.mxu0 %v3694_v1  ;;  %3286 = vmatpush1.bf16.msra.mxu0 %v3285_v58  ;;  %v707_v35 = vsel %vm579_vm7, 1.0, %v3694_v1  ;;  %vm625_vm7 = vmand %vm367_vm3, %vm497_vm10  ;;  %vm324_vm13 = vcmp.ge.s32.totalorder %v195_v37, %v3874_v14  ;;  %vm454_vm15 = vcmp.lt.s32.totalorder %v195_v37, %v3877_v15  ;;  %v1605_v37 = vld [vmem:[#allocation12 + $0xb8] sm:$0xff] }
 0x47c   :  { %3288 = vmatprep.subr.bf16.mxu0 %v3287_v62  ;;  %835 = vst.msk [vmem:[#allocation4 + $0x10] sm:$0xff] %vm74_vm1, %v707_v35  ;;  %v753_v42 = vsel %vm625_vm7, 1.0, %v3694_v1  ;;  %vm581_vm3 = vmand %vm323_vm12, %vm453_vm5  ;;  %vm341_vm11 = vcmp.ge.s32.totalorder %v212_v43, %v3874_v14  ;;  %vm471_vm12 = vcmp.lt.s32.totalorder %v212_v43, %v3877_v15  ;;  %vm342_vm7 = vcmp.ge.s32.totalorder %v213_v47, %v3874_v14  ;;  %v1592_v62 = vld [vmem:[#allocation12 + $0x50] sm:$0xff] }
 0x47d   :  { %881 = vst.msk [vmem:[#allocation4 + $0x180] sm:$0xff] %vm74_vm1, %v753_v42  ;;  %vm582_vm10 = vmand %vm324_vm13, %vm454_vm15  ;;  %v709_v46 = vsel %vm581_vm3, 1.0, %v3694_v1  ;;  %vm472_vm13 = vcmp.lt.s32.totalorder %v213_v47, %v3877_v15  ;;  %v1596_v35 = vld [vmem:[#allocation12 + $0x70] sm:$0xff]  ;;  %v92_v42 = vand.u32 31, %v84_v32  ;;  %v3698_v43 = vmov 1.0|1.0  }
 0x47e   :  { %v710_v48 = vsel %vm582_vm10, 1.0, %v3694_v1  ;;  %837 = vst.msk [vmem:[#allocation4 + $0x20] sm:$0xff] %vm74_vm1, %v709_v46  ;;  %vm610_vm5 = vmand %vm352_vm9, %vm482_vm8  ;;  %vm500_vm9 = vcmp.lt.s32.totalorder %v241_v50, %v3877_v15  ;;  %v3309_v41 = vpack.c.bf16 %v1596_v35, %v1588_v34  ;;  %v3311_v46 = vpack.c.bf16 %v1613_v38, %v1605_v37  ;;  %v1604_v47 = vld [vmem:[#allocation12 + $0xb0] sm:$0xff] }
 0x47f   :  { %3290 = vmatpush1.bf16.msra.mxu0 %v3289_v7  ;;  %838 = vst.msk [vmem:[#allocation4 + $0x28] sm:$0xff] %vm74_vm1, %v710_v48  ;;  %v738_v52 = vsel %vm610_vm5, 1.0, %v3694_v1  ;;  %vm599_vm15 = vmand %vm341_vm11, %vm471_vm12  ;;  %v1603_v7 = vld [vmem:[#allocation12 + $0xa8] sm:$0xff]  ;;  %vm99_vm11 = vcmp.eq.s32.totalorder %v91_v9, %v3784_v3  ;;  %vm98_vm5 = vcmp.eq.s32.totalorder %v90_v26, %v3784_v3  ;;  %v1612_v48 = vld [vmem:[#allocation12 + $0xf0] sm:$0xff]  ;;  %v89_v50 = vadd.s32 896, %v3868_v12 }
 0x480   :  { %3300 = vmatprep.subr.bf16.mxu0 %v3299_v11  ;;  %866 = vst.msk [vmem:[#allocation4 + $0x108] sm:$0xff] %vm74_vm1, %v738_v52  ;;  %vm600_vm3 = vmand %vm342_vm7, %vm472_vm13  ;;  %v727_v53 = vsel %vm599_vm15, 1.0, %v3694_v1  ;;  %v3293_v11 = vpack.c.bf16 %v1592_v62, %v1584_v61  ;;  %v3303_v21 = vpack.c.bf16 %v1611_v8, %v1603_v7  ;;  %vm106_vm7 = vcmp.eq.s32.totalorder %v90_v26, %v3880_v18  ;;  %v2238_v7 = vld [vmem:[#allocation4 + $0x80] sm:$0xff]  ;;  %v2239_v8 = vld [vmem:[#allocation4 + $0x88] sm:$0xff] }
 0x481   :  { %v728_v54 = vsel %vm600_vm3, 1.0, %v3694_v1  ;;  %855 = vst.msk [vmem:[#allocation4 + $0xb0] sm:$0xff] %vm74_vm1, %v727_v53  ;;  %vm627_vm8 = vmand %vm369_vm14, %vm499_vm6  ;;  %vm115_vm13 = vcmp.eq.s32.totalorder %v91_v9, %v3883_v19  ;;  %vm123_vm15 = vcmp.eq.s32.totalorder %v91_v9, %v3886_v20  ;;  %vm122_vm6 = vcmp.eq.s32.totalorder %v90_v26, %v3886_v20  ;;  %v2242_v35 = vld [vmem:[#allocation4 + $0xa0] sm:$0xff] }
 0x482   :  { %856 = vst.msk [vmem:[#allocation4 + $0xb8] sm:$0xff] %vm74_vm1, %v728_v54  ;;  %vm628_vm10 = vmand %vm370_vm2, %vm500_vm9  ;;  %v755_v55 = vsel %vm627_vm8, 1.0, %v3694_v1  ;;  %vm114_vm2 = vcmp.eq.s32.totalorder %v90_v26, %v3883_v19  ;;  %vm101_vm9 = vcmp.eq.s32.totalorder %v93_v39, %v3784_v3  ;;  %vm109_vm8 = vcmp.eq.s32.totalorder %v93_v39, %v3880_v18 }
 0x483   :  { %v756_v56 = vsel %vm628_vm10, 1.0, %v3694_v1  ;;  %883 = vst.msk [vmem:[#allocation4 + $0x190] sm:$0xff] %vm74_vm1, %v755_v55  ;;  %vm3315_vm12 = vmpackc.low %vm107_vm4, %vm99_vm11  ;;  %vm103_vm10 = vcmp.eq.s32.totalorder %v95_v40, %v3784_v3  ;;  %vm111_vm11 = vcmp.eq.s32.totalorder %v95_v40, %v3880_v18  ;;  %v3313_v51 = vpack.c.bf16 %v1612_v48, %v1604_v47  ;;  %v2224_v32 = vld [vmem:[#allocation4 + $0x10] sm:$0xff] }
 0x484   :  { %884 = vst.msk [vmem:[#allocation4 + $0x198] sm:$0xff] %vm74_vm1, %v756_v56  ;;  %vm4059_vm14 = vmpackc.low %vm106_vm7, %vm98_vm5  ;;  %vm108_vm5 = vcmp.eq.s32.totalorder %v92_v42, %v3880_v18  ;;  %v88_v54 = vadd.s32 768, %v3868_v12  ;;  %v97_v56 = vand.u32 31, %v89_v50  ;;  %v2270_v9 = vld [vmem:[#allocation4 + $0x180] sm:$0xff]  ;;  %v3361_v38 = vpack.c.bf16 %v2243_v36, %v2242_v35 }
 0x485   :  { %vm3319_vm3 = vmpackc.low %vm123_vm15, %vm115_vm13  ;;  %vm102_vm13 = vcmp.eq.s32.totalorder %v94_v49, %v3784_v3  ;;  %vm110_vm15 = vcmp.eq.s32.totalorder %v94_v49, %v3880_v18  ;;  %v224_v47 = vadd.s32 272, %v3784_v3  ;;  %v225_v48 = vadd.s32 280, %v3784_v3 }
 0x486   :  { %vm4081_vm4 = vmpackc.low %vm122_vm6, %vm114_vm2  ;;  %vm117_vm2 = vcmp.eq.s32.totalorder %v93_v39, %v3883_v19  ;;  %vm125_vm6 = vcmp.eq.s32.totalorder %v93_v39, %v3886_v20  ;;  %v96_v60 = vand.u32 31, %v88_v54  ;;  %v2226_v39 = vld [vmem:[#allocation4 + $0x20] sm:$0xff]  ;;  %v214_v50 = vadd.s32 192, %v3784_v3 }
 0x487   :  { %vm4090_vm7 = vmpackc.low %vm109_vm8, %vm101_vm9  ;;  %vm119_vm9 = vcmp.eq.s32.totalorder %v95_v40, %v3883_v19  ;;  %vm127_vm8 = vcmp.eq.s32.totalorder %v95_v40, %v3886_v20  ;;  %v2255_v10 = vld [vmem:[#allocation4 + $0x108] sm:$0xff]  ;;  %v242_v52 = vadd.s32 416, %v3784_v3  ;;  %v243_v54 = vadd.s32 424, %v3784_v3 }
 0x488   :  { %vm4114_vm0 = vmpackc.low %vm110_vm15, %vm102_vm13  ;;  %vm126_vm13 = vcmp.eq.s32.totalorder %v94_v49, %v3886_v20  ;;  %vm113_vm15 = vcmp.eq.s32.totalorder %v97_v56, %v3880_v18  ;;  %v2227_v40 = vld [vmem:[#allocation4 + $0x28] sm:$0xff]  ;;  %v198_v55 = vadd.s32 64, %v3784_v3 }
 0x48a   :  { %v2272_v26 = vld [vmem:[#allocation4 + $0x190] sm:$0xff] }
 0x48b   :  { %v2273_v27 = vld [vmem:[#allocation4 + $0x198] sm:$0xff] }
 0x48c   :  { %v3389_v34 = vpack.c.bf16 %v2273_v27, %v2272_v26  ;;  %v200_v27 = vadd.s32 80, %v3784_v3 }
 0x54d   :  { %v1479_v57 = vpop.f32.mrb[4].mxu0 }
 0x54e   :  { %v1480_v58 = vadd.f32 %v1479_v57, %v3864_v44  ;;  %v3202_v59 = vpop.f32.mrb[5].mxu0  ;;  %v1602_v44 = vld [vmem:[#allocation12 + $0xa0] sm:$0xff] }
 0x54f   :  { %v3305_v31 = vpack.c.bf16 %v1610_v23, %v1602_v44  ;;  %v2254_v23 = vld [vmem:[#allocation4 + $0x100] sm:$0xff] }
 0x550   :  { %3561 = vtanh.f32 %v1480_v58  ;;  %v3544_v58 = vpop.permute.xlu0 %3543 }
 0x551   :  { %v3546_v61 = vunpack.i.h.bf16 %v3544_v58  ;;  %v3545_v62 = vunpack.i.l.bf16 %v3544_v58 }
 0x553   :  { %v3348_v6 = vpack.c.bf16 %v3546_v61, %v3545_v62  ;;  %v226_v62 = vadd.s32 288, %v3784_v3 }
 0x55a   :  { %v4033_v24 = vpop.eup %3561 }
 0x55b   :  { %3212 = vmatmul.mubr.msk.f32.vlgmr.msra.gmra.mrb[4].mxu1 %vm74_vm1, %v4033_v24  ;;  %2920 = vmatmul.mubr.msk.f32.vlgmr.msra.gmra.mrb[6].mxu0 %vm74_vm1, %v4033_v24 }
 0x55c   :  { %3294 = vmatpush1.bf16.msra.mxu1 %v3293_v11  ;;  %3302 = vmatpush1.bf16.msra.mxu0 %v3301_v2  ;;  %v2271_v11 = vld [vmem:[#allocation4 + $0x188] sm:$0xff]  ;;  %v3351_v2 = vpack.c.bf16 %v3551_v4, %v3550_v5  ;;  %v216_v4 = vadd.s32 208, %v3784_v3 }
 0x55d   :  { %3296 = vmatprep.subr.bf16.mxu1 %v3295_v17  ;;  %3304 = vmatprep.subr.bf16.mxu0 %v3303_v21  ;;  %v2223_v17 = vld [vmem:[#allocation4 + $0x8] sm:$0xff]  ;;  %v3353_v21 = vpack.c.bf16 %v2239_v8, %v2238_v7  ;;  %v3385_v44 = vpack.c.bf16 %v2271_v11, %v2270_v9  ;;  %v244_v7 = vadd.s32 432, %v3784_v3  ;;  %v245_v8 = vadd.s32 440, %v3784_v3 }
 0x55e   :  { %1749 = vmatprep.mubr.f32.mxu1 %v3694_v1  ;;  %1820 = vmatprep.mubr.f32.mxu0 %v3694_v1  ;;  %v3355_v28 = vpack.c.bf16 %v2223_v17, %v2222_v16 }
 0x560   :  { %3298 = vmatpush1.bf16.msra.mxu1 %v3297_v30  ;;  %3306 = vmatpush1.bf16.msra.mxu0 %v3305_v31  ;;  %v3387_v30 = vpack.c.bf16 %v2255_v10, %v2254_v23  ;;  %v3357_v31 = vpack.c.bf16 %v2241_v25, %v2240_v22 }
 0x561   :  { %3308 = vmatprep.subr.bf16.mxu1 %v3307_v33  ;;  %3316 = vmatprep.subr.msk.bf16.mxu0 %vm3315_vm12, %v3698_v43  ;;  %vm100_vm12 = vcmp.eq.s32.totalorder %v92_v42, %v3784_v3  ;;  %v2225_v33 = vld [vmem:[#allocation4 + $0x18] sm:$0xff] }
 0x562   :  { %v3359_v37 = vpack.c.bf16 %v2225_v33, %v2224_v32  ;;  %v228_v32 = vadd.s32 304, %v3784_v3  ;;  %v229_v33 = vadd.s32 312, %v3784_v3 }
 0x563   :  { %2921 = vmatmul.mubr.msk.f32.vlgmr.msra.gmra.mrb[6].mxu1 %vm74_vm1, %v4033_v24  ;;  %2922 = vmatmul.mubr.msk.f32.vlgmr.msra.gmra.mrb[8].mxu0 %vm74_vm1, %v4033_v24 }
 0x564   :  { %3310 = vmatpush1.bf16.msra.mxu1 %v3309_v41  ;;  %3318 = vmatpush1.bf16.msk.msra.mxu0 %vm4059_vm14, %v3698_v43  ;;  %vm3331_vm14 = vmpackc.low %vm111_vm11, %vm103_vm10  ;;  %vm116_vm11 = vcmp.eq.s32.totalorder %v92_v42, %v3883_v19  ;;  %v2244_v41 = vld [vmem:[#allocation4 + $0xb0] sm:$0xff] }
 0x565   :  { %3312 = vmatprep.subr.bf16.mxu1 %v3311_v46  ;;  %3320 = vmatprep.subr.msk.bf16.mxu0 %vm3319_vm3, %v3698_v43  ;;  %vm4105_vm3 = vmpackc.low %vm108_vm5, %vm100_vm12  ;;  %vm124_vm12 = vcmp.eq.s32.totalorder %v92_v42, %v3886_v20  ;;  %vm118_vm5 = vcmp.eq.s32.totalorder %v94_v49, %v3883_v19  ;;  %v2245_v42 = vld [vmem:[#allocation4 + $0xb8] sm:$0xff]  ;;  %v196_v46 = vadd.s32 48, %v3784_v3 }
 0x566   :  { %1891 = vmatprep.mubr.f32.mxu1 %v3694_v1  ;;  %1994 = vmatprep.mubr.f32.mxu0 %v3694_v1  ;;  %vm4122_vm10 = vmpackc.low %vm125_vm6, %vm117_vm2  ;;  %vm104_vm6 = vcmp.eq.s32.totalorder %v96_v60, %v3784_v3  ;;  %v3365_v45 = vpack.c.bf16 %v2245_v42, %v2244_v41 }
 0x567   :  { %vm3337_vm2 = vmpackc.low %vm126_vm13, %vm118_vm5  ;;  %vm4819_vm13 = vmmov 0  }
 0x568   :  { %3314 = vmatpush1.bf16.msra.mxu1 %v3313_v51  ;;  %3322 = vmatpush1.bf16.msk.msra.mxu0 %vm4081_vm4, %v3698_v43  ;;  %vm3335_vm4 = vmpackc.low %vm127_vm8, %vm119_vm9  ;;  %vm112_vm9 = vcmp.eq.s32.totalorder %v96_v60, %v3880_v18  ;;  %vm129_vm8 = vcmp.eq.s32.totalorder %v97_v56, %v3886_v20  ;;  %v215_v51 = vadd.s32 200, %v3784_v3 }
 0x569   :  { %3324 = vmatprep.subr.msk.bf16.mxu1 %vm4090_vm7, %v3698_v43  ;;  %3332 = vmatprep.subr.msk.bf16.mxu0 %vm3331_vm14, %v3698_v43  ;;  %vm105_vm7 = vcmp.eq.s32.totalorder %v97_v56, %v3784_v3  ;;  %vm3329_vm14 = vmpackc.low %vm124_vm12, %vm116_vm11  ;;  %vm120_vm12 = vcmp.eq.s32.totalorder %v96_v60, %v3883_v19 }
 0x56b   :  { %2923 = vmatmul.mubr.msk.f32.vlgmr.msra.gmra.mrb[8].mxu1 %vm74_vm1, %v4033_v24  ;;  %2924 = vmatmul.mubr.msk.f32.vlgmr.msra.gmra.mrb[10].mxu0 %vm74_vm1, %v3851_v29 }
 0x56c   :  { %3326 = vmatpush1.bf16.msk.msra.mxu1 %vm4105_vm3, %v3698_v43  ;;  %3334 = vmatpush1.bf16.msk.msra.mxu0 %vm4114_vm0, %v3698_v43  ;;  %vm3339_vm3 = vmpackc.low %vm113_vm15, %vm105_vm7  ;;  %vm121_vm0 = vcmp.eq.s32.totalorder %v97_v56, %v3883_v19  ;;  %vm325_vm7 = vcmp.ge.s32.totalorder %v196_v46, %v3874_v14  ;;  %v199_v56 = vadd.s32 72, %v3784_v3 }
 0x56d   :  { %3328 = vmatprep.subr.msk.bf16.mxu1 %vm4122_vm10, %v3698_v43  ;;  %3336 = vmatprep.subr.msk.bf16.mxu0 %vm3335_vm4, %v3698_v43  ;;  %vm3341_vm10 = vmpackc.low %vm112_vm9, %vm104_vm6  ;;  %vm128_vm4 = vcmp.eq.s32.totalorder %v96_v60, %v3886_v20  ;;  %vm353_vm9 = vcmp.ge.s32.totalorder %v224_v47, %v3874_v14 }
 0x56e   :  { %2065 = vmatprep.mubr.f32.mxu1 %v3694_v1  ;;  %2136 = vmatprep.mubr.f32.mxu0 %v3694_v1  ;;  %vm3343_vm11 = vmpackc.low %vm129_vm8, %vm121_vm0  ;;  %vm483_vm0 = vcmp.lt.s32.totalorder %v224_v47, %v3877_v15  ;;  %vm484_vm8 = vcmp.lt.s32.totalorder %v225_v48, %v3877_v15 }
 0x56f   :  { %vm3345_vm5 = vmpackc.low %vm128_vm4, %vm120_vm12  ;;  %vm343_vm4 = vcmp.ge.s32.totalorder %v214_v50, %v3874_v14 }
 0x570   :  { %3330 = vmatpush1.bf16.msk.msra.mxu1 %vm3329_vm14, %v3698_v43  ;;  %3338 = vmatpush1.bf16.msk.msra.mxu0 %vm3337_vm2, %v3698_v43  ;;  %vm455_vm14 = vcmp.lt.s32.totalorder %v196_v46, %v3877_v15  ;;  %v219_v46 = vadd.s32 232, %v3784_v3 }
 0x571   :  { %3340 = vmatprep.subr.msk.bf16.mxu1 %vm3339_vm3, %v3698_v43  ;;  %3347 = vmatprep.subr.bf16.mxu0 %v3692_v0  ;;  %vm583_vm6 = vmand %vm325_vm7, %vm455_vm14  ;;  %vm354_vm3 = vcmp.ge.s32.totalorder %v225_v48, %v3874_v14  ;;  %vm473_vm7 = vcmp.lt.s32.totalorder %v214_v50, %v3877_v15  ;;  %v247_v50 = vadd.s32 456, %v3784_v3 }
 0x572   :  { %v711_v49 = vsel %vm583_vm6, 1.0, %v3694_v1  ;;  %vm612_vm12 = vmand %vm354_vm3, %vm484_vm8  ;;  %vm372_vm6 = vcmp.ge.s32.totalorder %v243_v54, %v3874_v14  ;;  %vm501_vm3 = vcmp.lt.s32.totalorder %v242_v52, %v3877_v15  ;;  %vm327_vm8 = vcmp.ge.s32.totalorder %v198_v55, %v3874_v14 }
 0x573   :  { %2925 = vmatmul.mubr.msk.f32.vlgmr.msra.gmra.mrb[10].mxu1 %vm74_vm1, %v3851_v29  ;;  %2926 = vmatmul.mubr.msk.f32.vlgmr.msra.gmra.mrb[12].mxu0 %vm74_vm1, %v3851_v29  ;;  %839 = vst.msk [vmem:[#allocation4 + $0x30] sm:$0xff] %vm74_vm1, %v711_v49  ;;  %v740_v58 = vsel %vm612_vm12, 1.0, %v3694_v1  ;;  %vm601_vm14 = vmand %vm343_vm4, %vm473_vm7  ;;  %vm457_vm12 = vcmp.lt.s32.totalorder %v198_v55, %v3877_v15  ;;  %vm458_vm4 = vcmp.lt.s32.totalorder %v199_v56, %v3877_v15  ;;  %v246_v49 = vadd.s32 448, %v3784_v3 }
 0x574   :  { %3342 = vmatpush1.bf16.msk.msra.mxu1 %vm3341_vm10, %v3698_v43  ;;  %3349 = vmatpush3.bf16.msra.mxu0 %v3348_v6  ;;  %868 = vst.msk [vmem:[#allocation4 + $0x118] sm:$0xff] %vm74_vm1, %v740_v58  ;;  %v729_v59 = vsel %vm601_vm14, 1.0, %v3694_v1  ;;  %vm585_vm7 = vmand %vm327_vm8, %vm457_vm12  ;;  %v217_v6 = vadd.s32 216, %v3784_v3  ;;  %vm355_vm14 = vcmp.ge.s32.totalorder %v226_v62, %v3874_v14 }
 0x575   :  { %3344 = vmatprep.subr.msk.bf16.mxu1 %vm3343_vm11, %v3698_v43  ;;  %3350 = vmatprep.subr.bf16.mxu0 %v3692_v0  ;;  %vm611_vm11 = vmand %vm353_vm9, %vm483_vm0  ;;  %vm502_vm0 = vcmp.lt.s32.totalorder %v243_v54, %v3877_v15  ;;  %857 = vst.msk [vmem:[#allocation4 + $0xc0] sm:$0xff] %vm74_vm1, %v729_v59  ;;  %v713_v11 = vsel %vm585_vm7, 1.0, %v3694_v1  ;;  %vm374_vm7 = vcmp.ge.s32.totalorder %v245_v8, %v3874_v14 }
 0x576   :  { %2207 = vmatprep.mubr.f32.mxu1 %v3694_v1  ;;  %3222 = vmatprep.mubr.msk.f32.mxu0 %vm4819_vm13, %v3694_v1  ;;  %v739_v57 = vsel %vm611_vm11, 1.0, %v3694_v1  ;;  %vm328_vm11 = vcmp.ge.s32.totalorder %v199_v56, %v3874_v14  ;;  %841 = vst.msk [vmem:[#allocation4 + $0x40] sm:$0xff] %vm74_vm1, %v713_v11  ;;  %vm346_vm8 = vcmp.ge.s32.totalorder %v217_v6, %v3874_v14 }
 0x577   :  { %867 = vst.msk [vmem:[#allocation4 + $0x110] sm:$0xff] %vm74_vm1, %v739_v57  ;;  %vm476_vm12 = vcmp.lt.s32.totalorder %v217_v6, %v3877_v15  ;;  %v202_v57 = vadd.s32 96, %v3784_v3 }
 0x578   :  { %3346 = vmatpush1.bf16.msk.msra.mxu1 %vm3345_vm5, %v3698_v43  ;;  %3352 = vmatpush3.bf16.msra.mxu0 %v3351_v2  ;;  %v3363_v43 = vpack.c.bf16 %v2227_v40, %v2226_v39  ;;  %vm344_vm5 = vcmp.ge.s32.totalorder %v215_v51, %v3874_v14 }
 0x579   :  { %3354 = vmatprep.subr.bf16.mxu1 %v3353_v21  ;;  %3386 = vmatprep.subr.bf16.mxu0 %v3385_v44 }
 0x57a   :  { %v2228_v9 = vld [vmem:[#allocation4 + $0x30] sm:$0xff] }
 0x57b   :  { %2927 = vmatmul.mubr.msk.f32.vlgmr.msra.gmra.mrb[12].mxu1 %vm74_vm1, %v3851_v29  ;;  %3223 = vmatmul.mubr.msk.f32.vlgmr.msra.gmra.mrb[14].mxu0 %vm74_vm1, %v4033_v24  ;;  %v197_v24 = vadd.s32 56, %v3784_v3  ;;  %v2257_v44 = vld [vmem:[#allocation4 + $0x118] sm:$0xff] }
 0x57c   :  { %3356 = vmatpush3.bf16.msra.mxu1 %v3355_v28  ;;  %3388 = vmatpush3.bf16.msra.mxu0 %v3387_v30  ;;  %v2246_v25 = vld [vmem:[#allocation4 + $0xc0] sm:$0xff] }
 0x57d   :  { %3358 = vmatprep.subr.bf16.mxu1 %v3357_v31  ;;  %3390 = vmatprep.subr.bf16.mxu0 %v3389_v34  ;;  %vm326_vm15 = vcmp.ge.s32.totalorder %v197_v24, %v3874_v14  ;;  %vm456_vm2 = vcmp.lt.s32.totalorder %v197_v24, %v3877_v15  ;;  %v201_v31 = vadd.s32 88, %v3784_v3  ;;  %v2230_v40 = vld [vmem:[#allocation4 + $0x40] sm:$0xff] }
 0x57e   :  { %vm584_vm10 = vmand %vm326_vm15, %vm456_vm2  ;;  %vm474_vm15 = vcmp.lt.s32.totalorder %v215_v51, %v3877_v15  ;;  %vm371_vm2 = vcmp.ge.s32.totalorder %v242_v52, %v3874_v14  ;;  %v2256_v21 = vld [vmem:[#allocation4 + $0x110] sm:$0xff] }
 0x57f   :  { %v712_v53 = vsel %vm584_vm10, 1.0, %v3694_v1  ;;  %vm602_vm9 = vmand %vm344_vm5, %vm474_vm15  ;;  %v3391_v10 = vpack.c.bf16 %v2257_v44, %v2256_v21  ;;  %v3699_v44 = vmov 32  }
 0x580   :  { %3360 = vmatpush3.bf16.msra.mxu1 %v3359_v37  ;;  %840 = vst.msk [vmem:[#allocation4 + $0x38] sm:$0xff] %vm74_vm1, %v712_v53  ;;  %v730_v60 = vsel %vm602_vm9, 1.0, %v3694_v1  ;;  %vm629_vm10 = vmand %vm371_vm2, %vm501_vm3  ;;  %vm356_vm2 = vcmp.ge.s32.totalorder %v227_v63, %v3874_v14  ;;  %vm486_vm9 = vcmp.lt.s32.totalorder %v227_v63, %v3877_v15  ;;  %3552 = vset.pattern.permute.xlu0 %v3699_v44  ;;  %v253_v44 = vadd.s32 504, %v3784_v3 }
 0x581   :  { %3362 = vmatprep.subr.bf16.mxu1 %v3361_v38  ;;  %858 = vst.msk [vmem:[#allocation4 + $0xc8] sm:$0xff] %vm74_vm1, %v730_v60  ;;  %vm630_vm5 = vmand %vm372_vm6, %vm502_vm0  ;;  %v757_v61 = vsel %vm629_vm10, 1.0, %v3694_v1  ;;  %vm485_vm6 = vcmp.lt.s32.totalorder %v226_v62, %v3877_v15  ;;  %vm345_vm0 = vcmp.ge.s32.totalorder %v216_v4, %v3874_v14  ;;  %3392 = vmatpush3.bf16.msra.mxu0 %v3391_v10  ;;  %v230_v62 = vadd.s32 320, %v3784_v3 }
 0x582   :  { %v758_v5 = vsel %vm630_vm5, 1.0, %v3694_v1  ;;  %885 = vst.msk [vmem:[#allocation4 + $0x1a0] sm:$0xff] %vm74_vm1, %v757_v61  ;;  %vm586_vm15 = vmand %vm328_vm11, %vm458_vm4  ;;  %vm475_vm11 = vcmp.lt.s32.totalorder %v216_v4, %v3877_v15  ;;  %vm373_vm5 = vcmp.ge.s32.totalorder %v244_v7, %v3874_v14  ;;  %v203_v61 = vadd.s32 104, %v3784_v3 }
 0x583   :  { %886 = vst.msk [vmem:[#allocation4 + $0x1a8] sm:$0xff] %vm74_vm1, %v758_v5  ;;  %v714_v16 = vsel %vm586_vm15, 1.0, %v3694_v1  ;;  %vm613_vm3 = vmand %vm355_vm14, %vm485_vm6  ;;  %vm503_vm15 = vcmp.lt.s32.totalorder %v244_v7, %v3877_v15  ;;  %v231_v5 = vadd.s32 328, %v3784_v3  ;;  %v221_v10 = vadd.s32 248, %v3784_v3 }
 0x584   :  { %3364 = vmatpush3.bf16.msra.mxu1 %v3363_v43  ;;  %842 = vst.msk [vmem:[#allocation4 + $0x48] sm:$0xff] %vm74_vm1, %v714_v16  ;;  %vm614_vm10 = vmand %vm356_vm2, %vm486_vm9  ;;  %v741_v22 = vsel %vm613_vm3, 1.0, %v3694_v1  ;;  %vm504_vm2 = vcmp.lt.s32.totalorder %v245_v8, %v3877_v15  ;;  %vm329_vm3 = vcmp.ge.s32.totalorder %v200_v27, %v3874_v14 }
 0x585   :  { %3366 = vmatprep.subr.bf16.mxu1 %v3365_v45  ;;  %v742_v23 = vsel %vm614_vm10, 1.0, %v3694_v1  ;;  %869 = vst.msk [vmem:[#allocation4 + $0x120] sm:$0xff] %vm74_vm1, %v741_v22  ;;  %vm603_vm4 = vmand %vm345_vm0, %vm475_vm11  ;;  %vm459_vm0 = vcmp.lt.s32.totalorder %v200_v27, %v3877_v15  ;;  %vm460_vm10 = vcmp.lt.s32.totalorder %v201_v31, %v3877_v15  ;;  %v218_v45 = vadd.s32 224, %v3784_v3 }
 0x586   :  { %870 = vst.msk [vmem:[#allocation4 + $0x128] sm:$0xff] %vm74_vm1, %v742_v23  ;;  %vm604_vm14 = vmand %vm346_vm8, %vm476_vm12  ;;  %v731_v26 = vsel %vm603_vm4, 1.0, %v3694_v1  ;;  %vm330_vm8 = vcmp.ge.s32.totalorder %v201_v31, %v3874_v14  ;;  %vm357_vm12 = vcmp.ge.s32.totalorder %v228_v32, %v3874_v14  ;;  %v220_v23 = vadd.s32 240, %v3784_v3 }
 0x587   :  { %v2229_v2 = vld [vmem:[#allocation4 + $0x38] sm:$0xff]  ;;  %v732_v30 = vsel %vm604_vm14, 1.0, %v3694_v1  ;;  %859 = vst.msk [vmem:[#allocation4 + $0xd0] sm:$0xff] %vm74_vm1, %v731_v26  ;;  %vm631_vm6 = vmand %vm373_vm5, %vm503_vm15  ;;  %vm358_vm5 = vcmp.ge.s32.totalorder %v229_v33, %v3874_v14  ;;  %vm488_vm15 = vcmp.lt.s32.totalorder %v229_v33, %v3877_v15 }
 0x588   :  { %v3367_v17 = vpack.c.bf16 %v2229_v2, %v2228_v9  ;;  %v2247_v28 = vld [vmem:[#allocation4 + $0xc8] sm:$0xff]  ;;  %860 = vst.msk [vmem:[#allocation4 + $0xd8] sm:$0xff] %vm74_vm1, %v732_v30  ;;  %vm632_vm9 = vmand %vm374_vm7, %vm504_vm2  ;;  %v759_v36 = vsel %vm631_vm6, 1.0, %v3694_v1  ;;  %vm487_vm7 = vcmp.lt.s32.totalorder %v228_v32, %v3877_v15  ;;  %vm347_vm6 = vcmp.ge.s32.totalorder %v218_v45, %v3874_v14 }
 0x589   :  { %v3369_v34 = vpack.c.bf16 %v2247_v28, %v2246_v25  ;;  %v2274_v35 = vld [vmem:[#allocation4 + $0x1a0] sm:$0xff]  ;;  %v760_v38 = vsel %vm632_vm9, 1.0, %v3694_v1  ;;  %887 = vst.msk [vmem:[#allocation4 + $0x1b0] sm:$0xff] %vm74_vm1, %v759_v36  ;;  %vm587_vm11 = vmand %vm329_vm3, %vm459_vm0  ;;  %vm348_vm9 = vcmp.ge.s32.totalorder %v219_v46, %v3874_v14  ;;  %vm477_vm3 = vcmp.lt.s32.totalorder %v218_v45, %v3877_v15 }
 0x58a   :  { %3368 = vmatpush3.bf16.msra.mxu1 %v3367_v17  ;;  %v2275_v37 = vld [vmem:[#allocation4 + $0x1a8] sm:$0xff]  ;;  %888 = vst.msk [vmem:[#allocation4 + $0x1b8] sm:$0xff] %vm74_vm1, %v760_v38  ;;  %vm588_vm4 = vmand %vm330_vm8, %vm460_vm10  ;;  %v715_v41 = vsel %vm587_vm11, 1.0, %v3694_v1  ;;  %vm478_vm0 = vcmp.lt.s32.totalorder %v219_v46, %v3877_v15  ;;  %vm375_vm10 = vcmp.ge.s32.totalorder %v246_v49, %v3874_v14  ;;  %vm376_vm11 = vcmp.ge.s32.totalorder %v247_v50, %v3874_v14 }
 0x58b   :  { %3370 = vmatprep.subr.bf16.mxu1 %v3369_v34  ;;  %v3393_v39 = vpack.c.bf16 %v2275_v37, %v2274_v35  ;;  %v2231_v42 = vld [vmem:[#allocation4 + $0x48] sm:$0xff]  ;;  %v716_v43 = vsel %vm588_vm4, 1.0, %v3694_v1  ;;  %843 = vst.msk [vmem:[#allocation4 + $0x50] sm:$0xff] %vm74_vm1, %v715_v41  ;;  %vm615_vm14 = vmand %vm357_vm12, %vm487_vm7  ;;  %vm505_vm4 = vcmp.lt.s32.totalorder %v246_v49, %v3877_v15  ;;  %v248_v25 = vadd.s32 464, %v3784_v3 }
 0x58c   :  { %v3371_v24 = vpack.c.bf16 %v2231_v42, %v2230_v40  ;;  %v2258_v47 = vld [vmem:[#allocation4 + $0x120] sm:$0xff]  ;;  %844 = vst.msk [vmem:[#allocation4 + $0x58] sm:$0xff] %vm74_vm1, %v716_v43  ;;  %vm616_vm2 = vmand %vm358_vm5, %vm488_vm15  ;;  %v743_v48 = vsel %vm615_vm14, 1.0, %v3694_v1  ;;  %vm506_vm5 = vcmp.lt.s32.totalorder %v247_v50, %v3877_v15  ;;  %vm331_vm14 = vcmp.ge.s32.totalorder %v202_v57, %v3874_v14 }
 0x58d   :  { %3394 = vmatprep.subr.bf16.mxu0 %v3393_v39  ;;  %v2259_v51 = vld [vmem:[#allocation4 + $0x128] sm:$0xff]  ;;  %v744_v52 = vsel %vm616_vm2, 1.0, %v3694_v1  ;;  %871 = vst.msk [vmem:[#allocation4 + $0x130] sm:$0xff] %vm74_vm1, %v743_v48  ;;  %vm605_vm8 = vmand %vm347_vm6, %vm477_vm3  ;;  %vm461_vm2 = vcmp.lt.s32.totalorder %v202_v57, %v3877_v15  ;;  %vm332_vm6 = vcmp.ge.s32.totalorder %v203_v61, %v3874_v14  ;;  %v249_v28 = vadd.s32 472, %v3784_v3 }
 0x58e   :  { %3372 = vmatpush3.bf16.msra.mxu1 %v3371_v24  ;;  %v3395_v53 = vpack.c.bf16 %v2259_v51, %v2258_v47  ;;  %v2248_v54 = vld [vmem:[#allocation4 + $0xd0] sm:$0xff]  ;;  %872 = vst.msk [vmem:[#allocation4 + $0x138] sm:$0xff] %vm74_vm1, %v744_v52  ;;  %vm606_vm12 = vmand %vm348_vm9, %vm478_vm0  ;;  %v733_v56 = vsel %vm605_vm8, 1.0, %v3694_v1  ;;  %vm462_vm9 = vcmp.lt.s32.totalorder %v203_v61, %v3877_v15  ;;  %vm359_vm8 = vcmp.ge.s32.totalorder %v230_v62, %v3874_v14 }
 0x58f   :  { %v2249_v55 = vld [vmem:[#allocation4 + $0xd8] sm:$0xff]  ;;  %v734_v60 = vsel %vm606_vm12, 1.0, %v3694_v1  ;;  %861 = vst.msk [vmem:[#allocation4 + $0xe0] sm:$0xff] %vm74_vm1, %v733_v56  ;;  %vm633_vm7 = vmand %vm375_vm10, %vm505_vm4  ;;  %vm360_vm10 = vcmp.ge.s32.totalorder %v231_v5, %v3874_v14  ;;  %vm490_vm12 = vcmp.lt.s32.totalorder %v231_v5, %v3877_v15  ;;  %v204_v30 = vadd.s32 112, %v3784_v3 }
 0x590   :  { %3396 = vmatpush3.bf16.msra.mxu0 %v3395_v53  ;;  %v3373_v58 = vpack.c.bf16 %v2249_v55, %v2248_v54  ;;  %v2276_v59 = vld [vmem:[#allocation4 + $0x1b0] sm:$0xff]  ;;  %862 = vst.msk [vmem:[#allocation4 + $0xe8] sm:$0xff] %vm74_vm1, %v734_v60  ;;  %vm634_vm15 = vmand %vm376_vm11, %vm506_vm5  ;;  %v761_v4 = vsel %vm633_vm7, 1.0, %v3694_v1  ;;  %vm489_vm11 = vcmp.lt.s32.totalorder %v230_v62, %v3877_v15  ;;  %vm349_vm7 = vcmp.ge.s32.totalorder %v220_v23, %v3874_v14 }
 0x591   :  { %v2277_v63 = vld [vmem:[#allocation4 + $0x1b8] sm:$0xff]  ;;  %v762_v8 = vsel %vm634_vm15, 1.0, %v3694_v1  ;;  %889 = vst.msk [vmem:[#allocation4 + $0x1c0] sm:$0xff] %vm74_vm1, %v761_v4  ;;  %vm589_vm3 = vmand %vm331_vm14, %vm461_vm2  ;;  %vm350_vm15 = vcmp.ge.s32.totalorder %v221_v10, %v3874_v14  ;;  %vm479_vm14 = vcmp.lt.s32.totalorder %v220_v23, %v3877_v15  ;;  %vm480_vm2 = vcmp.lt.s32.totalorder %v221_v10, %v3877_v15 }
 0x592   :  { %3374 = vmatprep.subr.bf16.mxu1 %v3373_v58  ;;  %v3397_v6 = vpack.c.bf16 %v2277_v63, %v2276_v59  ;;  %v2232_v7 = vld [vmem:[#allocation4 + $0x50] sm:$0xff]  ;;  %890 = vst.msk [vmem:[#allocation4 + $0x1c8] sm:$0xff] %vm74_vm1, %v762_v8  ;;  %vm590_vm0 = vmand %vm332_vm6, %vm462_vm9  ;;  %v717_v11 = vsel %vm589_vm3, 1.0, %v3694_v1  ;;  %vm377_vm9 = vcmp.ge.s32.totalorder %v248_v25, %v3874_v14  ;;  %vm378_vm3 = vcmp.ge.s32.totalorder %v249_v28, %v3874_v14 }
 0x593   :  { %v2233_v9 = vld [vmem:[#allocation4 + $0x58] sm:$0xff]  ;;  %v718_v17 = vsel %vm590_vm0, 1.0, %v3694_v1  ;;  %845 = vst.msk [vmem:[#allocation4 + $0x60] sm:$0xff] %vm74_vm1, %v717_v11  ;;  %vm617_vm4 = vmand %vm359_vm8, %vm489_vm11  ;;  %vm507_vm0 = vcmp.lt.s32.totalorder %v248_v25, %v3877_v15  ;;  %vm508_vm8 = vcmp.lt.s32.totalorder %v249_v28, %v3877_v15  ;;  %v205_v36 = vadd.s32 120, %v3784_v3 }
 0x594   :  { %3398 = vmatprep.subr.bf16.mxu0 %v3397_v6  ;;  %v3375_v2 = vpack.c.bf16 %v2233_v9, %v2232_v7  ;;  %v2260_v16 = vld [vmem:[#allocation4 + $0x130] sm:$0xff]  ;;  %846 = vst.msk [vmem:[#allocation4 + $0x68] sm:$0xff] %vm74_vm1, %v718_v17  ;;  %vm618_vm5 = vmand %vm360_vm10, %vm490_vm12  ;;  %v745_v22 = vsel %vm617_vm4, 1.0, %v3694_v1  ;;  %vm333_vm11 = vcmp.ge.s32.totalorder %v204_v30, %v3874_v14  ;;  %vm463_vm4 = vcmp.lt.s32.totalorder %v204_v30, %v3877_v15 }
 0x595   :  { %v2261_v21 = vld [vmem:[#allocation4 + $0x138] sm:$0xff]  ;;  %v746_v27 = vsel %vm618_vm5, 1.0, %v3694_v1  ;;  %873 = vst.msk [vmem:[#allocation4 + $0x140] sm:$0xff] %vm74_vm1, %v745_v22  ;;  %vm607_vm6 = vmand %vm349_vm7, %vm479_vm14  ;;  %v232_v39 = vadd.s32 336, %v3784_v3  ;;  %v233_v40 = vadd.s32 344, %v3784_v3  ;;  %vm334_vm7 = vcmp.ge.s32.totalorder %v205_v36, %v3874_v14 }
 0x596   :  { %3376 = vmatpush3.bf16.msra.mxu1 %v3375_v2  ;;  %v3399_v26 = vpack.c.bf16 %v2261_v21, %v2260_v16  ;;  %v2250_v31 = vld [vmem:[#allocation4 + $0xe0] sm:$0xff]  ;;  %874 = vst.msk [vmem:[#allocation4 + $0x148] sm:$0xff] %vm74_vm1, %v746_v27  ;;  %vm608_vm10 = vmand %vm350_vm15, %vm480_vm2  ;;  %v735_v35 = vsel %vm607_vm6, 1.0, %v3694_v1  ;;  %vm464_vm15 = vcmp.lt.s32.totalorder %v205_v36, %v3877_v15  ;;  %v250_v49 = vadd.s32 480, %v3784_v3 }
 0x597   :  { %v2251_v32 = vld [vmem:[#allocation4 + $0xe8] sm:$0xff]  ;;  %v736_v38 = vsel %vm608_vm10, 1.0, %v3694_v1  ;;  %863 = vst.msk [vmem:[#allocation4 + $0xf0] sm:$0xff] %vm74_vm1, %v735_v35  ;;  %vm635_vm12 = vmand %vm377_vm9, %vm507_vm0  ;;  %vm361_vm2 = vcmp.ge.s32.totalorder %v232_v39, %v3874_v14  ;;  %vm362_vm6 = vcmp.ge.s32.totalorder %v233_v40, %v3874_v14  ;;  %vm491_vm9 = vcmp.lt.s32.totalorder %v232_v39, %v3877_v15 }
 0x598   :  { %3400 = vmatpush3.bf16.msra.mxu0 %v3399_v26  ;;  %v3377_v33 = vpack.c.bf16 %v2251_v32, %v2250_v31  ;;  %v2278_v34 = vld [vmem:[#allocation4 + $0x1c0] sm:$0xff]  ;;  %864 = vst.msk [vmem:[#allocation4 + $0xf8] sm:$0xff] %vm74_vm1, %v736_v38  ;;  %vm636_vm5 = vmand %vm378_vm3, %vm508_vm8  ;;  %v763_v43 = vsel %vm635_vm12, 1.0, %v3694_v1  ;;  %vm492_vm0 = vcmp.lt.s32.totalorder %v233_v40, %v3877_v15  ;;  %v251_v52 = vadd.s32 488, %v3784_v3 }
 0x599   :  { %v2279_v37 = vld [vmem:[#allocation4 + $0x1c8] sm:$0xff]  ;;  %v764_v46 = vsel %vm636_vm5, 1.0, %v3694_v1  ;;  %891 = vst.msk [vmem:[#allocation4 + $0x1d0] sm:$0xff] %vm74_vm1, %v763_v43  ;;  %vm591_vm14 = vmand %vm333_vm11, %vm463_vm4  ;;  %v270_v53 = vadd.s32 640, %v3784_v3  ;;  %v271_v54 = vadd.s32 648, %v3784_v3  ;;  %vm379_vm11 = vcmp.ge.s32.totalorder %v250_v49, %v3874_v14 }
 0x59a   :  { %3378 = vmatprep.subr.bf16.mxu1 %v3377_v33  ;;  %v3401_v41 = vpack.c.bf16 %v2279_v37, %v2278_v34  ;;  %v2234_v42 = vld [vmem:[#allocation4 + $0x60] sm:$0xff]  ;;  %892 = vst.msk [vmem:[#allocation4 + $0x1d8] sm:$0xff] %vm74_vm1, %v764_v46  ;;  %vm592_vm3 = vmand %vm334_vm7, %vm464_vm15  ;;  %v719_v48 = vsel %vm591_vm14, 1.0, %v3694_v1  ;;  %vm509_vm12 = vcmp.lt.s32.totalorder %v250_v49, %v3877_v15  ;;  %vm380_vm4 = vcmp.ge.s32.totalorder %v251_v52, %v3874_v14 }
 0x59b   :  { %v2235_v45 = vld [vmem:[#allocation4 + $0x68] sm:$0xff]  ;;  %v720_v51 = vsel %vm592_vm3, 1.0, %v3694_v1  ;;  %847 = vst.msk [vmem:[#allocation4 + $0x70] sm:$0xff] %vm74_vm1, %v719_v48  ;;  %vm619_vm8 = vmand %vm361_vm2, %vm491_vm9  ;;  %vm510_vm5 = vcmp.lt.s32.totalorder %v251_v52, %v3877_v15  ;;  %vm399_vm15 = vcmp.ge.s32.totalorder %v270_v53, %v3874_v14  ;;  %vm400_vm2 = vcmp.ge.s32.totalorder %v271_v54, %v3874_v14 }
 0x59c   :  { %3402 = vmatprep.subr.bf16.mxu0 %v3401_v41  ;;  %v3379_v24 = vpack.c.bf16 %v2235_v45, %v2234_v42  ;;  %v2262_v47 = vld [vmem:[#allocation4 + $0x140] sm:$0xff]  ;;  %848 = vst.msk [vmem:[#allocation4 + $0x78] sm:$0xff] %vm74_vm1, %v720_v51  ;;  %vm620_vm10 = vmand %vm362_vm6, %vm492_vm0  ;;  %v747_v56 = vsel %vm619_vm8, 1.0, %v3694_v1  ;;  %vm529_vm6 = vcmp.lt.s32.totalorder %v270_v53, %v3877_v15  ;;  %vm530_vm9 = vcmp.lt.s32.totalorder %v271_v54, %v3877_v15 }
 0x59d   :  { %v2263_v50 = vld [vmem:[#allocation4 + $0x148] sm:$0xff]  ;;  %v748_v57 = vsel %vm620_vm10, 1.0, %v3694_v1  ;;  %875 = vst.msk [vmem:[#allocation4 + $0x150] sm:$0xff] %vm74_vm1, %v747_v56  ;;  %vm637_vm7 = vmand %vm379_vm11, %vm509_vm12  ;;  %v234_v62 = vadd.s32 352, %v3784_v3  ;;  %v235_v63 = vadd.s32 360, %v3784_v3  ;;  %v254_v4 = vadd.s32 512, %v3784_v3 }
 0x59e   :  { %3380 = vmatpush3.bf16.msra.mxu1 %v3379_v24  ;;  %v3403_v55 = vpack.c.bf16 %v2263_v50, %v2262_v47  ;;  %v2252_v58 = vld [vmem:[#allocation4 + $0xf0] sm:$0xff]  ;;  %876 = vst.msk [vmem:[#allocation4 + $0x158] sm:$0xff] %vm74_vm1, %v748_v57  ;;  %vm638_vm14 = vmand %vm380_vm4, %vm510_vm5  ;;  %v765_v59 = vsel %vm637_vm7, 1.0, %v3694_v1  ;;  %v255_v8 = vadd.s32 520, %v3784_v3  ;;  %v252_v9 = vadd.s32 496, %v3784_v3 }
 0x59f   :  { %v2253_v60 = vld [vmem:[#allocation4 + $0xf8] sm:$0xff]  ;;  %v766_v61 = vsel %vm638_vm14, 1.0, %v3694_v1  ;;  %893 = vst.msk [vmem:[#allocation4 + $0x1e0] sm:$0xff] %vm74_vm1, %v765_v59  ;;  %vm657_vm3 = vmand %vm399_vm15, %vm529_vm6  ;;  %vm363_vm8 = vcmp.ge.s32.totalorder %v234_v62, %v3874_v14  ;;  %vm364_vm10 = vcmp.ge.s32.totalorder %v235_v63, %v3874_v14  ;;  %vm493_vm11 = vcmp.lt.s32.totalorder %v234_v62, %v3877_v15 }
 0x5a0   :  { %3404 = vmatpush3.bf16.msra.mxu0 %v3403_v55  ;;  %v3381_v5 = vpack.c.bf16 %v2253_v60, %v2252_v58  ;;  %v2280_v6 = vld [vmem:[#allocation4 + $0x1d0] sm:$0xff]  ;;  %894 = vst.msk [vmem:[#allocation4 + $0x1e8] sm:$0xff] %vm74_vm1, %v766_v61  ;;  %vm658_vm0 = vmand %vm400_vm2, %vm530_vm9  ;;  %v785_v7 = vsel %vm657_vm3, 1.0, %v3694_v1  ;;  %vm494_vm12 = vcmp.lt.s32.totalorder %v235_v63, %v3877_v15  ;;  %vm383_vm5 = vcmp.ge.s32.totalorder %v254_v4, %v3874_v14 }
 0x5a1   :  { %v2281_v11 = vld [vmem:[#allocation4 + $0x1d8] sm:$0xff]  ;;  %v786_v2 = vsel %vm658_vm0, 1.0, %v3694_v1  ;;  %913 = vst.msk [vmem:[#allocation4 + $0x280] sm:$0xff] %vm74_vm1, %v785_v7  ;;  %vm621_vm4 = vmand %vm363_vm8, %vm493_vm11  ;;  %vm384_vm7 = vcmp.ge.s32.totalorder %v255_v8, %v3874_v14  ;;  %vm513_vm14 = vcmp.lt.s32.totalorder %v254_v4, %v3877_v15  ;;  %vm514_vm2 = vcmp.lt.s32.totalorder %v255_v8, %v3877_v15 }
 0x5a2   :  { %3382 = vmatprep.subr.bf16.mxu1 %v3381_v5  ;;  %v3405_v16 = vpack.c.bf16 %v2281_v11, %v2280_v6  ;;  %v2236_v17 = vld [vmem:[#allocation4 + $0x70] sm:$0xff]  ;;  %914 = vst.msk [vmem:[#allocation4 + $0x288] sm:$0xff] %vm74_vm1, %v786_v2  ;;  %vm622_vm15 = vmand %vm364_vm10, %vm494_vm12  ;;  %v749_v22 = vsel %vm621_vm4, 1.0, %v3694_v1  ;;  %vm381_vm9 = vcmp.ge.s32.totalorder %v252_v9, %v3874_v14  ;;  %vm511_vm3 = vcmp.lt.s32.totalorder %v252_v9, %v3877_v15 }
 0x5a3   :  { %v2237_v21 = vld [vmem:[#allocation4 + $0x78] sm:$0xff]  ;;  %v750_v25 = vsel %vm622_vm15, 1.0, %v3694_v1  ;;  %877 = vst.msk [vmem:[#allocation4 + $0x160] sm:$0xff] %vm74_vm1, %v749_v22  ;;  %vm641_vm6 = vmand %vm383_vm5, %vm513_vm14  ;;  %vm382_vm8 = vcmp.ge.s32.totalorder %v253_v44, %v3874_v14  ;;  %vm512_vm10 = vcmp.lt.s32.totalorder %v253_v44, %v3877_v15  ;;  %v272_v28 = vadd.s32 656, %v3784_v3 }
 0x5a4   :  { %3406 = vmatprep.subr.bf16.mxu0 %v3405_v16  ;;  %v3383_v23 = vpack.c.bf16 %v2237_v21, %v2236_v17  ;;  %v2264_v10 = vld [vmem:[#allocation4 + $0x150] sm:$0xff]  ;;  %878 = vst.msk [vmem:[#allocation4 + $0x168] sm:$0xff] %vm74_vm1, %v750_v25  ;;  %vm642_vm0 = vmand %vm384_vm7, %vm514_vm2  ;;  %v769_v27 = vsel %vm641_vm6, 1.0, %v3694_v1  ;;  %v273_v33 = vadd.s32 664, %v3784_v3  ;;  %v236_v34 = vadd.s32 368, %v3784_v3 }
 0x5a5   :  { %v2265_v26 = vld [vmem:[#allocation4 + $0x158] sm:$0xff]  ;;  %v770_v32 = vsel %vm642_vm0, 1.0, %v3694_v1  ;;  %897 = vst.msk [vmem:[#allocation4 + $0x200] sm:$0xff] %vm74_vm1, %v769_v27  ;;  %vm639_vm11 = vmand %vm381_vm9, %vm511_vm3  ;;  %vm401_vm4 = vcmp.ge.s32.totalorder %v272_v28, %v3874_v14  ;;  %vm531_vm5 = vcmp.lt.s32.totalorder %v272_v28, %v3877_v15  ;;  %v237_v37 = vadd.s32 376, %v3784_v3 }
 0x5a6   :  { %3384 = vmatpush3.bf16.msra.mxu1 %v3383_v23  ;;  %v3407_v30 = vpack.c.bf16 %v2265_v26, %v2264_v10  ;;  %v2282_v31 = vld [vmem:[#allocation4 + $0x1e0] sm:$0xff]  ;;  %898 = vst.msk [vmem:[#allocation4 + $0x208] sm:$0xff] %vm74_vm1, %v770_v32  ;;  %vm640_vm12 = vmand %vm382_vm8, %vm512_vm10  ;;  %v767_v36 = vsel %vm639_vm11, 1.0, %v3694_v1  ;;  %vm402_vm7 = vcmp.ge.s32.totalorder %v273_v33, %v3874_v14  ;;  %vm532_vm15 = vcmp.lt.s32.totalorder %v273_v33, %v3877_v15 }
 0x5a7   :  { %v2283_v35 = vld [vmem:[#allocation4 + $0x1e8] sm:$0xff]  ;;  %v768_v40 = vsel %vm640_vm12, 1.0, %v3694_v1  ;;  %895 = vst.msk [vmem:[#allocation4 + $0x1f0] sm:$0xff] %vm74_vm1, %v767_v36  ;;  %vm659_vm14 = vmand %vm401_vm4, %vm531_vm5  ;;  %vm365_vm6 = vcmp.ge.s32.totalorder %v236_v34, %v3874_v14  ;;  %vm366_vm9 = vcmp.ge.s32.totalorder %v237_v37, %v3874_v14  ;;  %vm495_vm3 = vcmp.lt.s32.totalorder %v236_v34, %v3877_v15 }
 0x5a8   :  { %3408 = vmatpush3.bf16.msra.mxu0 %v3407_v30  ;;  %v3409_v38 = vpack.c.bf16 %v2283_v35, %v2282_v31  ;;  %v2302_v39 = vld [vmem:[#allocation4 + $0x280] sm:$0xff]  ;;  %896 = vst.msk [vmem:[#allocation4 + $0x1f8] sm:$0xff] %vm74_vm1, %v768_v40  ;;  %vm660_vm2 = vmand %vm402_vm7, %vm532_vm15  ;;  %v787_v42 = vsel %vm659_vm14, 1.0, %v3694_v1  ;;  %vm496_vm0 = vcmp.lt.s32.totalorder %v237_v37, %v3877_v15  ;;  %v256_v46 = vadd.s32 528, %v3784_v3 }
 0x5a9   :  { %v2303_v41 = vld [vmem:[#allocation4 + $0x288] sm:$0xff]  ;;  %v788_v45 = vsel %vm660_vm2, 1.0, %v3694_v1  ;;  %915 = vst.msk [vmem:[#allocation4 + $0x290] sm:$0xff] %vm74_vm1, %v787_v42  ;;  %vm623_vm8 = vmand %vm365_vm6, %vm495_vm3  ;;  %v257_v48 = vadd.s32 536, %v3784_v3  ;;  %v274_v49 = vadd.s32 672, %v3784_v3  ;;  %v275_v50 = vadd.s32 680, %v3784_v3 }
 0x5aa   :  { %3410 = vmatprep.subr.bf16.mxu0 %v3409_v38  ;;  %v3417_v43 = vpack.c.bf16 %v2303_v41, %v2302_v39  ;;  %v2266_v24 = vld [vmem:[#allocation4 + $0x160] sm:$0xff]  ;;  %916 = vst.msk [vmem:[#allocation4 + $0x298] sm:$0xff] %vm74_vm1, %v788_v45  ;;  %vm624_vm10 = vmand %vm366_vm9, %vm496_vm0  ;;  %v751_v47 = vsel %vm623_vm8, 1.0, %v3694_v1  ;;  %vm385_vm11 = vcmp.ge.s32.totalorder %v256_v46, %v3874_v14  ;;  %vm515_vm12 = vcmp.lt.s32.totalorder %v256_v46, %v3877_v15 }
 0x5ab   :  { %v2267_v51 = vld [vmem:[#allocation4 + $0x168] sm:$0xff]  ;;  %v752_v52 = vsel %vm624_vm10, 1.0, %v3694_v1  ;;  %879 = vst.msk [vmem:[#allocation4 + $0x170] sm:$0xff] %vm74_vm1, %v751_v47  ;;  %v302_v53 = vadd.s32 896, %v3784_v3  ;;  %vm386_vm4 = vcmp.ge.s32.totalorder %v257_v48, %v3874_v14  ;;  %vm516_vm5 = vcmp.lt.s32.totalorder %v257_v48, %v3877_v15  ;;  %vm643_vm7 = vmand %vm385_vm11, %vm515_vm12 }
 0x5ac   :  { %3418 = vmatprep.subr.bf16.mxu1 %v3417_v43  ;;  %v3411_v54 = vpack.c.bf16 %v2267_v51, %v2266_v24  ;;  %880 = vst.msk [vmem:[#allocation4 + $0x178] sm:$0xff] %vm74_vm1, %v752_v52  ;;  %vm403_vm15 = vcmp.ge.s32.totalorder %v274_v49, %v3874_v14  ;;  %vm644_vm14 = vmand %vm386_vm4, %vm516_vm5  ;;  %v771_v55 = vsel %vm643_vm7, 1.0, %v3694_v1  ;;  %vm404_vm2 = vcmp.ge.s32.totalorder %v275_v50, %v3874_v14 }
 0x5ad   :  { %vm533_vm6 = vcmp.lt.s32.totalorder %v274_v49, %v3877_v15  ;;  %vm534_vm9 = vcmp.lt.s32.totalorder %v275_v50, %v3877_v15  ;;  %v772_v57 = vsel %vm644_vm14, 1.0, %v3694_v1  ;;  %899 = vst.msk [vmem:[#allocation4 + $0x210] sm:$0xff] %vm74_vm1, %v771_v55  ;;  %v303_v58 = vadd.s32 904, %v3784_v3 }
 0x5ae   :  { %3412 = vmatpush3.bf16.msra.mxu0 %v3411_v54  ;;  %v2284_v56 = vld [vmem:[#allocation4 + $0x1f0] sm:$0xff]  ;;  %vm661_vm3 = vmand %vm403_vm15, %vm533_vm6  ;;  %vm431_vm0 = vcmp.ge.s32.totalorder %v302_v53, %v3874_v14  ;;  %900 = vst.msk [vmem:[#allocation4 + $0x218] sm:$0xff] %vm74_vm1, %v772_v57  ;;  %vm561_vm10 = vcmp.lt.s32.totalorder %v302_v53, %v3877_v15  ;;  %v258_v61 = vadd.s32 544, %v3784_v3  ;;  %v259_v62 = vadd.s32 552, %v3784_v3 }
 0x5af   :  { %v2285_v59 = vld [vmem:[#allocation4 + $0x1f8] sm:$0xff]  ;;  %vm662_vm8 = vmand %vm404_vm2, %vm534_vm9  ;;  %v789_v60 = vsel %vm661_vm3, 1.0, %v3694_v1  ;;  %vm432_vm11 = vcmp.ge.s32.totalorder %v303_v58, %v3874_v14  ;;  %vm562_vm12 = vcmp.lt.s32.totalorder %v303_v58, %v3877_v15  ;;  %v286_v8 = vadd.s32 768, %v3784_v3 }
 0x5b0   :  { %v3413_v63 = vpack.c.bf16 %v2285_v59, %v2284_v56  ;;  %v790_v4 = vsel %vm662_vm8, 1.0, %v3694_v1  ;;  %917 = vst.msk [vmem:[#allocation4 + $0x2a0] sm:$0xff] %vm74_vm1, %v789_v60  ;;  %vm689_vm4 = vmand %vm431_vm0, %vm561_vm10  ;;  %vm387_vm7 = vcmp.ge.s32.totalorder %v258_v61, %v3874_v14  ;;  %vm388_vm15 = vcmp.ge.s32.totalorder %v259_v62, %v3874_v14 }
 0x5b1   :  { %918 = vst.msk [vmem:[#allocation4 + $0x2a8] sm:$0xff] %vm74_vm1, %v790_v4  ;;  %vm690_vm5 = vmand %vm432_vm11, %vm562_vm12  ;;  %v817_v5 = vsel %vm689_vm4, 1.0, %v3694_v1  ;;  %vm517_vm14 = vcmp.lt.s32.totalorder %v258_v61, %v3877_v15  ;;  %vm518_vm2 = vcmp.lt.s32.totalorder %v259_v62, %v3877_v15  ;;  %v287_v2 = vadd.s32 776, %v3784_v3 }
 0x5b2   :  { %3414 = vmatprep.subr.bf16.mxu0 %v3413_v63  ;;  %v2268_v6 = vld [vmem:[#allocation4 + $0x170] sm:$0xff]  ;;  %v818_v7 = vsel %vm690_vm5, 1.0, %v3694_v1  ;;  %945 = vst.msk [vmem:[#allocation4 + $0x380] sm:$0xff] %vm74_vm1, %v817_v5  ;;  %vm645_vm6 = vmand %vm387_vm7, %vm517_vm14  ;;  %v276_v16 = vadd.s32 688, %v3784_v3  ;;  %v277_v17 = vadd.s32 696, %v3784_v3  ;;  %vm415_vm3 = vcmp.ge.s32.totalorder %v286_v8, %v3874_v14 }
 0x5b3   :  { %v2269_v9 = vld [vmem:[#allocation4 + $0x178] sm:$0xff]  ;;  %946 = vst.msk [vmem:[#allocation4 + $0x388] sm:$0xff] %vm74_vm1, %v818_v7  ;;  %vm646_vm9 = vmand %vm388_vm15, %vm518_vm2  ;;  %v773_v11 = vsel %vm645_vm6, 1.0, %v3694_v1  ;;  %vm545_vm0 = vcmp.lt.s32.totalorder %v286_v8, %v3877_v15  ;;  %vm416_vm8 = vcmp.ge.s32.totalorder %v287_v2, %v3874_v14  ;;  %vm546_vm10 = vcmp.lt.s32.totalorder %v287_v2, %v3877_v15 }
 0x5b4   :  { %v3415_v21 = vpack.c.bf16 %v2269_v9, %v2268_v6  ;;  %v774_v22 = vsel %vm646_vm9, 1.0, %v3694_v1  ;;  %901 = vst.msk [vmem:[#allocation4 + $0x220] sm:$0xff] %vm74_vm1, %v773_v11  ;;  %vm673_vm11 = vmand %vm415_vm3, %vm545_vm0  ;;  %vm405_vm12 = vcmp.ge.s32.totalorder %v276_v16, %v3874_v14  ;;  %vm406_vm4 = vcmp.ge.s32.totalorder %v277_v17, %v3874_v14 }
 0x5b5   :  { %902 = vst.msk [vmem:[#allocation4 + $0x228] sm:$0xff] %vm74_vm1, %v774_v22  ;;  %vm674_vm5 = vmand %vm416_vm8, %vm546_vm10  ;;  %v801_v44 = vsel %vm673_vm11, 1.0, %v3694_v1  ;;  %vm535_vm7 = vcmp.lt.s32.totalorder %v276_v16, %v3877_v15  ;;  %vm536_vm15 = vcmp.lt.s32.totalorder %v277_v17, %v3877_v15  ;;  %v304_v23 = vadd.s32 912, %v3784_v3 }
 0x5b6   :  { %3416 = vmatpush3.bf16.msra.mxu0 %v3415_v21  ;;  %v802_v10 = vsel %vm674_vm5, 1.0, %v3694_v1  ;;  %929 = vst.msk [vmem:[#allocation4 + $0x300] sm:$0xff] %vm74_vm1, %v801_v44  ;;  %vm663_vm14 = vmand %vm405_vm12, %vm535_vm7  ;;  %v305_v25 = vadd.s32 920, %v3784_v3  ;;  %v260_v26 = vadd.s32 560, %v3784_v3  ;;  %v261_v28 = vadd.s32 568, %v3784_v3 }
 0x5b7   :  { %930 = vst.msk [vmem:[#allocation4 + $0x308] sm:$0xff] %vm74_vm1, %v802_v10  ;;  %vm664_vm2 = vmand %vm406_vm4, %vm536_vm15  ;;  %v791_v27 = vsel %vm663_vm14, 1.0, %v3694_v1  ;;  %vm433_vm6 = vcmp.ge.s32.totalorder %v304_v23, %v3874_v14  ;;  %vm563_vm9 = vcmp.lt.s32.totalorder %v304_v23, %v3877_v15  ;;  %v288_v36 = vadd.s32 784, %v3784_v3 }
 0x5b8   :  { %v792_v31 = vsel %vm664_vm2, 1.0, %v3694_v1  ;;  %919 = vst.msk [vmem:[#allocation4 + $0x2b0] sm:$0xff] %vm74_vm1, %v791_v27  ;;  %vm434_vm3 = vcmp.ge.s32.totalorder %v305_v25, %v3874_v14  ;;  %vm564_vm0 = vcmp.lt.s32.totalorder %v305_v25, %v3877_v15  ;;  %vm691_vm8 = vmand %vm433_vm6, %vm563_vm9  ;;  %vm389_vm11 = vcmp.ge.s32.totalorder %v260_v26, %v3874_v14 }
 0x5b9   :  { %v2334_v30 = vld [vmem:[#allocation4 + $0x380] sm:$0xff]  ;;  %920 = vst.msk [vmem:[#allocation4 + $0x2b8] sm:$0xff] %vm74_vm1, %v792_v31  ;;  %vm692_vm10 = vmand %vm434_vm3, %vm564_vm0  ;;  %v819_v33 = vsel %vm691_vm8, 1.0, %v3694_v1  ;;  %vm390_vm12 = vcmp.ge.s32.totalorder %v261_v28, %v3874_v14  ;;  %vm519_vm4 = vcmp.lt.s32.totalorder %v260_v26, %v3877_v15  ;;  %vm520_vm5 = vcmp.lt.s32.totalorder %v261_v28, %v3877_v15 }
 0x5ba   :  { %v2335_v32 = vld [vmem:[#allocation4 + $0x388] sm:$0xff]  ;;  %v820_v35 = vsel %vm692_vm10, 1.0, %v3694_v1  ;;  %947 = vst.msk [vmem:[#allocation4 + $0x390] sm:$0xff] %vm74_vm1, %v819_v33  ;;  %vm647_vm7 = vmand %vm389_vm11, %vm519_vm4  ;;  %v289_v38 = vadd.s32 792, %v3784_v3  ;;  %v278_v39 = vadd.s32 704, %v3784_v3  ;;  %v279_v40 = vadd.s32 712, %v3784_v3 }
 0x5bb   :  { %v3449_v34 = vpack.c.bf16 %v2335_v32, %v2334_v30  ;;  %948 = vst.msk [vmem:[#allocation4 + $0x398] sm:$0xff] %vm74_vm1, %v820_v35  ;;  %vm648_vm15 = vmand %vm390_vm12, %vm520_vm5  ;;  %v775_v37 = vsel %vm647_vm7, 1.0, %v3694_v1  ;;  %vm417_vm14 = vcmp.ge.s32.totalorder %v288_v36, %v3874_v14  ;;  %vm547_vm2 = vcmp.lt.s32.totalorder %v288_v36, %v3877_v15 }
 0x5bc   :  { %v776_v41 = vsel %vm648_vm15, 1.0, %v3694_v1  ;;  %903 = vst.msk [vmem:[#allocation4 + $0x230] sm:$0xff] %vm74_vm1, %v775_v37  ;;  %vm418_vm6 = vcmp.ge.s32.totalorder %v289_v38, %v3874_v14  ;;  %vm548_vm9 = vcmp.lt.s32.totalorder %v289_v38, %v3877_v15  ;;  %vm675_vm3 = vmand %vm417_vm14, %vm547_vm2  ;;  %vm407_vm0 = vcmp.ge.s32.totalorder %v278_v39, %v3874_v14 }
 0x5bd   :  { %3450 = vmatprep.subr.bf16.mxu0 %v3449_v34  ;;  %904 = vst.msk [vmem:[#allocation4 + $0x238] sm:$0xff] %vm74_vm1, %v776_v41  ;;  %vm408_vm8 = vcmp.ge.s32.totalorder %v279_v40, %v3874_v14  ;;  %vm676_vm10 = vmand %vm418_vm6, %vm548_vm9  ;;  %v803_v42 = vsel %vm675_vm3, 1.0, %v3694_v1  ;;  %vm537_vm11 = vcmp.lt.s32.totalorder %v278_v39, %v3877_v15  ;;  %vm538_vm12 = vcmp.lt.s32.totalorder %v279_v40, %v3877_v15 }
 0x5be   :  { %v306_v43 = vadd.s32 928, %v3784_v3  ;;  %v804_v45 = vsel %vm676_vm10, 1.0, %v3694_v1  ;;  %931 = vst.msk [vmem:[#allocation4 + $0x310] sm:$0xff] %vm74_vm1, %v803_v42  ;;  %vm665_vm4 = vmand %vm407_vm0, %vm537_vm11  ;;  %v307_v46 = vadd.s32 936, %v3784_v3  ;;  %v262_v24 = vadd.s32 576, %v3784_v3 }
 0x5bf   :  { %932 = vst.msk [vmem:[#allocation4 + $0x318] sm:$0xff] %vm74_vm1, %v804_v45  ;;  %vm666_vm5 = vmand %vm408_vm8, %vm538_vm12  ;;  %v793_v47 = vsel %vm665_vm4, 1.0, %v3694_v1  ;;  %v263_v48 = vadd.s32 584, %v3784_v3  ;;  %v290_v52 = vadd.s32 800, %v3784_v3  ;;  %v291_v54 = vadd.s32 808, %v3784_v3 }
 0x5c0   :  { %vm435_vm7 = vcmp.ge.s32.totalorder %v306_v43, %v3874_v14  ;;  %vm565_vm15 = vcmp.lt.s32.totalorder %v306_v43, %v3877_v15  ;;  %v794_v49 = vsel %vm666_vm5, 1.0, %v3694_v1  ;;  %921 = vst.msk [vmem:[#allocation4 + $0x2c0] sm:$0xff] %vm74_vm1, %v793_v47  ;;  %vm436_vm14 = vcmp.ge.s32.totalorder %v307_v46, %v3874_v14 }
 0x5c1   :  { %vm566_vm2 = vcmp.lt.s32.totalorder %v307_v46, %v3877_v15  ;;  %vm693_vm6 = vmand %vm435_vm7, %vm565_vm15  ;;  %922 = vst.msk [vmem:[#allocation4 + $0x2c8] sm:$0xff] %vm74_vm1, %v794_v49  ;;  %vm391_vm3 = vcmp.ge.s32.totalorder %v262_v24, %v3874_v14  ;;  %vm392_vm0 = vcmp.ge.s32.totalorder %v263_v48, %v3874_v14  ;;  %vm521_vm8 = vcmp.lt.s32.totalorder %v262_v24, %v3877_v15 }
 0x5c2   :  { %vm694_vm9 = vmand %vm436_vm14, %vm566_vm2  ;;  %v821_v50 = vsel %vm693_vm6, 1.0, %v3694_v1  ;;  %vm522_vm10 = vcmp.lt.s32.totalorder %v263_v48, %v3877_v15  ;;  %v280_v55 = vadd.s32 720, %v3784_v3  ;;  %v281_v56 = vadd.s32 728, %v3784_v3 }
 0x5c3   :  { %v822_v51 = vsel %vm694_vm9, 1.0, %v3694_v1  ;;  %949 = vst.msk [vmem:[#allocation4 + $0x3a0] sm:$0xff] %vm74_vm1, %v821_v50  ;;  %vm649_vm11 = vmand %vm391_vm3, %vm521_vm8  ;;  %vm419_vm4 = vcmp.ge.s32.totalorder %v290_v52, %v3874_v14  ;;  %vm549_vm5 = vcmp.lt.s32.totalorder %v290_v52, %v3877_v15  ;;  %vm420_vm7 = vcmp.ge.s32.totalorder %v291_v54, %v3874_v14 }
 0x5c4   :  { %950 = vst.msk [vmem:[#allocation4 + $0x3a8] sm:$0xff] %vm74_vm1, %v822_v51  ;;  %vm650_vm12 = vmand %vm392_vm0, %vm522_vm10  ;;  %v777_v53 = vsel %vm649_vm11, 1.0, %v3694_v1  ;;  %vm550_vm15 = vcmp.lt.s32.totalorder %v291_v54, %v3877_v15  ;;  %vm409_vm2 = vcmp.ge.s32.totalorder %v280_v55, %v3874_v14  ;;  %vm410_vm6 = vcmp.ge.s32.totalorder %v281_v56, %v3874_v14 }
 0x5c5   :  { %v778_v57 = vsel %vm650_vm12, 1.0, %v3694_v1  ;;  %905 = vst.msk [vmem:[#allocation4 + $0x240] sm:$0xff] %vm74_vm1, %v777_v53  ;;  %vm677_vm14 = vmand %vm419_vm4, %vm549_vm5  ;;  %vm539_vm3 = vcmp.lt.s32.totalorder %v280_v55, %v3877_v15  ;;  %vm540_vm0 = vcmp.lt.s32.totalorder %v281_v56, %v3877_v15  ;;  %v308_v59 = vadd.s32 944, %v3784_v3 }
 0x5c6   :  { %906 = vst.msk [vmem:[#allocation4 + $0x248] sm:$0xff] %vm74_vm1, %v778_v57  ;;  %vm678_vm9 = vmand %vm420_vm7, %vm550_vm15  ;;  %v805_v58 = vsel %vm677_vm14, 1.0, %v3694_v1  ;;  %v309_v61 = vadd.s32 952, %v3784_v3  ;;  %v264_v62 = vadd.s32 592, %v3784_v3  ;;  %v265_v4 = vadd.s32 600, %v3784_v3 }
 0x5c7   :  { %v806_v60 = vsel %vm678_vm9, 1.0, %v3694_v1  ;;  %933 = vst.msk [vmem:[#allocation4 + $0x320] sm:$0xff] %vm74_vm1, %v805_v58  ;;  %vm667_vm8 = vmand %vm409_vm2, %vm539_vm3  ;;  %vm437_vm11 = vcmp.ge.s32.totalorder %v308_v59, %v3874_v14  ;;  %vm567_vm12 = vcmp.lt.s32.totalorder %v308_v59, %v3877_v15  ;;  %v292_v8 = vadd.s32 816, %v3784_v3 }
 0x5c8   :  { %934 = vst.msk [vmem:[#allocation4 + $0x328] sm:$0xff] %vm74_vm1, %v806_v60  ;;  %vm668_vm10 = vmand %vm410_vm6, %vm540_vm0  ;;  %v795_v63 = vsel %vm667_vm8, 1.0, %v3694_v1  ;;  %vm438_vm4 = vcmp.ge.s32.totalorder %v309_v61, %v3874_v14  ;;  %vm568_vm5 = vcmp.lt.s32.totalorder %v309_v61, %v3877_v15  ;;  %vm393_vm14 = vcmp.ge.s32.totalorder %v264_v62, %v3874_v14 }
 0x5c9   :  { %v796_v5 = vsel %vm668_vm10, 1.0, %v3694_v1  ;;  %923 = vst.msk [vmem:[#allocation4 + $0x2d0] sm:$0xff] %vm74_vm1, %v795_v63  ;;  %vm695_vm7 = vmand %vm437_vm11, %vm567_vm12  ;;  %vm394_vm2 = vcmp.ge.s32.totalorder %v265_v4, %v3874_v14  ;;  %vm523_vm6 = vcmp.lt.s32.totalorder %v264_v62, %v3877_v15  ;;  %vm524_vm9 = vcmp.lt.s32.totalorder %v265_v4, %v3877_v15 }
 0x5ca   :  { %924 = vst.msk [vmem:[#allocation4 + $0x2d8] sm:$0xff] %vm74_vm1, %v796_v5  ;;  %vm696_vm15 = vmand %vm438_vm4, %vm568_vm5  ;;  %v823_v6 = vsel %vm695_vm7, 1.0, %v3694_v1  ;;  %v293_v11 = vadd.s32 824, %v3784_v3  ;;  %v282_v2 = vadd.s32 736, %v3784_v3  ;;  %v283_v16 = vadd.s32 744, %v3784_v3 }
 0x5cb   :  { %v824_v7 = vsel %vm696_vm15, 1.0, %v3694_v1  ;;  %951 = vst.msk [vmem:[#allocation4 + $0x3b0] sm:$0xff] %vm74_vm1, %v823_v6  ;;  %vm651_vm3 = vmand %vm393_vm14, %vm523_vm6  ;;  %vm421_vm8 = vcmp.ge.s32.totalorder %v292_v8, %v3874_v14  ;;  %vm551_vm10 = vcmp.lt.s32.totalorder %v292_v8, %v3877_v15  ;;  %v310_v22 = vadd.s32 960, %v3784_v3 }
 0x5cc   :  { %952 = vst.msk [vmem:[#allocation4 + $0x3b8] sm:$0xff] %vm74_vm1, %v824_v7  ;;  %vm652_vm0 = vmand %vm394_vm2, %vm524_vm9  ;;  %v779_v9 = vsel %vm651_vm3, 1.0, %v3694_v1  ;;  %vm422_vm11 = vcmp.ge.s32.totalorder %v293_v11, %v3874_v14  ;;  %vm552_vm12 = vcmp.lt.s32.totalorder %v293_v11, %v3877_v15  ;;  %vm411_vm5 = vcmp.ge.s32.totalorder %v282_v2, %v3874_v14 }
 0x5cd   :  { %v780_v17 = vsel %vm652_vm0, 1.0, %v3694_v1  ;;  %907 = vst.msk [vmem:[#allocation4 + $0x250] sm:$0xff] %vm74_vm1, %v779_v9  ;;  %vm679_vm4 = vmand %vm421_vm8, %vm551_vm10  ;;  %vm412_vm7 = vcmp.ge.s32.totalorder %v283_v16, %v3874_v14  ;;  %vm541_vm14 = vcmp.lt.s32.totalorder %v282_v2, %v3877_v15  ;;  %vm542_vm2 = vcmp.lt.s32.totalorder %v283_v16, %v3877_v15  ;;  %v1506_v9 = vpop.permute.xlu0 %1505 }
 0x5ce   :  { %908 = vst.msk [vmem:[#allocation4 + $0x258] sm:$0xff] %vm74_vm1, %v780_v17  ;;  %vm680_vm15 = vmand %vm422_vm11, %vm552_vm12  ;;  %v807_v21 = vsel %vm679_vm4, 1.0, %v3694_v1  ;;  %v311_v23 = vadd.s32 968, %v3784_v3  ;;  %v266_v10 = vadd.s32 608, %v3784_v3  ;;  %vm439_vm3 = vcmp.ge.s32.totalorder %v310_v22, %v3874_v14 }
 0x5cf   :  { %v808_v44 = vsel %vm680_vm15, 1.0, %v3694_v1  ;;  %935 = vst.msk [vmem:[#allocation4 + $0x330] sm:$0xff] %vm74_vm1, %v807_v21  ;;  %vm669_vm6 = vmand %vm411_vm5, %vm541_vm14  ;;  %vm569_vm0 = vcmp.lt.s32.totalorder %v310_v22, %v3877_v15  ;;  %v267_v26 = vadd.s32 616, %v3784_v3  ;;  %v294_v31 = vadd.s32 832, %v3784_v3 }
 0x5d0   :  { %936 = vst.msk [vmem:[#allocation4 + $0x338] sm:$0xff] %vm74_vm1, %v808_v44  ;;  %vm670_vm9 = vmand %vm412_vm7, %vm542_vm2  ;;  %v797_v25 = vsel %vm669_vm6, 1.0, %v3694_v1  ;;  %vm440_vm8 = vcmp.ge.s32.totalorder %v311_v23, %v3874_v14  ;;  %vm570_vm10 = vcmp.lt.s32.totalorder %v311_v23, %v3877_v15  ;;  %vm395_vm4 = vcmp.ge.s32.totalorder %v266_v10, %v3874_v14 }
 0x5d1   :  { %v798_v27 = vsel %vm670_vm9, 1.0, %v3694_v1  ;;  %925 = vst.msk [vmem:[#allocation4 + $0x2e0] sm:$0xff] %vm74_vm1, %v797_v25  ;;  %vm697_vm11 = vmand %vm439_vm3, %vm569_vm0  ;;  %vm396_vm5 = vcmp.ge.s32.totalorder %v267_v26, %v3874_v14  ;;  %vm525_vm7 = vcmp.lt.s32.totalorder %v266_v10, %v3877_v15  ;;  %vm526_vm15 = vcmp.lt.s32.totalorder %v267_v26, %v3877_v15  ;;  %v2286_v10 = vld [vmem:[#allocation4 + $0x200] sm:$0xff]  ;;  %v2287_v25 = vld [vmem:[#allocation4 + $0x208] sm:$0xff] }
 0x5d2   :  { %926 = vst.msk [vmem:[#allocation4 + $0x2e8] sm:$0xff] %vm74_vm1, %v798_v27  ;;  %vm698_vm12 = vmand %vm440_vm8, %vm570_vm10  ;;  %v825_v28 = vsel %vm697_vm11, 1.0, %v3694_v1  ;;  %v295_v33 = vadd.s32 840, %v3784_v3  ;;  %v284_v34 = vadd.s32 752, %v3784_v3  ;;  %v285_v35 = vadd.s32 760, %v3784_v3 }
 0x5d3   :  { %v826_v30 = vsel %vm698_vm12, 1.0, %v3694_v1  ;;  %953 = vst.msk [vmem:[#allocation4 + $0x3c0] sm:$0xff] %vm74_vm1, %v825_v28  ;;  %vm653_vm14 = vmand %vm395_vm4, %vm525_vm7  ;;  %vm423_vm6 = vcmp.ge.s32.totalorder %v294_v31, %v3874_v14  ;;  %vm553_vm9 = vcmp.lt.s32.totalorder %v294_v31, %v3877_v15  ;;  %v312_v38 = vadd.s32 976, %v3784_v3  ;;  %v2304_v28 = vld [vmem:[#allocation4 + $0x290] sm:$0xff] }
 0x5d4   :  { %954 = vst.msk [vmem:[#allocation4 + $0x3c8] sm:$0xff] %vm74_vm1, %v826_v30  ;;  %vm654_vm2 = vmand %vm396_vm5, %vm526_vm15  ;;  %v781_v32 = vsel %vm653_vm14, 1.0, %v3694_v1  ;;  %vm424_vm3 = vcmp.ge.s32.totalorder %v295_v33, %v3874_v14  ;;  %vm554_vm0 = vcmp.lt.s32.totalorder %v295_v33, %v3877_v15  ;;  %vm413_vm10 = vcmp.ge.s32.totalorder %v284_v34, %v3874_v14  ;;  %v2305_v30 = vld [vmem:[#allocation4 + $0x298] sm:$0xff] }
 0x5d5   :  { %v782_v36 = vsel %vm654_vm2, 1.0, %v3694_v1  ;;  %909 = vst.msk [vmem:[#allocation4 + $0x260] sm:$0xff] %vm74_vm1, %v781_v32  ;;  %vm681_vm8 = vmand %vm423_vm6, %vm553_vm9  ;;  %vm414_vm11 = vcmp.ge.s32.totalorder %v285_v35, %v3874_v14  ;;  %vm543_vm4 = vcmp.lt.s32.totalorder %v284_v34, %v3877_v15  ;;  %vm544_vm5 = vcmp.lt.s32.totalorder %v285_v35, %v3877_v15 }
 0x5d6   :  { %910 = vst.msk [vmem:[#allocation4 + $0x268] sm:$0xff] %vm74_vm1, %v782_v36  ;;  %vm682_vm12 = vmand %vm424_vm3, %vm554_vm0  ;;  %v809_v37 = vsel %vm681_vm8, 1.0, %v3694_v1  ;;  %v313_v40 = vadd.s32 984, %v3784_v3  ;;  %v268_v41 = vadd.s32 624, %v3784_v3  ;;  %vm441_vm14 = vcmp.ge.s32.totalorder %v312_v38, %v3874_v14 }
 0x5d7   :  { %v810_v39 = vsel %vm682_vm12, 1.0, %v3694_v1  ;;  %937 = vst.msk [vmem:[#allocation4 + $0x340] sm:$0xff] %vm74_vm1, %v809_v37  ;;  %vm671_vm7 = vmand %vm413_vm10, %vm543_vm4  ;;  %vm571_vm2 = vcmp.lt.s32.totalorder %v312_v38, %v3877_v15  ;;  %v269_v43 = vadd.s32 632, %v3784_v3  ;;  %v296_v47 = vadd.s32 848, %v3784_v3  ;;  %v2288_v37 = vld [vmem:[#allocation4 + $0x210] sm:$0xff]  ;;  %v2289_v38 = vld [vmem:[#allocation4 + $0x218] sm:$0xff] }
 0x5d8   :  { %938 = vst.msk [vmem:[#allocation4 + $0x348] sm:$0xff] %vm74_vm1, %v810_v39  ;;  %vm672_vm15 = vmand %vm414_vm11, %vm544_vm5  ;;  %v799_v42 = vsel %vm671_vm7, 1.0, %v3694_v1  ;;  %vm442_vm6 = vcmp.ge.s32.totalorder %v313_v40, %v3874_v14  ;;  %vm572_vm9 = vcmp.lt.s32.totalorder %v313_v40, %v3877_v15  ;;  %vm397_vm8 = vcmp.ge.s32.totalorder %v268_v41, %v3874_v14  ;;  %v2306_v39 = vld [vmem:[#allocation4 + $0x2a0] sm:$0xff]  ;;  %v2307_v40 = vld [vmem:[#allocation4 + $0x2a8] sm:$0xff] }
 0x5d9   :  { %v800_v45 = vsel %vm672_vm15, 1.0, %v3694_v1  ;;  %927 = vst.msk [vmem:[#allocation4 + $0x2f0] sm:$0xff] %vm74_vm1, %v799_v42  ;;  %vm699_vm3 = vmand %vm441_vm14, %vm571_vm2  ;;  %vm398_vm10 = vcmp.ge.s32.totalorder %v269_v43, %v3874_v14  ;;  %vm527_vm11 = vcmp.lt.s32.totalorder %v268_v41, %v3877_v15  ;;  %vm528_vm12 = vcmp.lt.s32.totalorder %v269_v43, %v3877_v15  ;;  %v2290_v42 = vld [vmem:[#allocation4 + $0x220] sm:$0xff]  ;;  %v2291_v43 = vld [vmem:[#allocation4 + $0x228] sm:$0xff] }
 0x5da   :  { %928 = vst.msk [vmem:[#allocation4 + $0x2f8] sm:$0xff] %vm74_vm1, %v800_v45  ;;  %vm700_vm0 = vmand %vm442_vm6, %vm572_vm9  ;;  %v827_v46 = vsel %vm699_vm3, 1.0, %v3694_v1  ;;  %v297_v49 = vadd.s32 856, %v3784_v3  ;;  %v314_v50 = vadd.s32 992, %v3784_v3  ;;  %v315_v51 = vadd.s32 1000, %v3784_v3 }
 0x5db   :  { %v828_v24 = vsel %vm700_vm0, 1.0, %v3694_v1  ;;  %955 = vst.msk [vmem:[#allocation4 + $0x3d0] sm:$0xff] %vm74_vm1, %v827_v46  ;;  %vm655_vm4 = vmand %vm397_vm8, %vm527_vm11  ;;  %vm425_vm7 = vcmp.ge.s32.totalorder %v296_v47, %v3874_v14  ;;  %vm555_vm15 = vcmp.lt.s32.totalorder %v296_v47, %v3877_v15  ;;  %v298_v54 = vadd.s32 864, %v3784_v3  ;;  %v2318_v46 = vld [vmem:[#allocation4 + $0x300] sm:$0xff]  ;;  %v2308_v47 = vld [vmem:[#allocation4 + $0x2b0] sm:$0xff] }
 0x5dc   :  { %956 = vst.msk [vmem:[#allocation4 + $0x3d8] sm:$0xff] %vm74_vm1, %v828_v24  ;;  %vm656_vm5 = vmand %vm398_vm10, %vm528_vm12  ;;  %v783_v48 = vsel %vm655_vm4, 1.0, %v3694_v1  ;;  %vm426_vm14 = vcmp.ge.s32.totalorder %v297_v49, %v3874_v14  ;;  %vm556_vm2 = vcmp.lt.s32.totalorder %v297_v49, %v3877_v15  ;;  %vm443_vm9 = vcmp.ge.s32.totalorder %v314_v50, %v3874_v14  ;;  %v2319_v24 = vld [vmem:[#allocation4 + $0x308] sm:$0xff] }
 0x5dd   :  { %v784_v52 = vsel %vm656_vm5, 1.0, %v3694_v1  ;;  %911 = vst.msk [vmem:[#allocation4 + $0x270] sm:$0xff] %vm74_vm1, %v783_v48  ;;  %vm683_vm6 = vmand %vm425_vm7, %vm555_vm15  ;;  %vm444_vm3 = vcmp.ge.s32.totalorder %v315_v51, %v3874_v14  ;;  %vm573_vm8 = vcmp.lt.s32.totalorder %v314_v50, %v3877_v15  ;;  %vm574_vm10 = vcmp.lt.s32.totalorder %v315_v51, %v3877_v15  ;;  %v2309_v50 = vld [vmem:[#allocation4 + $0x2b8] sm:$0xff]  ;;  %v2336_v51 = vld [vmem:[#allocation4 + $0x390] sm:$0xff] }
 0x5de   :  { %912 = vst.msk [vmem:[#allocation4 + $0x278] sm:$0xff] %vm74_vm1, %v784_v52  ;;  %vm684_vm0 = vmand %vm426_vm14, %vm556_vm2  ;;  %v811_v53 = vsel %vm683_vm6, 1.0, %v3694_v1  ;;  %v299_v56 = vadd.s32 872, %v3784_v3  ;;  %vm427_vm4 = vcmp.ge.s32.totalorder %v298_v54, %v3874_v14  ;;  %vm557_vm5 = vcmp.lt.s32.totalorder %v298_v54, %v3877_v15  ;;  %v2337_v52 = vld [vmem:[#allocation4 + $0x398] sm:$0xff] }
 0x5df   :  { %v812_v55 = vsel %vm684_vm0, 1.0, %v3694_v1  ;;  %939 = vst.msk [vmem:[#allocation4 + $0x350] sm:$0xff] %vm74_vm1, %v811_v53  ;;  %vm701_vm11 = vmand %vm443_vm9, %vm573_vm8  ;;  %v316_v58 = vadd.s32 1008, %v3784_v3  ;;  %v317_v61 = vadd.s32 1016, %v3784_v3  ;;  %v300_v63 = vadd.s32 880, %v3784_v3 }
 0x5e0   :  { %940 = vst.msk [vmem:[#allocation4 + $0x358] sm:$0xff] %vm74_vm1, %v812_v55  ;;  %vm702_vm12 = vmand %vm444_vm3, %vm574_vm10  ;;  %v829_v57 = vsel %vm701_vm11, 1.0, %v3694_v1  ;;  %vm428_vm7 = vcmp.ge.s32.totalorder %v299_v56, %v3874_v14  ;;  %vm558_vm15 = vcmp.lt.s32.totalorder %v299_v56, %v3877_v15  ;;  %v301_v4 = vadd.s32 888, %v3784_v3 }
 0x5e1   :  { %v830_v59 = vsel %vm702_vm12, 1.0, %v3694_v1  ;;  %957 = vst.msk [vmem:[#allocation4 + $0x3e0] sm:$0xff] %vm74_vm1, %v829_v57  ;;  %vm685_vm14 = vmand %vm427_vm4, %vm557_vm5  ;;  %vm445_vm6 = vcmp.ge.s32.totalorder %v316_v58, %v3874_v14  ;;  %vm575_vm9 = vcmp.lt.s32.totalorder %v316_v58, %v3877_v15  ;;  %vm446_vm0 = vcmp.ge.s32.totalorder %v317_v61, %v3874_v14 }
 0x5e2   :  { %958 = vst.msk [vmem:[#allocation4 + $0x3e8] sm:$0xff] %vm74_vm1, %v830_v59  ;;  %vm686_vm2 = vmand %vm428_vm7, %vm558_vm15  ;;  %v813_v60 = vsel %vm685_vm14, 1.0, %v3694_v1  ;;  %vm576_vm8 = vcmp.lt.s32.totalorder %v317_v61, %v3877_v15  ;;  %vm429_vm11 = vcmp.ge.s32.totalorder %v300_v63, %v3874_v14  ;;  %vm430_vm12 = vcmp.ge.s32.totalorder %v301_v4, %v3874_v14  ;;  %v2292_v61 = vld [vmem:[#allocation4 + $0x230] sm:$0xff] }
 0x5e3   :  { %v814_v62 = vsel %vm686_vm2, 1.0, %v3694_v1  ;;  %941 = vst.msk [vmem:[#allocation4 + $0x360] sm:$0xff] %vm74_vm1, %v813_v60  ;;  %vm703_vm3 = vmand %vm445_vm6, %vm575_vm9  ;;  %vm559_vm4 = vcmp.lt.s32.totalorder %v300_v63, %v3877_v15  ;;  %vm560_vm5 = vcmp.lt.s32.totalorder %v301_v4, %v3877_v15  ;;  %v3419_v35 = vpack.c.bf16 %v2287_v25, %v2286_v10  ;;  %v2312_v10 = vld [vmem:[#allocation4 + $0x2d0] sm:$0xff] }
 0x5e4   :  { %942 = vst.msk [vmem:[#allocation4 + $0x368] sm:$0xff] %vm74_vm1, %v814_v62  ;;  %v831_v5 = vsel %vm703_vm3, 1.0, %v3694_v1  ;;  %vm704_vm10 = vmand %vm446_vm0, %vm576_vm8  ;;  %v3421_v36 = vpack.c.bf16 %v2305_v30, %v2304_v28  ;;  %v3423_v41 = vpack.c.bf16 %v2289_v38, %v2288_v37  ;;  %v3425_v45 = vpack.c.bf16 %v2307_v40, %v2306_v39  ;;  %v2293_v62 = vld [vmem:[#allocation4 + $0x238] sm:$0xff]  ;;  %v2340_v30 = vld [vmem:[#allocation4 + $0x3b0] sm:$0xff] }
 0x5e5   :  { %959 = vst.msk [vmem:[#allocation4 + $0x3f0] sm:$0xff] %vm74_vm1, %v831_v5  ;;  %v832_v6 = vsel %vm704_vm10, 1.0, %v3694_v1  ;;  %vm687_vm7 = vmand %vm429_vm11, %vm559_vm4  ;;  %v3427_v59 = vpack.c.bf16 %v2291_v43, %v2290_v42  ;;  %v3451_v60 = vpack.c.bf16 %v2319_v24, %v2318_v46  ;;  %v3429_v63 = vpack.c.bf16 %v2309_v50, %v2308_v47  ;;  %v2320_v5 = vld [vmem:[#allocation4 + $0x310] sm:$0xff]  ;;  %v2313_v28 = vld [vmem:[#allocation4 + $0x2d8] sm:$0xff] }
 0x5e6   :  { %960 = vst.msk [vmem:[#allocation4 + $0x3f8] sm:$0xff] %vm74_vm1, %v832_v6  ;;  %vm688_vm15 = vmand %vm430_vm12, %vm560_vm5  ;;  %v815_v7 = vsel %vm687_vm7, 1.0, %v3694_v1  ;;  %v3453_v4 = vpack.c.bf16 %v2337_v52, %v2336_v51  ;;  %v2321_v6 = vld [vmem:[#allocation4 + $0x318] sm:$0xff]  ;;  %v2296_v39 = vld [vmem:[#allocation4 + $0x250] sm:$0xff]  ;;  %vm979_vm8 = vcmask 64512   ;;  %vm2880_vm7 = vcmask 326720  }
 0x5e7   :  { %v816_v8 = vsel %vm688_vm15, 1.0, %v3694_v1  ;;  %943 = vst.msk [vmem:[#allocation4 + $0x370] sm:$0xff] %vm74_vm1, %v815_v7  ;;  %v2310_v7 = vld [vmem:[#allocation4 + $0x2c0] sm:$0xff]  ;;  %v2297_v40 = vld [vmem:[#allocation4 + $0x258] sm:$0xff]  ;;  %v2324_v43 = vld [vmem:[#allocation4 + $0x330] sm:$0xff]  ;;  %vm2886_vm15 = vcmask 589120  }
 0x5e8   :  { %944 = vst.msk [vmem:[#allocation4 + $0x378] sm:$0xff] %vm74_vm1, %v816_v8  ;;  %v2311_v8 = vld [vmem:[#allocation4 + $0x2c8] sm:$0xff]  ;;  %v2314_v46 = vld [vmem:[#allocation4 + $0x2e0] sm:$0xff] }
 0x5e9   :  { %v2342_v24 = vld [vmem:[#allocation4 + $0x3c0] sm:$0xff]  ;;  %v2343_v47 = vld [vmem:[#allocation4 + $0x3c8] sm:$0xff] }
 0x5ea   :  { %v2299_v50 = vld [vmem:[#allocation4 + $0x268] sm:$0xff]  ;;  %v3465_v52 = vpack.c.bf16 %v2343_v47, %v2342_v24 }
 0x62e   :  { %v1577_v14 = vpop.f32.mrb[4].mxu1  ;;  %v1680_v11 = vpop.f32.mrb[6].mxu0 }
 0x62f   :  { %v1578_v2 = vadd.f32 %v1577_v14, %v1506_v9  ;;  %v3213_v16 = vpop.f32.mrb[5].mxu1  ;;  %v1682_v17 = vpop.f32.mrb[7].mxu0  ;;  %v2338_v9 = vld [vmem:[#allocation4 + $0x3a0] sm:$0xff]  ;;  %v2339_v14 = vld [vmem:[#allocation4 + $0x3a8] sm:$0xff] }
 0x630   :  { %v2294_v16 = vld [vmem:[#allocation4 + $0x240] sm:$0xff] }
 0x631   :  { %3563 = vtanh.f32 %v1578_v2  ;;  %v3455_v2 = vpack.c.bf16 %v2321_v6, %v2320_v5  ;;  %v2301_v5 = vld [vmem:[#allocation4 + $0x278] sm:$0xff]  ;;  %v2328_v6 = vld [vmem:[#allocation4 + $0x350] sm:$0xff] }
 0x636   :  { %v1751_v15 = vpop.f32.mrb[6].mxu1  ;;  %v1822_v21 = vpop.f32.mrb[8].mxu0 }
 0x637   :  { %v1753_v22 = vpop.f32.mrb[7].mxu1  ;;  %v1824_v44 = vpop.f32.mrb[9].mxu0 }
 0x63b   :  { %v4737_v23 = vpop.eup %3563 }
 0x63c   :  { %2799 = vperm.xlu0 %3552, %v4737_v23  }
 0x63e   :  { %v4740_v26 = vpop.f32.mrb[8].mxu1  ;;  %v1996_v27 = vpop.f32.mrb[10].mxu0 }
 0x63f   :  { %v2214_v31 = vmul.f32 %v1996_v27, %v1680_v11  ;;  %v4742_v32 = vpop.f32.mrb[9].mxu1  ;;  %v1998_v33 = vpop.f32.mrb[11].mxu0  ;;  %v3431_v11 = vpack.c.bf16 %v2293_v62, %v2292_v61  ;;  %v2300_v62 = vld [vmem:[#allocation4 + $0x270] sm:$0xff] }
 0x640   :  { %v2215_v34 = vmul.f32 %v1998_v33, %v1682_v17  ;;  %2888 = vrot.lane.b32.xlu0 %v4737_v23, %s3700_s13  ;;  %v2295_v17 = vld [vmem:[#allocation4 + $0x248] sm:$0xff] }
 0x641   :  { %v3435_v37 = vpack.c.bf16 %v2295_v17, %v2294_v16  ;;  %v2330_v16 = vld [vmem:[#allocation4 + $0x360] sm:$0xff]  ;;  %v2331_v17 = vld [vmem:[#allocation4 + $0x368] sm:$0xff] }
 0x642   :  { %2496 = vmatprep.mubr.f32.mxu1 %v2215_v34 }
 0x643   :  { %2497 = vmatmul.mubr.f32.vlgmr.msra.gmra.mrb[14].mxu1 %v2214_v31  ;;  %v2341_v31 = vld [vmem:[#allocation4 + $0x3b8] sm:$0xff] }
 0x644   :  { %3420 = vmatpush3.bf16.msra.mxu1 %v3419_v35  ;;  %v3461_v42 = vpack.c.bf16 %v2341_v31, %v2340_v30  ;;  %v2332_v31 = vld [vmem:[#allocation4 + $0x370] sm:$0xff] }
 0x645   :  { %3422 = vmatprep.subr.bf16.mxu1 %v3421_v36 }
 0x646   :  { %v2067_v48 = vpop.f32.mrb[10].mxu1  ;;  %v2138_v49 = vpop.f32.mrb[12].mxu0 }
 0x647   :  { %v2216_v53 = vmul.f32 %v2067_v48, %v1751_v15  ;;  %v4745_v54 = vmul.f32 %v2138_v49, %v1822_v21  ;;  %v2069_v55 = vpop.f32.mrb[11].mxu1  ;;  %v2140_v56 = vpop.f32.mrb[13].mxu0  ;;  %v3433_v15 = vpack.c.bf16 %v2311_v8, %v2310_v7  ;;  %v3457_v21 = vpack.c.bf16 %v2339_v14, %v2338_v9  ;;  %v2298_v49 = vld [vmem:[#allocation4 + $0x260] sm:$0xff]  ;;  %v2329_v7 = vld [vmem:[#allocation4 + $0x358] sm:$0xff]  ;;  %v2347_v9 = vld [vmem:[#allocation4 + $0x3e8] sm:$0xff] }
 0x648   :  { %v2217_v57 = vmul.f32 %v2069_v55, %v1753_v22  ;;  %v2219_v58 = vmul.f32 %v2140_v56, %v1824_v44  ;;  %3424 = vmatpush3.bf16.msra.mxu1 %v3423_v41  ;;  %v2322_v22 = vld [vmem:[#allocation4 + $0x320] sm:$0xff]  ;;  %v2323_v44 = vld [vmem:[#allocation4 + $0x328] sm:$0xff]  ;;  %v3437_v41 = vpack.c.bf16 %v2313_v28, %v2312_v10  ;;  %v2316_v56 = vld [vmem:[#allocation4 + $0x2f0] sm:$0xff]  ;;  %v3447_v14 = vpack.c.bf16 %v2301_v5, %v2300_v62 }
 0x649   :  { %3426 = vmatprep.subr.bf16.mxu1 %v3425_v45  ;;  %v3459_v38 = vpack.c.bf16 %v2323_v44, %v2322_v22  ;;  %v2325_v45 = vld [vmem:[#allocation4 + $0x338] sm:$0xff]  ;;  %v2327_v55 = vld [vmem:[#allocation4 + $0x348] sm:$0xff]  ;;  %v2346_v8 = vld [vmem:[#allocation4 + $0x3e0] sm:$0xff]  ;;  %v3475_v44 = vpack.c.bf16 %v2331_v17, %v2330_v16 }
 0x64a   :  { %2566 = vmatprep.mubr.f32.mxu0 %v2217_v57  ;;  %2636 = vmatprep.mubr.f32.mxu1 %v2219_v58  ;;  %v3463_v48 = vpack.c.bf16 %v2325_v45, %v2324_v43  ;;  %v2317_v57 = vld [vmem:[#allocation4 + $0x2f8] sm:$0xff]  ;;  %v2344_v58 = vld [vmem:[#allocation4 + $0x3d0] sm:$0xff]  ;;  %v998_v28 = vld [vmem:[#allocation11 + $0x70] sm:$0xff] }
 0x64b   :  { %2567 = vmatmul.mubr.f32.vlgmr.msra.gmra.mrb[16].mxu0 %v2216_v53  ;;  %v2326_v53 = vld [vmem:[#allocation4 + $0x340] sm:$0xff]  ;;  %v2349_v22 = vld [vmem:[#allocation4 + $0x3f8] sm:$0xff]  ;;  %v3565_v10 = vld [vmem:[#allocation11 + $0x60] sm:$0xff] }
 0x64c   :  { %3428 = vmatpush3.bf16.msra.mxu1 %v3427_v59  ;;  %3452 = vmatpush3.bf16.msra.mxu0 %v3451_v60  ;;  %v2345_v59 = vld [vmem:[#allocation4 + $0x3d8] sm:$0xff]  ;;  %v3443_v60 = vpack.c.bf16 %v2299_v50, %v2298_v49  ;;  %v3467_v61 = vpack.c.bf16 %v2327_v55, %v2326_v53 }
 0x64d   :  { %3430 = vmatprep.subr.bf16.mxu1 %v3429_v63  ;;  %3454 = vmatprep.subr.bf16.mxu0 %v3453_v4  ;;  %v3445_v63 = vpack.c.bf16 %v2317_v57, %v2316_v56  ;;  %v3469_v4 = vpack.c.bf16 %v2345_v59, %v2344_v58  ;;  %v2789_v58 = vpop.permute.xlu1 %2788 }
 0x64e   :  { %v2209_v25 = vpop.f32.mrb[12].mxu1  ;;  %v4747_v27 = vpop.f32.mrb[14].mxu0 }
 0x64f   :  { %v4750_v33 = vmul.f32 %v2209_v25, %v4740_v26  ;;  %v2211_v34 = vpop.f32.mrb[13].mxu1  ;;  %v3224_v35 = vpop.f32.mrb[15].mxu0  ;;  %v2315_v26 = vld [vmem:[#allocation4 + $0x2e8] sm:$0xff] }
 0x650   :  { %v2221_v36 = vmul.f32 %v2211_v34, %v4742_v32  ;;  %3432 = vmatpush3.bf16.msra.mxu1 %v3431_v11  ;;  %3456 = vmatpush3.bf16.msra.mxu0 %v3455_v2  ;;  %v3439_v32 = vpack.c.bf16 %v2297_v40, %v2296_v39  ;;  %v3441_v51 = vpack.c.bf16 %v2315_v26, %v2314_v46  ;;  %v2333_v34 = vld [vmem:[#allocation4 + $0x378] sm:$0xff]  ;;  %v999_v35 = vld [vmem:[#allocation11 + $0x78] sm:$0xff] }
 0x651   :  { %3434 = vmatprep.subr.bf16.mxu1 %v3433_v15  ;;  %3458 = vmatprep.subr.bf16.mxu0 %v3457_v21  ;;  %v3471_v11 = vpack.c.bf16 %v2329_v7, %v2328_v6  ;;  %v3473_v2 = vpack.c.bf16 %v2347_v9, %v2346_v8  ;;  %v997_v15 = vld [vmem:[#allocation11 + $0x68] sm:$0xff]  ;;  %v2348_v21 = vld [vmem:[#allocation4 + $0x3f0] sm:$0xff] }
 0x652   :  { %2706 = vmatprep.mubr.f32.mxu0 %v2221_v36  ;;  %v3482_v25 = vpack.c.bf16 %v997_v15, %v3565_v10  ;;  %v3477_v30 = vpack.c.bf16 %v2349_v22, %v2348_v21  ;;  %v3479_v36 = vpack.c.bf16 %v2333_v34, %v2332_v31 }
 0x654   :  { %3436 = vmatpush3.bf16.msra.mxu1 %v3435_v37  ;;  %3460 = vmatpush3.bf16.msra.mxu0 %v3459_v38  ;;  %v3485_v37 = vpack.c.bf16 %v999_v35, %v998_v28  ;;  %v966_v38 = vmul.u32 4, %v3871_v13 }
 0x655   :  { %3438 = vmatprep.subr.bf16.mxu1 %v3437_v41  ;;  %3462 = vmatprep.subr.bf16.mxu0 %v3461_v42 }
 0x656   :  { %vm967_vm6 = vcmp.lt.s32.totalorder %v3784_v3, %v966_v38  ;;  %vm968_vm9 = vcmp.lt.s32.totalorder %v3880_v18, %v966_v38  ;;  %vm969_vm11 = vcmp.lt.s32.totalorder %v3883_v19, %v966_v38  ;;  %vm970_vm12 = vcmp.lt.s32.totalorder %v3886_v20, %v966_v38 }
 0x658   :  { %3440 = vmatpush3.bf16.msra.mxu1 %v3439_v32  ;;  %3464 = vmatpush3.bf16.msra.mxu0 %v3463_v48 }
 0x659   :  { %3442 = vmatprep.subr.bf16.mxu1 %v3441_v51  ;;  %3466 = vmatprep.subr.bf16.mxu0 %v3465_v52 }
 0x65c   :  { %3444 = vmatpush3.bf16.msra.mxu1 %v3443_v60  ;;  %3468 = vmatpush3.bf16.msra.mxu0 %v3467_v61  ;;  %v2878_v61 = vpop.permute.xlu1 %2877 }
 0x65d   :  { %3446 = vmatprep.subr.bf16.mxu1 %v3445_v63  ;;  %3470 = vmatprep.subr.bf16.mxu0 %v3469_v4 }
 0x660   :  { %3448 = vmatpush3.bf16.msra.mxu1 %v3447_v14  ;;  %3472 = vmatpush3.bf16.msra.mxu0 %v3471_v11 }
 0x661   :  { %3474 = vmatprep.subr.bf16.mxu0 %v3473_v2  ;;  %3481 = vmatprep.subr.bf16.mxu1 %v3692_v0 }
 0x663   :  { %2637 = vmatmul.mubr.f32.vlgmr.msra.gmra.mrb[16].mxu1 %v4745_v54  ;;  %v961_v54 = vmul.u32 4, %v3868_v12 }
 0x664   :  { %3476 = vmatpush3.bf16.msra.mxu0 %v3475_v44  ;;  %3483 = vmatpush3.bf16.msra.mxu1 %v3482_v25 }
 0x665   :  { %3478 = vmatprep.subr.bf16.mxu0 %v3477_v30  ;;  %3484 = vmatprep.subr.bf16.mxu1 %v3692_v0  ;;  %vm962_vm14 = vcmp.ge.s32.totalorder %v3784_v3, %v961_v54  ;;  %vm963_vm2 = vcmp.ge.s32.totalorder %v3880_v18, %v961_v54  ;;  %vm965_vm10 = vcmp.ge.s32.totalorder %v3886_v20, %v961_v54 }
 0x666   :  { %3233 = vmatprep.mubr.msk.f32.mxu1 %vm4819_vm13, %v3694_v1  ;;  %vm971_vm3 = vmand %vm962_vm14, %vm967_vm6  ;;  %vm2891_vm14 = vcmask 622144  }
 0x667   :  { %vm972_vm0 = vmand %vm963_vm2, %vm968_vm9  ;;  %vm2893_vm2 = vcmask 1048160  }
 0x668   :  { %3480 = vmatpush3.bf16.msra.mxu0 %v3479_v36  ;;  %3486 = vmatpush3.bf16.msra.mxu1 %v3485_v37  ;;  %vm974_vm5 = vmand %vm965_vm10, %vm970_vm12 }
 0x669   :  { %3487 = vmatprep.subr.bf16.mxu0 %v3692_v0  ;;  %v978_v12 = vsel %vm974_vm5, 1.0, %v3694_v1 }
 0x66a   :  { %983 = vst.msk [vmem:[#allocation5 + $0x18] sm:$0xff] %vm979_vm8, %v978_v12 }
 0x66b   :  { %2707 = vmatmul.mubr.f32.vlgmr.msra.gmra.mrb[18].mxu0 %v4750_v33  ;;  %3234 = vmatmul.mubr.msk.f32.vlgmr.msra.gmra.mrb[18].mxu1 %vm74_vm1, %v3851_v29  ;;  %v975_v33 = vsel %vm971_vm3, 1.0, %v3694_v1  ;;  %v976_v29 = vsel %vm972_vm0, 1.0, %v3694_v1 }
 0x66c   :  { %3244 = vmatprep.mubr.msk.f32.mxu0 %vm4819_vm13, %v3694_v1  ;;  %980 = vst.msk [vmem:[#allocation5] sm:$0xff] %vm979_vm8, %v975_v33  ;;  %981 = vst.msk [vmem:[#allocation5 + $0x8] sm:$0xff] %vm979_vm8, %v976_v29  ;;  %vm964_vm13 = vcmp.ge.s32.totalorder %v3883_v19, %v961_v54 }
 0x66d   :  { %vm973_vm4 = vmand %vm964_vm13, %vm969_vm11 }
 0x66e   :  { %v977_v3 = vsel %vm973_vm4, 1.0, %v3694_v1 }
 0x66f   :  { %982 = vst.msk [vmem:[#allocation5 + $0x10] sm:$0xff] %vm979_vm8, %v977_v3 }
 0x671   :  { %v2796_v19 = vld [vmem:[#allocation5 + $0x18] sm:$0xff] }
 0x673   :  { %v2793_v13 = vld [vmem:[#allocation5] sm:$0xff]  ;;  %v2794_v18 = vld [vmem:[#allocation5 + $0x8] sm:$0xff] }
 0x674   :  { %v3488_v39 = vpack.c.bf16 %v2794_v18, %v2793_v13 }
 0x676   :  { %3489 = vmatpush3.bf16.msra.mxu0 %v3488_v39  ;;  %v2795_v40 = vld [vmem:[#allocation5 + $0x10] sm:$0xff] }
 0x677   :  { %3490 = vmatprep.subr.bf16.mxu0 %v3692_v0  ;;  %v3491_v41 = vpack.c.bf16 %v2796_v19, %v2795_v40 }
 0x67a   :  { %3492 = vmatpush3.bf16.msra.mxu0 %v3491_v41 }
 0x6bb   :  { %v2800_v60 = vpop.permute.xlu0 %2799 }
 0x6bf   :  { %v2889_v6 = vpop.permute.xlu0 %2888 }
 0x716   :  { %v3030_v20 = vpop.f32.mrb[14].mxu1 }
 0x717   :  { %v3031_v42 = vpop.f32.mrb[15].mxu1 }
 0x718   :  { %v3032_v43 = vadd.f32 %v3031_v42, %v3030_v20 }
 0x71a   :  { %v2499_v45 = vadd.f32 %v3032_v43, %v4747_v27 }
 0x71e   :  { %v3065_v46 = vpop.f32.mrb[16].mxu0 }
 0x71f   :  { %v3066_v26 = vpop.f32.mrb[17].mxu0 }
 0x720   :  { %v3067_v24 = vadd.f32 %v3066_v26, %v3065_v46 }
 0x722   :  { %v2569_v47 = vadd.f32 %v3067_v24, %v2499_v45 }
 0x736   :  { %v3100_v32 = vpop.f32.mrb[16].mxu1 }
 0x737   :  { %v3101_v48 = vpop.f32.mrb[17].mxu1 }
 0x738   :  { %v3102_v49 = vadd.f32 %v3101_v48, %v3100_v32 }
 0x73a   :  { %v2639_v50 = vadd.f32 %v3102_v49, %v2569_v47 }
 0x73e   :  { %v3135_v51 = vpop.f32.mrb[18].mxu0  ;;  %v2778_v52 = vpop.f32.mrb[18].mxu1 }
 0x73f   :  { %v3136_v53 = vpop.f32.mrb[19].mxu0  ;;  %v3235_v0 = vpop.f32.mrb[19].mxu1 }
 0x740   :  { %v3137_v55 = vadd.f32 %v3136_v53, %v3135_v51 }
 0x742   :  { %v2709_v56 = vadd.f32 %v3137_v55, %v2639_v50 }
 0x744   :  { %v2782_v57 = vadd.f32 %v2778_v52, %v2709_v56 }
 0x746   :  { %v2791_v59 = vadd.f32 %v2789_v58, %v2782_v57 }
 0x748   :  { %2883 = vrot.lane.b32.xlu1 %v2791_v59, %s3701_s14  ;;  %v2792_v27 = vmul.f32 %v4737_v23, %v2791_v59 }
 0x74a   :  { %3245 = vmatmul.mubr.msk.f32.vlgmr.msra.gmra.mrb[20].mxu0 %vm74_vm1, %v2792_v27 }
 0x7ba   :  { %v2884_v5 = vpop.permute.xlu1 %2883 }
 0x81d   :  { %v2871_v62 = vpop.f32.mrb[20].mxu0 }
 0x81e   :  { %v2872_v63 = vadd.f32 %v2871_v62, %v2800_v60  ;;  %v3246_v4 = vpop.f32.mrb[21].mxu0 }
 0x820   :  { %2876 = vst.msk [vmem:[#allocation14] sm:$0xff] %vm979_vm8, %v2872_v63 }
 0x821   :  { %2881 = vst.msk [vmem:[#allocation14] sm:$0xff] %vm2880_vm7, %v2878_v61 }
 0x822   :  { %2887 = vst.msk [vmem:[#allocation14] sm:$0xff] %vm2886_vm15, %v2884_v5 }
 0x823   :  { %2892 = vst.msk [vmem:[#allocation14] sm:$0xff] %vm2891_vm14, %v2889_v6 }
 0x824   :  { %2894 = vst.msk [vmem:[#allocation14] sm:$0xff] %vm2893_vm2, %v3694_v1 }
 0x825   :  { %3665 = shalt.err (!%p3662_p8)
}
 0x826   :  { %s3666_s21 = scalar_lea.hbm %s4804_s4, 128 }
 0x827   :  { %p3667_p9 = scmp.ne.s32.totalorder %s4804_s4, %s3666_s21  ;;  %p3670_p10 = scmp.lt.u32.totalorder %s3666_s21, %s4804_s4 }
 0x829   :  { %p3672_p11 = pnand %p3670_p10, %p3667_p9 }
 0x82b   :  { %3675 = shalt.err (!%p3672_p11)
}
 0x82c   :  { %2904 = dma.vmem_to_hbm [thread:$0]  %s2902_s16, 128, %s4804_s4, [#allocation8]  }
 0x82d   :  { %3682 = dma.done.wait [#allocation8], 128  }
 0x82e   :  { %3683 = vsyncadd [#allocation8], 4294967168 }
 0x82f   :  { %2908 = vsyncpa [#allocation7], 1 }
 0x830   :  { %2909 = vsyncpa [#allocation10], 1 }
 0x831   :  { %2910 = vsyncpa [#allocation13], 1 }
 0x832   :  { %2911 = vsyncpa [#allocation8], 1 }

</bundles_post_ra>
